<compile_context>
chip_gen: v7x
topology: tpu7x:2x2x1
jax: 0.10.0
libtpu: 0.0.40
codegen_flags: <defaults>
</compile_context>

<pallas_src>
import functools

import jax
import jax.numpy as jnp
from jax.experimental import pallas as pl
from jax.experimental.pallas import tpu as pltpu

_SQRT_HALF = 0.7071067811865476
_HIGHEST = jax.lax.Precision.HIGHEST
_VMEM_LIMIT = 48 * 1024 * 1024


# ----------------------------------------------------------------------------
# In-kernel helpers (only mul/add/div/min/max -> always lower on Mosaic)
# ----------------------------------------------------------------------------
def _erf(x):
    # Single-precision erf rational approximation (Eigen / XLA formulation).
    # NOTE: inputs are clipped to +-4; GELU error at the clip boundary is
    # ~1e-8 vs PyTorch's exact erf (benign, documented per review).
    x = jnp.clip(x, -4.0, 4.0)
    x2 = x * x
    a = jnp.float32(-2.72614225801306e-10)
    a = a * x2 + jnp.float32(2.77068142495902e-08)
    a = a * x2 + jnp.float32(-2.10102402082508e-06)
    a = a * x2 + jnp.float32(-5.69250639462346e-05)
    a = a * x2 + jnp.float32(-7.34990630326855e-04)
    a = a * x2 + jnp.float32(-2.95459980854025e-03)
    a = a * x2 + jnp.float32(-1.60960333262415e-02)
    a = a * x
    b = jnp.float32(-1.45660718464996e-05)
    b = b * x2 + jnp.float32(-2.13374055278905e-04)
    b = b * x2 + jnp.float32(-1.68282697438203e-03)
    b = b * x2 + jnp.float32(-7.37332916720468e-03)
    b = b * x2 + jnp.float32(-1.42647390514189e-02)
    return a / b


def _gelu_exact(x):
    # PyTorch nn.GELU() default (exact, erf-based)
    return 0.5 * x * (1.0 + _erf(x * jnp.float32(_SQRT_HALF)))


# ----------------------------------------------------------------------------
# Kernel 1: PatchExpanding (1x1 proj + PixelShuffle(2) + LayerNorm) fused with
#           concat_proj (concat eliminated by splitting its weight).
# ----------------------------------------------------------------------------
def _expand_concat_kernel(x_ref, skip_ref, wp_ref, bp_ref, red_ref, bcast_ref,
                          g_ref, b_ref, wy_ref, ws_ref, bc_ref, o_ref,
                          *, precision):
    # x_ref:     (1, TH, W, Cin)       low-res input tile       [compute dtype]
    # skip_ref:  (1, 2*TH, W, 2*Cs)    rows = 2*th+i, lanes grouped (j, cs)
    # wp_ref:    (Cin, 4*Cin)          proj weights, cols ordered (i, j, c)
    # bp_ref:    (1, 4*Cin)            proj bias (permuted)                 f32
    # red_ref:   (4*Cin, 4)            per-chunk mean reduce (1/Cin)        f32
    # bcast_ref: (4, 4*Cin)            chunk -> lanes broadcast             f32
    # g_ref/b_ref: (1, 4*Cin)          LayerNorm gamma / beta tiled 4x      f32
    # wy_ref:    (4*Cin, 4*Cout)       concat_proj (y rows),  kron(I4, Wy)
    # ws_ref:    (2*Cs, 2*Cout)        concat_proj (skip rows), kron(I2, Ws)
    # bc_ref:    (1, 2*Cout)           concat_proj bias tiled 2x            f32
    # o_ref:     (1, 2*TH, W, 2*Cout)  rows = 2*th+i, lanes grouped (j, c')
    _, TH, W, Cin = x_ref.shape
    two_cs = skip_ref.shape[3]
    two_cout = o_ref.shape[3]
    M = TH * W

    xf = x_ref[...].reshape(M, Cin)
    y = jnp.dot(xf, wp_ref[...], preferred_element_type=jnp.float32,
                precision=precision) + bp_ref[...]

    # LayerNorm per upsampled pixel (= per Cin chunk). Skinny reduce/broadcast
    # matmuls; statistics pinned at HIGHEST precision (cheap, avoids bf16
    # mean/var error on the fast path). Centered variance (no cancellation).
    mu = jnp.dot(jnp.dot(y, red_ref[...], preferred_element_type=jnp.float32,
                         precision=_HIGHEST),
                 bcast_ref[...], preferred_element_type=jnp.float32,
                 precision=_HIGHEST)
    d = y - mu
    var = jnp.dot(jnp.dot(d * d, red_ref[...],
                          preferred_element_type=jnp.float32,
                          precision=_HIGHEST),
                  bcast_ref[...], preferred_element_type=jnp.float32,
                  precision=_HIGHEST)
    yln = d * jax.lax.rsqrt(var + 1e-5) * g_ref[...] + b_ref[...]

    # concat_proj with the channel concat eliminated: y-part + skip-part.
    yln_c = yln.astype(wy_ref.dtype)
    zy_all = jnp.dot(yln_c, wy_ref[...], preferred_element_type=jnp.float32,
                     precision=precision)                      # (M, 4*Cout)
    zs_all = jnp.dot(skip_ref[...].reshape(2 * M, two_cs), ws_ref[...],
                     preferred_element_type=jnp.float32,
                     precision=precision)                      # (2M, 2*Cout)
    zy = jnp.concatenate(
        [zy_all[:, :two_cout].reshape(TH, 1, W, two_cout),     # row parity i=0
         zy_all[:, two_cout:].reshape(TH, 1, W, two_cout)],    # row parity i=1
        axis=1)                                                # (TH,2,W,2Cout)
    z = zy + zs_all.reshape(TH, 2, W, two_cout) + bc_ref[...]
    o_ref[...] = z.reshape(1, 2 * TH, W, two_cout).astype(o_ref.dtype)


# ----------------------------------------------------------------------------
# Kernel 2: fused [Conv3x3(pad=1) -> GroupNorm(8) -> GELU] x 2, per sample.
#           Zero-padded im2col in a VMEM scratch; the intermediate activation
#           never leaves VMEM.
# ----------------------------------------------------------------------------
def _double_conv_gn_gelu_kernel(z_ref, w1_ref, b1_ref, g1_ref, t1_ref,
                                w2_ref, b2_ref, g2_ref, t2_ref, gavg_ref,
                                o_ref, buf_ref, *, precision):
    # z_ref:   (1, H2, W2, C)     one sample (NHWC)             [compute dtype]
    # w*_ref:  (9*C, C)           im2col conv weights, row = (ky*3+kx)*C + cin
    # b*/g*/t*:(1, C)             conv bias / GN gamma / GN beta           f32
    # gavg_ref:(C, C)             group-average matrix 1/(H2*W2*cg) in-group
    # buf_ref: (H2+2, W2+16, C)   VMEM scratch; data lives at cols [8, 8+W2) so
    #                             the interior store is sublane-aligned; cols 7
    #                             and 8+W2 are the zero halo.
    _, H2, W2, C = z_ref.shape
    M = H2 * W2

    # Zero only the halo (left/right pad blocks + top/bottom rows) instead of
    # the full slab. Done every grid step (cheap) so it remains correct when
    # the batch grid is sharded across TensorCores on v7x.
    zcol = jnp.zeros((H2 + 2, 8, C), buf_ref.dtype)
    buf_ref[:, 0:8, :] = zcol
    buf_ref[:, 8 + W2:16 + W2, :] = zcol
    zrow = jnp.zeros((1, W2, C), buf_ref.dtype)
    buf_ref[0:1, 8:8 + W2, :] = zrow
    buf_ref[1 + H2:2 + H2, 8:8 + W2, :] = zrow

    def conv_gn_gelu(w_all, bias, gamma, beta):
        # im2col: one K=9*C MXU matmul (internal accumulation) instead of nine
        # K=C dots plus VPU accumulator adds.
        patches = []
        for dy in range(3):
            for dx in range(3):  # dx != 1 slabs read at shifted sublane starts
                patches.append(
                    buf_ref[dy:dy + H2, 7 + dx:7 + dx + W2, :].reshape(M, C))
        p = jnp.concatenate(patches, axis=-1)                   # (M, 9*C)
        acc = jnp.dot(p, w_all, preferred_element_type=jnp.float32,
                      precision=precision) + bias
        # GroupNorm with centered variance; the tiny (1,C)x(C,C) statistics
        # dots stay at HIGHEST precision regardless of the fast-path setting.
        gavg = gavg_ref[...]
        gmean = jnp.dot(jnp.sum(acc, axis=0, keepdims=True), gavg,
                        preferred_element_type=jnp.float32, precision=_HIGHEST)
        d = acc - gmean
        gvar = jnp.dot(jnp.sum(d * d, axis=0, keepdims=True), gavg,
                       preferred_element_type=jnp.float32, precision=_HIGHEST)
        ynorm = d * jax.lax.rsqrt(gvar + 1e-5) * gamma + beta
        return _gelu_exact(ynorm)

    buf_ref[1:1 + H2, 8:8 + W2, :] = z_ref[0]
    y1 = conv_gn_gelu(w1_ref[...], b1_ref[...], g1_ref[...], t1_ref[...])
    buf_ref[1:1 + H2, 8:8 + W2, :] = y1.reshape(H2, W2, C).astype(buf_ref.dtype)
    y2 = conv_gn_gelu(w2_ref[...], b2_ref[...], g2_ref[...], t2_ref[...])
    o_ref[...] = y2.reshape(1, H2, W2, C).astype(o_ref.dtype)


# ----------------------------------------------------------------------------
# Parameters (PyTorch layouts; deterministic synthetic init)
# ----------------------------------------------------------------------------
def init_params(key, in_dim, skip_dim, out_dim):
    ks = jax.random.split(key, 14)
    rnd = lambda k, s, sc: sc * jax.random.normal(k, s, jnp.float32)
    return {
        "proj_w": rnd(ks[0], (4 * in_dim, in_dim, 1, 1), 0.15),
        "proj_b": rnd(ks[1], (4 * in_dim,), 0.05),
        "ln_g": 1.0 + rnd(ks[2], (in_dim,), 0.05),
        "ln_b": rnd(ks[3], (in_dim,), 0.05),
        "cat_w": rnd(ks[4], (out_dim, in_dim + skip_dim, 1, 1), 0.15),
        "cat_b": rnd(ks[5], (out_dim,), 0.05),
        "c1_w": rnd(ks[6], (out_dim, out_dim, 3, 3), 0.08),
        "c1_b": rnd(ks[7], (out_dim,), 0.05),
        "gn1_g": 1.0 + rnd(ks[8], (out_dim,), 0.05),
        "gn1_b": rnd(ks[9], (out_dim,), 0.05),
        "c2_w": rnd(ks[10], (out_dim, out_dim, 3, 3), 0.08),
        "c2_b": rnd(ks[11], (out_dim,), 0.05),
        "gn2_g": 1.0 + rnd(ks[12], (out_dim,), 0.05),
        "gn2_b": rnd(ks[13], (out_dim,), 0.05),
    }


def _row_tile(h, w, cin, cs, cout, itemsize, budget_bytes=8 * 1024 * 1024):
    """Largest divisor TH of h whose per-step working set fits the budget."""
    best = 1
    for d in range(1, h + 1):
        if h % d:
            continue
        m = d * w
        # double-buffered blocks (x + skip + out) + f32 LN temporaries.
        blocks = 2 * (m * cin + 2 * m * 2 * cs + 2 * m * 2 * cout) * itemsize
        interm = 5 * m * 4 * cin * 4
        if blocks + interm <= budget_bytes:
            best = d
    return best


# ----------------------------------------------------------------------------
# Full SwinDecoderBlock forward (NCHW in / NCHW out, like the PyTorch module)
# ----------------------------------------------------------------------------
def swin_decoder_block(params, x_nchw, skip_nchw, num_groups=8,
                       precision=None, compute_dtype=jnp.bfloat16):
    N, Cin, H, W = x_nchw.shape
    Cs = skip_nchw.shape[1]
    Cout = params["cat_w"].shape[0]
    assert Cout % num_groups == 0

    if skip_nchw.shape[2] != 2 * H or skip_nchw.shape[3] != 2 * W:
        raise NotImplementedError("bilinear resize branch not implemented")

    cdt = compute_dtype
    x = jnp.transpose(x_nchw, (0, 2, 3, 1)).astype(cdt)        # (N, H, W, Cin)
    skip = jnp.transpose(skip_nchw, (0, 2, 3, 1)).astype(cdt)  # (N, 2H, 2W, Cs)
    skip_r = skip.reshape(N, 2 * H, W, 2 * Cs)                 # free reshape

    # --- trace-time weight packing -------------------------------------------
    # Permute proj output columns so column p = idx*Cin + c maps to PixelShuffle
    # input channel o = c*4 + idx  (idx = i*2 + j).
    idx = jnp.arange(4)
    c = jnp.arange(Cin)
    perm = (c[None, :] * 4 + idx[:, None]).reshape(-1)          # (4*Cin,)
    wp = jnp.transpose(params["proj_w"][:, :, 0, 0])[:, perm].astype(cdt)
    bp = params["proj_b"][perm].reshape(1, -1)
    g4 = jnp.tile(params["ln_g"], 4).reshape(1, -1)
    b4 = jnp.tile(params["ln_b"], 4).reshape(1, -1)
    chunk = jnp.arange(4 * Cin) // Cin
    red = (chunk[:, None] == jnp.arange(4)[None, :]).astype(jnp.float32) / Cin
    bcast = (jnp.arange(4)[:, None] == chunk[None, :]).astype(jnp.float32)

    w_cat = params["cat_w"][:, :, 0, 0]                         # (Cout, Cin+Cs)
    Wy = jnp.transpose(w_cat[:, :Cin])                          # (Cin, Cout)
    Ws = jnp.transpose(w_cat[:, Cin:])                          # (Cs, Cout)
    Wy4 = jnp.kron(jnp.eye(4, dtype=jnp.float32), Wy).astype(cdt)
    Ws2 = jnp.kron(jnp.eye(2, dtype=jnp.float32), Ws).astype(cdt)
    bc2 = jnp.tile(params["cat_b"], 2).reshape(1, -1)

    TH = _row_tile(H, W, Cin, Cs, Cout, jnp.dtype(cdt).itemsize)
    z4 = pl.pallas_call(
        functools.partial(_expand_concat_kernel, precision=precision),
        grid=(N, H // TH),
        in_specs=[
            pl.BlockSpec((1, TH, W, Cin), lambda n, r: (n, r, 0, 0)),
            pl.BlockSpec((1, 2 * TH, W, 2 * Cs), lambda n, r: (n, r, 0, 0)),
            pl.BlockSpec((Cin, 4 * Cin), lambda n, r: (0, 0)),
            pl.BlockSpec((1, 4 * Cin), lambda n, r: (0, 0)),
            pl.BlockSpec((4 * Cin, 4), lambda n, r: (0, 0)),
            pl.BlockSpec((4, 4 * Cin), lambda n, r: (0, 0)),
            pl.BlockSpec((1, 4 * Cin), lambda n, r: (0, 0)),
            pl.BlockSpec((1, 4 * Cin), lambda n, r: (0, 0)),
            pl.BlockSpec((4 * Cin, 4 * Cout), lambda n, r: (0, 0)),
            pl.BlockSpec((2 * Cs, 2 * Cout), lambda n, r: (0, 0)),
            pl.BlockSpec((1, 2 * Cout), lambda n, r: (0, 0)),
        ],
        out_specs=pl.BlockSpec((1, 2 * TH, W, 2 * Cout),
                               lambda n, r: (n, r, 0, 0)),
        out_shape=jax.ShapeDtypeStruct((N, 2 * H, W, 2 * Cout), cdt),
        compiler_params=pltpu.CompilerParams(
            dimension_semantics=("parallel", "parallel"),
            vmem_limit_bytes=_VMEM_LIMIT),
    )(x, skip_r, wp, bp, red, bcast, g4, b4, Wy4, Ws2, bc2)

    z = z4.reshape(N, 2 * H, 2 * W, Cout)                       # free reshape

    # --- (Conv3x3 -> GroupNorm(8) -> GELU) x 2, one fused kernel per sample ---
    # im2col weight layout: rows (ky*3+kx)*C + c_in, cols c_out.
    w1 = jnp.transpose(params["c1_w"], (2, 3, 1, 0)).reshape(9 * Cout, Cout)
    w2 = jnp.transpose(params["c2_w"], (2, 3, 1, 0)).reshape(9 * Cout, Cout)
    w1, w2 = w1.astype(cdt), w2.astype(cdt)
    cg = Cout // num_groups
    gid = jnp.arange(Cout) // cg
    gavg = (gid[:, None] == gid[None, :]).astype(jnp.float32) / (4 * H * W * cg)

    H2, W2 = 2 * H, 2 * W
    # NOTE: W2 % 8 == 0 keeps the col-8 halo layout and the free reshapes
    # sublane-aligned; other widths remain correct but add relayout copies.
    out_nhwc = pl.pallas_call(
        functools.partial(_double_conv_gn_gelu_kernel, precision=precision),
        grid=(N,),
        in_specs=[
            pl.BlockSpec((1, H2, W2, Cout), lambda n: (n, 0, 0, 0)),
            pl.BlockSpec((9 * Cout, Cout), lambda n: (0, 0)),
            pl.BlockSpec((1, Cout), lambda n: (0, 0)),
            pl.BlockSpec((1, Cout), lambda n: (0, 0)),
            pl.BlockSpec((1, Cout), lambda n: (0, 0)),
            pl.BlockSpec((9 * Cout, Cout), lambda n: (0, 0)),
            pl.BlockSpec((1, Cout), lambda n: (0, 0)),
            pl.BlockSpec((1, Cout), lambda n: (0, 0)),
            pl.BlockSpec((1, Cout), lambda n: (0, 0)),
            pl.BlockSpec((Cout, Cout), lambda n: (0, 0)),
        ],
        out_specs=pl.BlockSpec((1, H2, W2, Cout), lambda n: (n, 0, 0, 0)),
        out_shape=jax.ShapeDtypeStruct((N, H2, W2, Cout), jnp.float32),
        scratch_shapes=[pltpu.VMEM((H2 + 2, W2 + 16, Cout), cdt)],
        compiler_params=pltpu.CompilerParams(
            dimension_semantics=("parallel",),
            vmem_limit_bytes=_VMEM_LIMIT),
    )(z, w1, params["c1_b"].reshape(1, -1), params["gn1_g"].reshape(1, -1),
      params["gn1_b"].reshape(1, -1), w2, params["c2_b"].reshape(1, -1),
      params["gn2_g"].reshape(1, -1), params["gn2_b"].reshape(1, -1), gavg)

    return jnp.transpose(out_nhwc, (0, 3, 1, 2))                # back to NCHW


# ----------------------------------------------------------------------------
# Pure-JAX NCHW reference (mirrors the PyTorch code) for verification
# ----------------------------------------------------------------------------
def reference_forward(params, x_nchw, skip_nchw, num_groups=8):
    def conv1x1(x, w, b):
        return (jnp.einsum("nchw,oc->nohw", x, w[:, :, 0, 0],
                           precision=_HIGHEST) + b[None, :, None, None])

    def conv3x3(x, w, b):
        y = jax.lax.conv_general_dilated(
            x, w, (1, 1), ((1, 1), (1, 1)),
            dimension_numbers=("NCHW", "OIHW", "NCHW"), precision=_HIGHEST)
        return y + b[None, :, None, None]

    def layernorm_c(x, g, b):
        xc = jnp.transpose(x, (0, 2, 3, 1))
        mu = xc.mean(-1, keepdims=True)
        var = ((xc - mu) ** 2).mean(-1, keepdims=True)
        y = (xc - mu) / jnp.sqrt(var + 1e-5) * g + b
        return jnp.transpose(y, (0, 3, 1, 2))

    def groupnorm(x, g, b, G):
        n, c, h, w = x.shape
        xg = x.reshape(n, G, c // G, h, w)
        mu = xg.mean((2, 3, 4), keepdims=True)
        var = ((xg - mu) ** 2).mean((2, 3, 4), keepdims=True)
        y = ((xg - mu) / jnp.sqrt(var + 1e-5)).reshape(n, c, h, w)
        return y * g[None, :, None, None] + b[None, :, None, None]

    def gelu(x):
        return 0.5 * x * (1.0 + jax.scipy.special.erf(x * _SQRT_HALF))

    n, c, h, w = x_nchw.shape
    y = conv1x1(x_nchw, params["proj_w"], params["proj_b"])
    y = y.reshape(n, c, 2, 2, h, w)
    y = jnp.transpose(y, (0, 1, 4, 2, 5, 3)).reshape(n, c, 2 * h, 2 * w)
    y = layernorm_c(y, params["ln_g"], params["ln_b"])
    z = jnp.concatenate([y, skip_nchw], axis=1)
    z = conv1x1(z, params["cat_w"], params["cat_b"])
    z = gelu(groupnorm(conv3x3(z, params["c1_w"], params["c1_b"]),
                       params["gn1_g"], params["gn1_b"], num_groups))
    z = gelu(groupnorm(conv3x3(z, params["c2_w"], params["c2_b"]),
                       params["gn2_g"], params["gn2_b"], num_groups))
    return z


if __name__ == "__main__":
    key = jax.random.PRNGKey(0)
    k_x, k_s, k_p = jax.random.split(key, 3)

    in_dim, skip_dim, out_dim = 16, 16, 16
    N, H, W = 2, 8, 8
    x = jax.random.normal(k_x, (N, in_dim, H, W), jnp.float32)
    skip = jax.random.normal(k_s, (N, skip_dim, 2 * H, 2 * W), jnp.float32)
    params = init_params(k_p, in_dim, skip_dim, out_dim)

    ref = jax.block_until_ready(reference_forward(params, x, skip))

    # Exact path (f32 activations + bf16x3 MXU) -> validates the fused
    # algorithm tightly.
    out_exact = jax.block_until_ready(
        swin_decoder_block(params, x, skip, precision=_HIGHEST,
                           compute_dtype=jnp.float32))
    assert out_exact.shape == (N, out_dim, 2 * H, 2 * W), out_exact.shape
    if not bool(jnp.allclose(out_exact, ref, atol=2e-3, rtol=2e-3)):
        raise AssertionError(
            "exact-path mismatch, max abs err = "
            f"{float(jnp.max(jnp.abs(out_exact - ref)))}")

    # Fast path (default): bf16 activations / weights, single-pass MXU;
    # tolerance reflects bf16 storage of the intermediate activations.
    out_fast = jax.block_until_ready(swin_decoder_block(params, x, skip))
    if not bool(jnp.allclose(out_fast, ref, atol=1e-1, rtol=1e-1)):
        raise AssertionError(
            "fast-path mismatch, max abs err = "
            f"{float(jnp.max(jnp.abs(out_fast - ref)))}")

    print("KERNEL_OK")
</pallas_src>

<mosaic_0001>
module attributes {stable_mosaic.version = 11 : i64} {
  func.func @_expand_concat_kernel(%arg0: i32, %arg1: i32, %arg2: memref<1x8x8x16xf32, #tpu.memory_space<vmem>>, %arg3: memref<1x16x8x32xf32, #tpu.memory_space<vmem>>, %arg4: memref<16x64xf32, #tpu.memory_space<vmem>>, %arg5: memref<1x64xf32, #tpu.memory_space<vmem>>, %arg6: memref<64x4xf32, #tpu.memory_space<vmem>>, %arg7: memref<4x64xf32, #tpu.memory_space<vmem>>, %arg8: memref<1x64xf32, #tpu.memory_space<vmem>>, %arg9: memref<1x64xf32, #tpu.memory_space<vmem>>, %arg10: memref<64x64xf32, #tpu.memory_space<vmem>>, %arg11: memref<32x32xf32, #tpu.memory_space<vmem>>, %arg12: memref<1x32xf32, #tpu.memory_space<vmem>>, %arg13: memref<1x16x8x32xf32, #tpu.memory_space<vmem>>) attributes {dimension_semantics = [#tpu.dimension_semantics<parallel>, #tpu.dimension_semantics<parallel>], iteration_bounds = array<i64: 2, 1>, scalar_prefetch = 0 : i64, scratch_operands = 0 : i64, tpu.core_type = #tpu.core_type<tc>, window_params = [{transform_indices = @transform_0, window_bounds = array<i64: 1, 8, 8, 16>}, {transform_indices = @transform_1, window_bounds = array<i64: 1, 16, 8, 32>}, {pipeline_mode = #tpu.pipeline_mode<synchronous>, transform_indices = @transform_2, window_bounds = array<i64: 16, 64>}, {pipeline_mode = #tpu.pipeline_mode<synchronous>, transform_indices = @transform_3, window_bounds = array<i64: 1, 64>}, {pipeline_mode = #tpu.pipeline_mode<synchronous>, transform_indices = @transform_4, window_bounds = array<i64: 64, 4>}, {pipeline_mode = #tpu.pipeline_mode<synchronous>, transform_indices = @transform_5, window_bounds = array<i64: 4, 64>}, {pipeline_mode = #tpu.pipeline_mode<synchronous>, transform_indices = @transform_6, window_bounds = array<i64: 1, 64>}, {pipeline_mode = #tpu.pipeline_mode<synchronous>, transform_indices = @transform_7, window_bounds = array<i64: 1, 64>}, {pipeline_mode = #tpu.pipeline_mode<synchronous>, transform_indices = @transform_8, window_bounds = array<i64: 64, 64>}, {pipeline_mode = #tpu.pipeline_mode<synchronous>, transform_indices = @transform_9, window_bounds = array<i64: 32, 32>}, {pipeline_mode = #tpu.pipeline_mode<synchronous>, transform_indices = @transform_10, window_bounds = array<i64: 1, 32>}, {transform_indices = @transform_11, window_bounds = array<i64: 1, 16, 8, 32>}]} {
    %c0 = arith.constant 0 : index
    %c0_0 = arith.constant 0 : index
    %c0_1 = arith.constant 0 : index
    %c0_2 = arith.constant 0 : index
    %0 = vector.load %arg2[%c0, %c0_0, %c0_1, %c0_2] : memref<1x8x8x16xf32, #tpu.memory_space<vmem>>, vector<1x8x8x16xf32>
    %1 = vector.shape_cast %0 : vector<1x8x8x16xf32> to vector<64x16xf32>
    %c0_3 = arith.constant 0 : index
    %c0_4 = arith.constant 0 : index
    %2 = vector.load %arg4[%c0_3, %c0_4] : memref<16x64xf32, #tpu.memory_space<vmem>>, vector<16x64xf32>
    %cst = arith.constant dense<0.000000e+00> : vector<64x64xf32>
    %3 = tpu.matmul %1, %2, %cst {dimension_numbers = #tpu.dot_dimension_numbers<[1], [0], [0], [1], [0, 0, 1, 1], [], []>, precision = #tpu.contract_precision<fp32>} : vector<64x16xf32>, vector<16x64xf32>, vector<64x64xf32> -> vector<64x64xf32>
    %c0_5 = arith.constant 0 : index
    %c0_6 = arith.constant 0 : index
    %4 = vector.load %arg5[%c0_5, %c0_6] : memref<1x64xf32, #tpu.memory_space<vmem>>, vector<1x64xf32>
    %5 = vector.broadcast %4 : vector<1x64xf32> to vector<64x64xf32>
    %6 = arith.addf %3, %5 : vector<64x64xf32>
    %c0_7 = arith.constant 0 : index
    %c0_8 = arith.constant 0 : index
    %7 = vector.load %arg6[%c0_7, %c0_8] : memref<64x4xf32, #tpu.memory_space<vmem>>, vector<64x4xf32>
    %cst_9 = arith.constant dense<0.000000e+00> : vector<64x4xf32>
    %8 = tpu.matmul %6, %7, %cst_9 {dimension_numbers = #tpu.dot_dimension_numbers<[1], [0], [0], [1], [0, 0, 1, 1], [], []>, precision = #tpu.contract_precision<fp32>} : vector<64x64xf32>, vector<64x4xf32>, vector<64x4xf32> -> vector<64x4xf32>
    %c0_10 = arith.constant 0 : index
    %c0_11 = arith.constant 0 : index
    %9 = vector.load %arg7[%c0_10, %c0_11] : memref<4x64xf32, #tpu.memory_space<vmem>>, vector<4x64xf32>
    %cst_12 = arith.constant dense<0.000000e+00> : vector<64x64xf32>
    %10 = tpu.matmul %8, %9, %cst_12 {dimension_numbers = #tpu.dot_dimension_numbers<[1], [0], [0], [1], [0, 0, 1, 1], [], []>, precision = #tpu.contract_precision<fp32>} : vector<64x4xf32>, vector<4x64xf32>, vector<64x64xf32> -> vector<64x64xf32>
    %11 = arith.subf %6, %10 : vector<64x64xf32>
    %12 = arith.mulf %11, %11 : vector<64x64xf32>
    %c0_13 = arith.constant 0 : index
    %c0_14 = arith.constant 0 : index
    %13 = vector.load %arg6[%c0_13, %c0_14] : memref<64x4xf32, #tpu.memory_space<vmem>>, vector<64x4xf32>
    %cst_15 = arith.constant dense<0.000000e+00> : vector<64x4xf32>
    %14 = tpu.matmul %12, %13, %cst_15 {dimension_numbers = #tpu.dot_dimension_numbers<[1], [0], [0], [1], [0, 0, 1, 1], [], []>, precision = #tpu.contract_precision<fp32>} : vector<64x64xf32>, vector<64x4xf32>, vector<64x4xf32> -> vector<64x4xf32>
    %c0_16 = arith.constant 0 : index
    %c0_17 = arith.constant 0 : index
    %15 = vector.load %arg7[%c0_16, %c0_17] : memref<4x64xf32, #tpu.memory_space<vmem>>, vector<4x64xf32>
    %cst_18 = arith.constant dense<0.000000e+00> : vector<64x64xf32>
    %16 = tpu.matmul %14, %15, %cst_18 {dimension_numbers = #tpu.dot_dimension_numbers<[1], [0], [0], [1], [0, 0, 1, 1], [], []>, precision = #tpu.contract_precision<fp32>} : vector<64x4xf32>, vector<4x64xf32>, vector<64x64xf32> -> vector<64x64xf32>
    %cst_19 = arith.constant 9.99999974E-6 : f32
    %17 = vector.broadcast %cst_19 : f32 to vector<64x64xf32>
    %18 = arith.addf %16, %17 : vector<64x64xf32>
    %19 = math.rsqrt %18 : vector<64x64xf32>
    %20 = arith.mulf %11, %19 : vector<64x64xf32>
    %c0_20 = arith.constant 0 : index
    %c0_21 = arith.constant 0 : index
    %21 = vector.load %arg8[%c0_20, %c0_21] : memref<1x64xf32, #tpu.memory_space<vmem>>, vector<1x64xf32>
    %22 = vector.broadcast %21 : vector<1x64xf32> to vector<64x64xf32>
    %23 = arith.mulf %20, %22 : vector<64x64xf32>
    %c0_22 = arith.constant 0 : index
    %c0_23 = arith.constant 0 : index
    %24 = vector.load %arg9[%c0_22, %c0_23] : memref<1x64xf32, #tpu.memory_space<vmem>>, vector<1x64xf32>
    %25 = vector.broadcast %24 : vector<1x64xf32> to vector<64x64xf32>
    %26 = arith.addf %23, %25 : vector<64x64xf32>
    %c0_24 = arith.constant 0 : index
    %c0_25 = arith.constant 0 : index
    %27 = vector.load %arg10[%c0_24, %c0_25] : memref<64x64xf32, #tpu.memory_space<vmem>>, vector<64x64xf32>
    %cst_26 = arith.constant dense<0.000000e+00> : vector<64x64xf32>
    %28 = tpu.matmul %26, %27, %cst_26 {dimension_numbers = #tpu.dot_dimension_numbers<[1], [0], [0], [1], [0, 0, 1, 1], [], []>, precision = #tpu.contract_precision<fp32>} : vector<64x64xf32>, vector<64x64xf32>, vector<64x64xf32> -> vector<64x64xf32>
    %c0_27 = arith.constant 0 : index
    %c0_28 = arith.constant 0 : index
    %c0_29 = arith.constant 0 : index
    %c0_30 = arith.constant 0 : index
    %29 = vector.load %arg3[%c0_27, %c0_28, %c0_29, %c0_30] : memref<1x16x8x32xf32, #tpu.memory_space<vmem>>, vector<1x16x8x32xf32>
    %30 = vector.shape_cast %29 : vector<1x16x8x32xf32> to vector<128x32xf32>
    %c0_31 = arith.constant 0 : index
    %c0_32 = arith.constant 0 : index
    %31 = vector.load %arg11[%c0_31, %c0_32] : memref<32x32xf32, #tpu.memory_space<vmem>>, vector<32x32xf32>
    %cst_33 = arith.constant dense<0.000000e+00> : vector<128x32xf32>
    %32 = tpu.matmul %30, %31, %cst_33 {dimension_numbers = #tpu.dot_dimension_numbers<[1], [0], [0], [1], [0, 0, 1, 1], [], []>, precision = #tpu.contract_precision<fp32>} : vector<128x32xf32>, vector<32x32xf32>, vector<128x32xf32> -> vector<128x32xf32>
    %33 = vector.extract_strided_slice %28 {offsets = [0, 0], sizes = [64, 32], strides = [1, 1]} : vector<64x64xf32> to vector<64x32xf32>
    %34 = vector.shape_cast %33 : vector<64x32xf32> to vector<8x1x8x32xf32>
    %35 = vector.extract_strided_slice %28 {offsets = [0, 32], sizes = [64, 32], strides = [1, 1]} : vector<64x64xf32> to vector<64x32xf32>
    %36 = vector.shape_cast %35 : vector<64x32xf32> to vector<8x1x8x32xf32>
    %37 = tpu.concatenate %34, %36 in 1 : vector<8x1x8x32xf32>, vector<8x1x8x32xf32> -> vector<8x2x8x32xf32>
    %38 = vector.shape_cast %32 : vector<128x32xf32> to vector<8x2x8x32xf32>
    %39 = arith.addf %37, %38 : vector<8x2x8x32xf32>
    %c0_34 = arith.constant 0 : index
    %c0_35 = arith.constant 0 : index
    %40 = vector.load %arg12[%c0_34, %c0_35] : memref<1x32xf32, #tpu.memory_space<vmem>>, vector<1x32xf32>
    %41 = vector.shape_cast %40 : vector<1x32xf32> to vector<1x1x1x32xf32>
    %42 = vector.broadcast %41 : vector<1x1x1x32xf32> to vector<8x2x8x32xf32>
    %43 = arith.addf %39, %42 : vector<8x2x8x32xf32>
    %44 = vector.shape_cast %43 : vector<8x2x8x32xf32> to vector<1x16x8x32xf32>
    %c0_36 = arith.constant 0 : index
    %c0_37 = arith.constant 0 : index
    %c0_38 = arith.constant 0 : index
    %c0_39 = arith.constant 0 : index
    %45 = vector.load %arg13[%c0_36, %c0_37, %c0_38, %c0_39] : memref<1x16x8x32xf32, #tpu.memory_space<vmem>>, vector<1x16x8x32xf32>
    tpu.vector_store %arg13[%c0_36, %c0_37, %c0_38, %c0_39], %44 {strides = array<i32>} : memref<1x16x8x32xf32, #tpu.memory_space<vmem>>, vector<1x16x8x32xf32>,
    return
  }
  func.func @transform_0(%arg0: i32, %arg1: i32) -> (i32, i32, i32, i32) {
    %c0_i32 = arith.constant 0 : i32
    %c0_i32_0 = arith.constant 0 : i32
    %c0_i32_1 = arith.constant 0 : i32
    return %arg0, %arg1, %c0_i32, %c0_i32_0 : i32, i32, i32, i32
  }
  func.func @transform_1(%arg0: i32, %arg1: i32) -> (i32, i32, i32, i32) {
    %c0_i32 = arith.constant 0 : i32
    %c0_i32_0 = arith.constant 0 : i32
    %c0_i32_1 = arith.constant 0 : i32
    return %arg0, %arg1, %c0_i32, %c0_i32_0 : i32, i32, i32, i32
  }
  func.func @transform_2(%arg0: i32, %arg1: i32) -> (i32, i32) {
    %c0_i32 = arith.constant 0 : i32
    %c0_i32_0 = arith.constant 0 : i32
    %c0_i32_1 = arith.constant 0 : i32
    return %c0_i32, %c0_i32_0 : i32, i32
  }
  func.func @transform_3(%arg0: i32, %arg1: i32) -> (i32, i32) {
    %c0_i32 = arith.constant 0 : i32
    %c0_i32_0 = arith.constant 0 : i32
    %c0_i32_1 = arith.constant 0 : i32
    return %c0_i32, %c0_i32_0 : i32, i32
  }
  func.func @transform_4(%arg0: i32, %arg1: i32) -> (i32, i32) {
    %c0_i32 = arith.constant 0 : i32
    %c0_i32_0 = arith.constant 0 : i32
    %c0_i32_1 = arith.constant 0 : i32
    return %c0_i32, %c0_i32_0 : i32, i32
  }
  func.func @transform_5(%arg0: i32, %arg1: i32) -> (i32, i32) {
    %c0_i32 = arith.constant 0 : i32
    %c0_i32_0 = arith.constant 0 : i32
    %c0_i32_1 = arith.constant 0 : i32
    return %c0_i32, %c0_i32_0 : i32, i32
  }
  func.func @transform_6(%arg0: i32, %arg1: i32) -> (i32, i32) {
    %c0_i32 = arith.constant 0 : i32
    %c0_i32_0 = arith.constant 0 : i32
    %c0_i32_1 = arith.constant 0 : i32
    return %c0_i32, %c0_i32_0 : i32, i32
  }
  func.func @transform_7(%arg0: i32, %arg1: i32) -> (i32, i32) {
    %c0_i32 = arith.constant 0 : i32
    %c0_i32_0 = arith.constant 0 : i32
    %c0_i32_1 = arith.constant 0 : i32
    return %c0_i32, %c0_i32_0 : i32, i32
  }
  func.func @transform_8(%arg0: i32, %arg1: i32) -> (i32, i32) {
    %c0_i32 = arith.constant 0 : i32
    %c0_i32_0 = arith.constant 0 : i32
    %c0_i32_1 = arith.constant 0 : i32
    return %c0_i32, %c0_i32_0 : i32, i32
  }
  func.func @transform_9(%arg0: i32, %arg1: i32) -> (i32, i32) {
    %c0_i32 = arith.constant 0 : i32
    %c0_i32_0 = arith.constant 0 : i32
    %c0_i32_1 = arith.constant 0 : i32
    return %c0_i32, %c0_i32_0 : i32, i32
  }
  func.func @transform_10(%arg0: i32, %arg1: i32) -> (i32, i32) {
    %c0_i32 = arith.constant 0 : i32
    %c0_i32_0 = arith.constant 0 : i32
    %c0_i32_1 = arith.constant 0 : i32
    return %c0_i32, %c0_i32_0 : i32, i32
  }
  func.func @transform_11(%arg0: i32, %arg1: i32) -> (i32, i32, i32, i32) {
    %c0_i32 = arith.constant 0 : i32
    %c0_i32_0 = arith.constant 0 : i32
    %c0_i32_1 = arith.constant 0 : i32
    return %arg0, %arg1, %c0_i32, %c0_i32_0 : i32, i32, i32, i32
  }
}

</mosaic_0001>

<bundles_post_ra>
// kernel: tpu_custom_call.1
= control target key start
LH: loop header
LB: loop body
LE: loop exit
PB: predicated region body
PF: predicated region fallthrough
CT: control target
= control target key end

     0   :  { %s11596_s0 = inlined_call_operand.hbm [shape: f32[2,8,8,16], index: 0, kind: input, shape index: {}]   ;;  %s11597_s1 = inlined_call_operand.hbm [shape: f32[2,16,8,32], index: 1, kind: input, shape index: {}]   ;;  %s11598_s2 = inlined_call_operand.hbm [shape: f32[16,64], index: 2, kind: input, shape index: {}]   ;;  %s11599_s3 = inlined_call_operand.vmem [shape: f32[1,64], index: 3, kind: input, shape index: {}]   ;;  %s11600_s4 = inlined_call_operand.vmem [shape: f32[64,4], index: 4, kind: input, shape index: {}]   ;;  %s11601_s5 = inlined_call_operand.hbm [shape: f32[4,64], index: 5, kind: input, shape index: {}]   ;;  %s11602_s6 = inlined_call_operand.vmem [shape: f32[1,64], index: 6, kind: input, shape index: {}]   ;;  %s11603_s7 = inlined_call_operand.hbm [shape: f32[1,64], index: 7, kind: input, shape index: {}]   ;;  %s11604_s8 = inlined_call_operand.vmem [shape: f32[64,64], index: 8, kind: input, shape index: {}]   ;;  %s11605_s9 = inlined_call_operand.vmem [shape: f32[32,32], index: 9, kind: input, shape index: {}]   ;;  %s11606_s10 = inlined_call_operand.vmem [shape: f32[1,32], index: 10, kind: input, shape index: {}]   ;;  %s11607_s11 = inlined_call_operand.hbm [shape: f32[2,16,8,32], index: 11, kind: output, shape index: {}]  }
   0x1   :  { %11677 = sst [smem:[#allocation40_spill]] %s11596_s0 }
   0x2   :  { %11678 = sst [smem:[#allocation41_spill]] %s11598_s2 }
   0x3   :  { %11679 = sst [smem:[#allocation42_spill]] %s11601_s5 }
   0x4   :  { %11680 = sst [smem:[#allocation43_spill]] %s11602_s6 }
   0x5   :  { %11681 = sst [smem:[#allocation44_spill]] %s11603_s7 }
   0x6   :  { %11682 = sst [smem:[#allocation45_spill]] %s11605_s9 }
   0x7   :  { %11683 = sst [smem:[#allocation46_spill]] %s11606_s10 }
   0x8   :  { %11684 = sst [smem:[#allocation47_spill]] %s11607_s11 }
   0x9   :  { %16 = vsyncpa [#allocation3], 0 }
   0xa   :  { %18 = vsyncpa [#allocation3 + $0x1], 0 }
   0xb   :  { %19 = vsyncpa [#allocation6], 0 }
   0xc   :  { %21 = vsyncpa [#allocation6 + $0x1], 0 }
   0xd   :  { %22 = vsyncpa [#allocation9], 0 }
   0xe   :  { %23 = vsyncpa [#allocation4], 0 }
   0xf   :  { %25 = vsyncpa [#allocation4 + $0x1], 0  ;;  %s9665_s17 = smov 0   ;;  %s9667_s18 = smov 0  }
  0x10   :  { %s9669_s19 = smov 0   ;;  %s9671_s20 = smov 0  }
  0x11   :  { %s9673_s21 = smov 0   ;;  %s9675_s22 = smov 0  }
  0x12 LB: > { %11685 = sst [smem:[#allocation17_spill]] %s9572_s17  ;;  %s9696_s23 = sadd.s32 4294967295, %s9592_s22   ;;  %s9592_s22 = sphi %s9675_s22, %s31_s22   ;;  %s9588_s21 = sphi %s9673_s21, %s11788_s21   ;;  %s9584_s20 = sphi %s9671_s20, %s11787_s20   ;;  %s9580_s19 = sphi %s9669_s19, %s11786_s19   ;;  %s9576_s18 = sphi %s9667_s18, %s11785_s18   ;;  %s9572_s17 = sphi %s9665_s17, %s11784_s17  }
  0x13   : > { %11686 = sst [smem:[#allocation18_spill]] %s9584_s20  ;;  %s6968_s24 = sadd.s32 4294967294, %s9592_s22  }
  0x14   : > { %p65_p0 = scmp.ne.s32.totalorder %s9576_s18, %s9572_s17  ;;  %p11611_p1 = scmp.eq.s32.totalorder %s9696_s23, 0 }
  0x15   : > { %p314_p3 = scmp.eq.s32.totalorder %s6968_s24, 1  ;;  %p6969_p5 = scmp.ge.s32.totalorder %s9592_s22, 1 }
  0x16   : > { %p9705_p4 = por %p11611_p1, %p65_p0  ;;  %p321_p7 = scmp.lt.s32.totalorder %s9592_s22, 3 }
  0x17   : > { %p9710_p6 = por %p314_p3, %p65_p0  ;;  %s9594_s28 = smov [#allocation7]  }
  0x18   : > { %s11687_s25 = scalar_select %p9705_p4, 1, 0 }
  0x19   : > { %s11688_s26 = scalar_select %p9710_p6, 1, 0 }
  0x1a   : > { %p9715_p8 = pnand %p6969_p5, %p321_p7  ;;  %s333_s29 = sshll.u32 %s9594_s28, 4  ;;  %s9719_s29 = int_to_ptr.vmem [resolvable:$true] %s333_s29 }
  0x1b   : > { %11689 = sst [smem:[#allocation19_spill]] %s11688_s26  ;;  %s9595_s12 = smov [#allocation8]  }
  0x1c   : > { %s11690_s27 = scalar_select %p9715_p8, 1, 0 }
  0x1d   : > { %p9253_p9 = pneg %p9715_p8  ;;  %s353_s13 = sshll.u32 %s9595_s12, 4  ;;  %s9730_s13 = int_to_ptr.vmem [resolvable:$true] %s353_s13 }
  0x1e   : > { %s9596_s14 = smov [#allocation10]   ;;  %s11692_s2 = sld [smem:[#allocation41_spill]] }
  0x1f   : > { %p9726_p11 = pnand %p9253_p9, %p11611_p1  ;;  %s9732_s15 = sshll.u32 %s9596_s14, 4  ;;  %s368_s15 = int_to_ptr.vmem [resolvable:$true] %s9732_s15 }
  0x21   : > { %p9742_p13 = pneg %p9726_p11 }
  0x24   : > { %s9354_s28 = scalar_lea.hbm %s11692_s2, 256 }
  0x25   : > { %p9355_p12 = scmp.ne.s32.totalorder %s11692_s2, %s9354_s28  ;;  %p9361_p5 = scmp.lt.u32.totalorder %s9354_s28, %s11692_s2 }
  0x27   : > { %p9357_p0 = pnand %p9742_p13, %p9355_p12 }
  0x29   : > { %p9358_p3 = pneg %p9357_p0 }
  0x2b   : > { %p9363_p7 = pnand %p9361_p5, %p9358_p3 }
  0x2d   : > { %9366 = shalt.err (!%p9363_p7)
}
  0x2e   : > { %s9367_s17 = scalar_lea.vmem %s9719_s29, 256  ;;  %p9375_p2 = scmp.lt.s32.totalorder %s9719_s29, %s9719_s29 }
  0x2f   : > { %p9368_p9 = scmp.ne.s32.totalorder %s9719_s29, %s9367_s17  ;;  %p9376_p6 = scmp.lt.s32.totalorder %s9367_s17, %s9367_s17 }
  0x31   : > { %p9370_p10 = pnand %p9368_p9, %p9742_p13  ;;  %p9377_p12 = por %p9376_p6, %p9375_p2 }
  0x33   : > { %p9371_p1 = pneg %p9370_p10 }
  0x35   : > { %p9378_p0 = pnand %p9377_p12, %p9371_p1 }
  0x37   : > { %9381 = shalt.err (!%p9378_p0)
}
  0x38   : > { %s11615_s26 = smov 128   ;;  %s11617_s16 = smov 8  }
  0x39   : > { %9256 = dma.hbm_to_vmem [thread:$0]  (!%p9726_p11), %s11692_s2, 256, %s9719_s29, [#allocation6], %s11615_s26, %s11615_s26, %s11617_s16  }
  0x3a   : > { %s11694_s5 = sld [smem:[#allocation42_spill]] }
  0x40   : > { %s9382_s17 = scalar_lea.hbm %s11694_s5, 64 }
  0x41   : > { %p9383_p1 = scmp.ne.s32.totalorder %s11694_s5, %s9382_s17  ;;  %p9389_p10 = scmp.lt.u32.totalorder %s9382_s17, %s11694_s5 }
  0x43   : > { %p9385_p2 = pnand %p9383_p1, %p9742_p13 }
  0x45   : > { %p9386_p6 = pneg %p9385_p2 }
  0x47   : > { %p9391_p3 = pnand %p9389_p10, %p9386_p6 }
  0x49   : > { %9394 = shalt.err (!%p9391_p3)
}
  0x4a   : > { %s9395_s29 = scalar_lea.vmem %s9730_s13, 64  ;;  %p9403_p12 = scmp.lt.s32.totalorder %s9730_s13, %s9730_s13 }
  0x4b   : > { %p9396_p5 = scmp.ne.s32.totalorder %s9730_s13, %s9395_s29  ;;  %p9404_p0 = scmp.lt.s32.totalorder %s9395_s29, %s9395_s29 }
  0x4d   : > { %p9398_p7 = pnand %p9396_p5, %p9742_p13  ;;  %p9405_p1 = por %p9404_p0, %p9403_p12 }
  0x4f   : > { %p9399_p9 = pneg %p9398_p7 }
  0x51   : > { %p9406_p2 = pnand %p9405_p1, %p9399_p9 }
  0x53   : > { %9409 = shalt.err (!%p9406_p2)
}
  0x54   : > { %9259 = dma.hbm_to_vmem [thread:$0]  (!%p9726_p11), %s11694_s5, 64, %s9730_s13, [#allocation9]  }
  0x55   : > { %s11695_s7 = sld [smem:[#allocation44_spill]] }
  0x5b   : > { %s9410_s24 = scalar_lea.hbm %s11695_s7, 16 }
  0x5c   : > { %p9411_p6 = scmp.ne.s32.totalorder %s11695_s7, %s9410_s24  ;;  %p9417_p5 = scmp.lt.u32.totalorder %s9410_s24, %s11695_s7 }
  0x5e   : > { %p9413_p10 = pnand %p9411_p6, %p9742_p13 }
  0x60   : > { %p9414_p3 = pneg %p9413_p10 }
  0x62   : > { %p9419_p7 = pnand %p9417_p5, %p9414_p3 }
  0x64   : > { %9422 = shalt.err (!%p9419_p7)
}
  0x65   : > { %s9423_s29 = scalar_lea.vmem %s368_s15, 16  ;;  %s9430_s13 = scalar_lea.vmem %s368_s15, 32 }
  0x66   : > { %p9424_p9 = scmp.ne.s32.totalorder %s368_s15, %s9423_s29  ;;  %p9431_p1 = scmp.lt.s32.totalorder %s368_s15, %s368_s15 }
  0x67   : > { %p9432_p2 = scmp.lt.s32.totalorder %s9430_s13, %s9423_s29 }
  0x68   : > { %p9426_p12 = pnand %p9424_p9, %p9742_p13 }
  0x69   : > { %p9433_p4 = por %p9432_p2, %p9431_p1 }
  0x6a   : > { %p9427_p0 = pneg %p9426_p12 }
  0x6c   : > { %p9434_p8 = pnand %p9433_p4, %p9427_p0 }
  0x6e   : > { %9437 = shalt.err (!%p9434_p8)
}
  0x6f   : > { %9262 = dma.hbm_to_vmem [thread:$0]  (!%p9726_p11), %s11695_s7, 16, %s368_s15, [#allocation9]  }
  0x70   : > { %s52_s11 = sadd.s32 1, %s9580_s19  ;;  %s43_s10 = sadd.s32 1, %s9588_s21 }
  0x71   : > { %p59_p4 = scmp.ne.s32.totalorder %s9580_s19, %s9576_s18  ;;  %p45_p8 = scmp.ge.s32.totalorder %s43_s10, 2 }
  0x72   : > { %p60_p13 = scmp.eq.s32.totalorder %s9592_s22, 0  ;;  %p11696_p6 = scmp.eq.s32.totalorder %s9696_s23, 1 }
  0x73   : > { %p9277_p3 = scmp.lt.s32.totalorder %s9592_s22, 2  ;;  %s11790_s10 = smov (%p45_p8, %s43_s10), 0 }
  0x74   : > { %p9815_p10 = por %p11696_p6, %p59_p4  ;;  %p61_p5 = por %p60_p13, %p59_p4 }
  0x75   : > { %s9823_s20 = sand.u32 1, %s9580_s19   ;;  %s47_s15 = ssub.s32 %s9588_s21, %s11790_s10 }
  0x76   : > { %p50_p11 = scmp.eq.s32.totalorder %s47_s15, 0  ;;  %s6974_s24 = sshll.u32 %s9823_s20, 6 }
  0x77   : > { %s6996_s28 = sshll.u32 %s9588_s21, 10  ;;  %s11698_s0 = sld [smem:[#allocation40_spill]] }
  0x78   : > { %s9830_s12 = scalar_select %p50_p11, %s9580_s19, %s52_s11  }
  0x79   : > { %s391_s13 = scalar_lea.vmem [#allocation2], %s6974_s24  ;;  %p9841_p7 = pnand %p9277_p3, %p61_p5 }
  0x7a   : > { %s400_s6 = sshll.u32 %s391_s13, 4  ;;  %s6977_s15 = sshll.u32 %s9823_s20, 7  ;;  %s9837_s6 = int_to_ptr.vmem [resolvable:$true] %s400_s6 }
  0x7b   : > { %s388_s14 = scalar_lea.sflag [#allocation3], %s9823_s20  ;;  %p9440_p12 = pneg %p9841_p7 }
  0x7d   : > { %s9835_s29 = scalar_lea.hbm %s11698_s0, %s6996_s28  ;;  %s9443_s13 = scalar_lea.hbm %s11698_s0, 2048 }
  0x7e   : > { %s9438_s28 = scalar_lea.hbm %s9835_s29, 1024  ;;  %p9444_p2 = scmp.lt.u32.totalorder %s9835_s29, %s11698_s0 }
  0x7f   : > { %p9439_p9 = scmp.ne.s32.totalorder %s9835_s29, %s9438_s28  ;;  %p9445_p4 = scmp.lt.u32.totalorder %s9443_s13, %s9438_s28 }
  0x80   : > { %p9447_p13 = scmp.lt.u32.totalorder %s9438_s28, %s9835_s29 }
  0x81   : > { %p9441_p0 = pnand %p9440_p12, %p9439_p9  ;;  %p9446_p8 = por %p9445_p4, %p9444_p2 }
  0x83   : > { %p9442_p1 = pneg %p9441_p0  ;;  %p9448_p6 = por %p9447_p13, %p9446_p8 }
  0x85   : > { %p9449_p3 = pnand %p9448_p6, %p9442_p1 }
  0x87   : > { %9452 = shalt.err (!%p9449_p3)
}
  0x88   : > { %s9453_s11 = scalar_lea.vmem %s9837_s6, 1024  ;;  %s9599_s24 = smov [#allocation2]  }
  0x89   : > { %p9454_p5 = scmp.ne.s32.totalorder %s9837_s6, %s9453_s11  ;;  %s9458_s17 = sshll.u32 %s9599_s24, 4  ;;  %s9459_s17 = int_to_ptr.vmem [resolvable:$false] %s9458_s17 }
  0x8a   : > { %s9460_s26 = scalar_lea.vmem %s9459_s17, 2048  ;;  %p9461_p0 = scmp.lt.s32.totalorder %s9837_s6, %s9459_s17 }
  0x8b   : > { %p9456_p11 = pnand %p9454_p5, %p9440_p12  ;;  %p9462_p2 = scmp.lt.s32.totalorder %s9460_s26, %s9453_s11 }
  0x8d   : > { %p9457_p9 = pneg %p9456_p11  ;;  %p9463_p4 = por %p9462_p2, %p9461_p0 }
  0x8f   : > { %p9464_p8 = pnand %p9463_p4, %p9457_p9 }
  0x91   : > { %9467 = shalt.err (!%p9464_p8)
}
  0x92   : > { %s11700_s16 = smov 8   ;;  %s11701_s28 = smov 128  }
  0x93   : > { %9266 = dma.hbm_to_vmem [thread:$0]  (!%p9841_p7), %s9835_s29, 1024, %s9837_s6, %s388_s14, %s11701_s28, %s11701_s28, %s11700_s16  }
  0x94   : > { %s6997_s13 = sshll.u32 %s9588_s21, 11  ;;  %s414_s26 = scalar_lea.vmem [#allocation5], %s6977_s15 }
  0x95   : > { %s9882_s17 = scalar_lea.hbm %s11597_s1, %s6997_s13  ;;  %s423_s0 = sshll.u32 %s414_s26, 4  ;;  %s9886_s0 = int_to_ptr.vmem [resolvable:$true] %s423_s0 }
  0x96   : > { %s11702_s2 = sand.u32 1, %s9592_s22   ;;  %s9468_s7 = scalar_lea.hbm %s9882_s17, 2048 }
  0x97   : > { %s9890_s5 = scalar_lea.sflag [#allocation6], %s11702_s2  ;;  %p9469_p1 = scmp.ne.s32.totalorder %s9882_s17, %s9468_s7 }
  0x98   : > { %s9473_s20 = scalar_lea.hbm %s11597_s1, 4096  ;;  %p9474_p3 = scmp.lt.u32.totalorder %s9882_s17, %s11597_s1 }
  0x99   : > { %p9471_p13 = pnand %p9469_p1, %p9440_p12  ;;  %p9475_p5 = scmp.lt.u32.totalorder %s9473_s20, %s9468_s7 }
  0x9a   : > { %p9477_p9 = scmp.lt.u32.totalorder %s9468_s7, %s9882_s17 }
  0x9b   : > { %p9472_p6 = pneg %p9471_p13  ;;  %p9476_p11 = por %p9475_p5, %p9474_p3 }
  0x9d   : > { %p9478_p0 = por %p9477_p9, %p9476_p11 }
  0x9f   : > { %p9479_p2 = pnand %p9478_p0, %p9472_p6 }
  0xa1   : > { %9482 = shalt.err (!%p9479_p2)
}
  0xa2   : > { %s9483_s2 = scalar_lea.vmem %s9886_s0, 2048  ;;  %s9600_s15 = smov [#allocation5]  }
  0xa3   : > { %p9484_p4 = scmp.ne.s32.totalorder %s9886_s0, %s9483_s2  ;;  %s9488_s24 = sshll.u32 %s9600_s15, 4  ;;  %s9489_s24 = int_to_ptr.vmem [resolvable:$false] %s9488_s24 }
  0xa4   : > { %s9490_s11 = scalar_lea.vmem %s9489_s24, 4096  ;;  %p9491_p13 = scmp.lt.s32.totalorder %s9886_s0, %s9489_s24 }
  0xa5   : > { %p9486_p8 = pnand %p9484_p4, %p9440_p12  ;;  %p9492_p3 = scmp.lt.s32.totalorder %s9490_s11, %s9483_s2 }
  0xa7   : > { %p9487_p1 = pneg %p9486_p8  ;;  %p9493_p5 = por %p9492_p3, %p9491_p13 }
  0xa9   : > { %p9494_p11 = pnand %p9493_p5, %p9487_p1 }
  0xab   : > { %9497 = shalt.err (!%p9494_p11)
}
  0xac   : > { %9269 = dma.hbm_to_vmem [thread:$0]  (!%p9841_p7), %s9882_s17, 2048, %s9886_s0, %s9890_s5, %s11701_s28, %s11701_s28, %s11700_s16  }
  0xad   : > { %p11703_p12 = scmp.ne.s32.totalorder %s11690_s27, 0 }
  0xaf   : > { %435 = sbr.rel (%p11703_p12) target bundleno = 2202 (0x89a), region = 64 }
  0xb6   : > { %s9922_s7 = sand.u32 1, %s9576_s18   ;;  %p11704_p6 = scmp.ne.s32.totalorder %s11687_s25, 0 }
  0xb7   : > { %s6981_s26 = sshll.u32 %s9922_s7, 6  ;;  %s438_s29 = scalar_lea.sflag [#allocation3], %s9922_s7 }
  0xb8   : > { %s9926_s6 = scalar_lea.vmem [#allocation2], %s6981_s26 }
  0xb9   : > { %9551 = dma.done.wait (%p11704_p6), %s438_s29, 1024  }
  0xba   : > { %9553 = vsyncadd (%p11704_p6), %s438_s29, 4294966272  ;;  %s446_s0 = sand.u32 1, %s9696_s23   ;;  %s6982_s5 = sshll.u32 %s9922_s7, 7 }
  0xbb   : > { %s447_s27 = scalar_lea.sflag [#allocation6], %s446_s0  ;;  %s9936_s9 = scalar_lea.vmem [#allocation5], %s6982_s5 }
  0xbc   : > { %9555 = dma.done.wait (%p11704_p6), %s447_s27, 2048  }
  0xbd   : > { %9557 = vsyncadd (%p11704_p6), %s447_s27, 4294965248  ;;  %p11705_p7 = scmp.eq.s32.totalorder %s9696_s23, 0 }
  0xbf   : > { %9559 = dma.done.wait (%p11705_p7), [#allocation6], 256   ;;  %p11706_p9 = pmov %p11705_p7 }
  0xc0   : > { %p11707_p0 = pmov %p11705_p7 }
  0xc1   : > { %9561 = vsyncadd (%p11706_p9), [#allocation6], 4294967040 }
  0xc2   : > { %9563 = dma.done.wait (%p11707_p0), [#allocation9], 80   ;;  %p11708_p2 = pmov %p11707_p0 }
  0xc3   : > { %vm526_vm0 = vcmask 130048   ;;  %v517_v0 = vld [vmem:[#allocation7] sm:$0xff]  ;;  %v518_v1 = vld [vmem:[#allocation7 + $0x8] sm:$0xff]  ;;  %v511_v7 = vld [vmem:[%s9926_s6 + $0x10] sm:$0xff]  ;;  %vm2208_vm1 = vcmask 1043456   ;;  %vm1319_vm2 = vcmask 523264  }
  0xc4   : > { %9565 = vsyncadd (%p11708_p2), [#allocation9], 4294967216  ;;  %v509_v2 = vld [vmem:[%s9926_s6] sm:$0xff]  ;;  %v552_v3 = vand.u32 4294901760, %v517_v0  ;;  %v555_v4 = vand.u32 4294901760, %v518_v1  ;;  %v510_v6 = vld [vmem:[%s9926_s6 + $0x8] sm:$0xff] }
  0xc5   : > { %v528_v5 = vsel %vm526_vm0, %v509_v2, 0  ;;  %v512_v8 = vld [vmem:[%s9926_s6 + $0x18] sm:$0xff]  ;;  %v531_v10 = vsel %vm526_vm0, %v510_v6, 0  ;;  %v534_v11 = vsel %vm526_vm0, %v511_v7, 0  ;;  %v513_v13 = vld [vmem:[%s9926_s6 + $0x20] sm:$0xff]  ;;  %v514_v18 = vld [vmem:[%s9926_s6 + $0x28] sm:$0xff] }
  0xc6   : > { %v9955_v9 = vand.u32 4294901760, %v528_v5  ;;  %v537_v12 = vsel %vm526_vm0, %v512_v8, 0  ;;  %v9961_v14 = vpack.c.bf16 %v555_v4, %v552_v3  ;;  %v9963_v15 = vand.u32 4294901760, %v531_v10  ;;  %v515_v39 = vld [vmem:[%s9926_s6 + $0x30] sm:$0xff]  ;;  %v516_v48 = vld [vmem:[%s9926_s6 + $0x38] sm:$0xff]  ;;  %v1311_v8 = vld [vmem:[%s11600_s4] sm:$0xff] }
  0xc7   : > { %v9965_v16 = vsub.f32 %v517_v0, %v552_v3  ;;  %v9967_v17 = vsub.f32 %v518_v1, %v555_v4  ;;  %v9973_v20 = vand.u32 4294901760, %v534_v11  ;;  %v9975_v21 = vand.u32 4294901760, %v537_v12  ;;  %s11709_s16 = sld [smem:[#allocation45_spill]]  ;;  %s11735_s24 = sld [smem:[#allocation43_spill]] }
  0xc8   : > { %v9971_v19 = vsub.f32 %v528_v5, %v9955_v9  ;;  %v540_v22 = vsel %vm526_vm0, %v513_v13, 0  ;;  %8536 = vmatprep.subr.bf16.mxu0 %v9961_v14  ;;  %v9980_v23 = vsub.f32 %v531_v10, %v9963_v15  ;;  %v543_v30 = vsel %vm526_vm0, %v514_v18, 0  ;;  %v1313_v13 = vld [vmem:[%s11600_s4 + $0x10] sm:$0xff]  ;;  %v1315_v18 = vld [vmem:[%s11600_s4 + $0x20] sm:$0xff]  ;;  %s9601_s11 = smov 96   ;;  %s11776_s6 = sld [smem:[#allocation46_spill]] }
  0xc9   : > { %v701_v24 = vand.u32 4294901760, %v9965_v16  ;;  %v708_v25 = vand.u32 4294901760, %v9967_v17  ;;  %v9984_v26 = vand.u32 4294901760, %v540_v22  ;;  %8538 = vmatpush3.bf16.msra.mxu0 %v9961_v14  ;;  %v9989_v28 = vsub.f32 %v534_v11, %v9973_v20  ;;  %s11486_s0 = scalar_lea.vmem [#allocation11], %s6982_s5  ;;  %s11777_s5 = sld [smem:[#allocation18_spill]] }
  0xca   : > { %v620_v27 = vand.u32 4294901760, %v9971_v19  ;;  %v9992_v29 = vsub.f32 %v537_v12, %v9975_v21  ;;  %v630_v31 = vand.u32 4294901760, %v9980_v23  ;;  %v10010_v38 = vand.u32 4294901760, %v543_v30  ;;  %s6826_s23 = sshll.u32 %s11486_s0, 4  ;;  %s11778_s17 = sld [smem:[#allocation47_spill]]  ;;  %s11544_s23 = int_to_ptr.vmem [resolvable:$true] %s6826_s23 }
  0xcb   : > { %v702_v32 = vsub.f32 %v9965_v16, %v701_v24  ;;  %v709_v33 = vsub.f32 %v9967_v17, %v708_v25  ;;  %v10003_v34 = vsub.f32 %v540_v22, %v9984_v26  ;;  %v640_v36 = vand.u32 4294901760, %v9989_v28  ;;  %s6811_s13 = scalar_lea.sflag [#allocation4], %s9922_s7  ;;  %s9498_s2 = scalar_lea.vmem %s11544_s23, 2048 }
  0xcc   : > { %v621_v35 = vsub.f32 %v9971_v19, %v620_v27  ;;  %v650_v37 = vand.u32 4294901760, %v9992_v29  ;;  %v631_v40 = vsub.f32 %v9980_v23, %v630_v31  ;;  %v10024_v47 = vsub.f32 %v543_v30, %v10010_v38  ;;  %p9499_p4 = scmp.ne.s32.totalorder %s11544_s23, %s9498_s2 }
  0xcd   : > { %v703_v41 = vand.u32 4294901760, %v702_v32  ;;  %v710_v42 = vand.u32 4294901760, %v709_v33  ;;  %v660_v43 = vand.u32 4294901760, %v10003_v34  ;;  %v641_v45 = vsub.f32 %v9989_v28, %v640_v36 }
  0xce   : > { %v622_v44 = vand.u32 4294901760, %v621_v35  ;;  %v651_v46 = vsub.f32 %v9992_v29, %v650_v37  ;;  %v632_v49 = vand.u32 4294901760, %v631_v40  ;;  %v546_v52 = vsel %vm526_vm0, %v515_v39, 0  ;;  %p9500_p8 = pnand %p9499_p4, %p9815_p10 }
  0xcf   : > { %v8539_v50 = vpack.c.bf16 %v710_v42, %v703_v41  ;;  %v661_v51 = vsub.f32 %v10003_v34, %v660_v43  ;;  %v642_v53 = vand.u32 4294901760, %v641_v45  ;;  %v670_v54 = vand.u32 4294901760, %v10024_v47  ;;  %s6998_s27 = sshll.u32 %s11777_s5, 11 }
  0xd0   : > { %7579 = vmatprep.mubr.f32.mxu0 %v622_v44  ;;  %v10032_v55 = vand.u32 4294901760, %v546_v52  ;;  %v652_v56 = vand.u32 4294901760, %v651_v46  ;;  %v549_v57 = vsel %vm526_vm0, %v516_v48, 0  ;;  %v8543_v58 = vpack.c.bf16 %v9967_v17, %v9965_v16  ;;  %s11779_s14 = smov %s11778_s17  ;;  %s11542_s20 = scalar_lea.hbm %s11778_s17, %s6998_s27 }
  0xd1   : > { %7580 = vmatmul.mubr.f32.vlgmr.msra.gmra.mrb[0].mxu0 %v632_v49  ;;  %8540 = vmatprep.subr.bf16.mxu0 %v8539_v50  ;;  %v662_v59 = vand.u32 4294901760, %v661_v51  ;;  %v671_v60 = vsub.f32 %v10024_v47, %v670_v54  ;;  %v688_v62 = vand.u32 4294901760, %v549_v57  ;;  %v8551_v7 = vpack.c.bf16 %v708_v25, %v701_v24  ;;  %v1317_v25 = vld [vmem:[%s11600_s4 + $0x30] sm:$0xff]  ;;  %p9501_p1 = pneg %p9500_p8 }
  0xd2   : > { %8542 = vmatpush3.bf16.msra.mxu0 %v8539_v50  ;;  %7582 = vmatprep.mubr.f32.mxu0 %v642_v53  ;;  %v679_v61 = vsub.f32 %v546_v52, %v10032_v55  ;;  %v1345_v10 = vand.u32 4294901760, %v1311_v8  ;;  %vm2183_vm3 = vcmask 31744   ;;  %vm5544_vm4 = vcmask 261120  }
  0xd3   : > { %8544 = vmatprep.subr.bf16.mxu0 %v8543_v58  ;;  %v689_v0 = vsub.f32 %v549_v57, %v688_v62  ;;  %v672_v1 = vand.u32 4294901760, %v671_v60 }
  0xd4   : > { %v680_v63 = vand.u32 4294901760, %v679_v61 }
  0xd5   : > { %7583 = vmatmul.mubr.f32.gmra.mrb[2].mxu0 %v652_v56  ;;  %v690_v3 = vand.u32 4294901760, %v689_v0 }
  0xd6   : > { %7585 = vmatprep.mubr.f32.mxu0 %v662_v59  ;;  %v681_v2 = vsub.f32 %v679_v61, %v680_v63 }
  0xd7   : > { %v691_v5 = vsub.f32 %v689_v0, %v690_v3 }
  0xd8   : > { %v682_v4 = vand.u32 4294901760, %v681_v2 }
  0xd9   : > { %7586 = vmatmul.mubr.f32.gmra.mrb[4].mxu0 %v672_v1  ;;  %v692_v6 = vand.u32 4294901760, %v691_v5 }
  0xda   : > { %7588 = vmatprep.mubr.f32.mxu0 %v682_v4 }
  0xdd   : > { %7589 = vmatmul.mubr.f32.gmra.mrb[6].mxu0 %v692_v6 }
  0xde   : > { %7595 = vmatprep.mubr.f32.mxu0 %v9955_v9 }
  0xe1   : > { %7596 = vmatmul.mubr.f32.vlgmr.msra.gmra.mrb[0].mxu0 %v9963_v15 }
  0xe2   : > { %8546 = vmatpush3.bf16.msra.mxu0 %v8543_v58  ;;  %7598 = vmatprep.mubr.f32.mxu0 %v9973_v20 }
  0xe3   : > { %8548 = vmatprep.subr.bf16.mxu0 %v9961_v14 }
  0xe5   : > { %7599 = vmatmul.mubr.f32.gmra.mrb[2].mxu0 %v9975_v21 }
  0xe6   : > { %7601 = vmatprep.mubr.f32.mxu0 %v9984_v26 }
  0xe9   : > { %7602 = vmatmul.mubr.f32.gmra.mrb[4].mxu0 %v10010_v38 }
  0xea   : > { %7604 = vmatprep.mubr.f32.mxu0 %v10032_v55 }
  0xed   : > { %7605 = vmatmul.mubr.f32.gmra.mrb[6].mxu0 %v688_v62 }
  0xee   : > { %7611 = vmatprep.mubr.f32.mxu0 %v9971_v19  ;;  %v1316_v19 = vld [vmem:[%s11600_s4 + $0x28] sm:$0xff] }
  0xf1   : > { %7612 = vmatmul.mubr.f32.vlgmr.msra.gmra.mrb[0].mxu0 %v9980_v23  ;;  %v1499_v23 = vsub.f32 %v1311_v8, %v1345_v10  ;;  %v2182_v8 = vld [vmem:[#allocation8] sm:$0xf] }
  0xf2   : > { %8550 = vmatpush3.bf16.msra.mxu0 %v9961_v14  ;;  %7614 = vmatprep.mubr.f32.mxu0 %v9989_v28 }
  0xf3   : > { %8552 = vmatprep.subr.bf16.mxu0 %v8551_v7 }
  0xf5   : > { %7615 = vmatmul.mubr.f32.gmra.mrb[2].mxu0 %v9992_v29  ;;  %v1500_v29 = vand.u32 4294901760, %v1499_v23 }
  0xf6   : > { %7617 = vmatprep.mubr.f32.mxu0 %v10003_v34 }
  0xf7   : > { %v1501_v32 = vsub.f32 %v1499_v23, %v1500_v29 }
  0xf9   : > { %7618 = vmatmul.mubr.f32.gmra.mrb[4].mxu0 %v10024_v47 }
  0xfa   : > { %7620 = vmatprep.mubr.f32.mxu0 %v679_v61 }
  0xfd   : > { %7621 = vmatmul.mubr.f32.gmra.mrb[6].mxu0 %v689_v0 }
  0xfe   : > { %7627 = vmatprep.mubr.f32.mxu0 %v620_v27  ;;  %v1363_v27 = vand.u32 4294901760, %v1317_v25 }
 0x100   : > { %v1541_v51 = vsub.f32 %v1317_v25, %v1363_v27 }
 0x101   : > { %7628 = vmatmul.mubr.f32.vlgmr.msra.gmra.mrb[0].mxu0 %v630_v31 }
 0x102   : > { %8554 = vmatpush3.bf16.msra.mxu0 %v8551_v7  ;;  %7630 = vmatprep.mubr.f32.mxu0 %v640_v36  ;;  %v1502_v36 = vand.u32 4294901760, %v1501_v32  ;;  %v1542_v56 = vand.u32 4294901760, %v1541_v51 }
 0x103   : > { %8556 = vmatprep.subr.bf16.mxu0 %v9961_v14 }
 0x104   : > { %v1543_v59 = vsub.f32 %v1541_v51, %v1542_v56 }
 0x105   : > { %7631 = vmatmul.mubr.f32.gmra.mrb[2].mxu0 %v650_v37 }
 0x106   : > { %7633 = vmatprep.mubr.f32.mxu0 %v660_v43  ;;  %v1544_v61 = vand.u32 4294901760, %v1543_v59 }
 0x109   : > { %7634 = vmatmul.mubr.f32.gmra.mrb[4].mxu0 %v670_v54 }
 0x10a   : > { %7636 = vmatprep.mubr.f32.mxu0 %v680_v63 }
 0x10d   : > { %7637 = vmatmul.mubr.f32.gmra.mrb[6].mxu0 %v690_v3 }
 0x10e   : > { %7643 = vmatprep.mubr.f32.mxu0 %v9955_v9 }
 0x111   : > { %7644 = vmatmul.mubr.f32.vlgmr.msra.gmra.mrb[0].mxu0 %v9963_v15 }
 0x112   : > { %8558 = vmatpush3.bf16.msra.mxu0 %v9961_v14  ;;  %7646 = vmatprep.mubr.f32.mxu0 %v9973_v20  ;;  %v1314_v14 = vld [vmem:[%s11600_s4 + $0x18] sm:$0xff] }
 0x113   : > { %v1354_v16 = vand.u32 4294901760, %v1314_v14 }
 0x115   : > { %7647 = vmatmul.mubr.f32.gmra.mrb[2].mxu0 %v9975_v21  ;;  %v1520_v35 = vsub.f32 %v1314_v14, %v1354_v16 }
 0x116   : > { %7649 = vmatprep.mubr.f32.mxu0 %v9984_v26 }
 0x117   : > { %v1521_v39 = vand.u32 4294901760, %v1520_v35 }
 0x119   : > { %7650 = vmatmul.mubr.f32.gmra.mrb[4].mxu0 %v10010_v38  ;;  %v1522_v44 = vsub.f32 %v1520_v35, %v1521_v39 }
 0x11a   : > { %7652 = vmatprep.mubr.f32.mxu0 %v10032_v55 }
 0x11b   : > { %v1523_v48 = vand.u32 4294901760, %v1522_v44 }
 0x11d   : > { %7653 = vmatmul.mubr.f32.gmra.mrb[6].mxu0 %v688_v62 }
 0x11e   : > { %7659 = vmatprep.mubr.f32.mxu0 %v9955_v9  ;;  %v1312_v9 = vld [vmem:[%s11600_s4 + $0x8] sm:$0xff] }
 0x11f   : > { %v1348_v11 = vand.u32 4294901760, %v1312_v9 }
 0x121   : > { %7660 = vmatmul.mubr.f32.vlgmr.msra.gmra.mrb[0].mxu0 %v9963_v15  ;;  %v10090_v12 = vpack.c.bf16 %v1348_v11, %v1345_v10  ;;  %v1351_v15 = vand.u32 4294901760, %v1313_v13  ;;  %v1506_v24 = vsub.f32 %v1312_v9, %v1348_v11  ;;  %v10149_v9 = vsel %vm2208_vm1, %v2182_v8, 0  ;;  %v6987_v11 = vld [vmem:[%s11599_s3] ss:$0 sm:$0xff] }
 0x122   : > { %7662 = vmatprep.mubr.f32.mxu0 %v9973_v20  ;;  %v1357_v20 = vand.u32 4294901760, %v1315_v18  ;;  %v10152_v10 = vand.u32 4294901760, %v10149_v9 }
 0x123   : > { %8560 = vmatprep.subr.bf16.mxu1 %v10090_v12  ;;  %v10100_v17 = vpack.c.bf16 %v1354_v16, %v1351_v15  ;;  %v1507_v30 = vand.u32 4294901760, %v1506_v24  ;;  %v1513_v34 = vsub.f32 %v1313_v13, %v1351_v15  ;;  %v10133_v0 = vpack.c.bf16 %v1506_v24, %v1499_v23 }
 0x124   : > { %8562 = vmatpush3.bf16.msra.mxu1 %v10090_v12  ;;  %v1527_v42 = vsub.f32 %v1315_v18, %v1357_v20  ;;  %7839 = vmatprep.subr.mxu0 %v10152_v10 }
 0x125   : > { %7663 = vmatmul.mubr.f32.gmra.mrb[2].mxu0 %v9975_v21  ;;  %8564 = vmatprep.subr.bf16.mxu1 %v10100_v17  ;;  %v1360_v21 = vand.u32 4294901760, %v1316_v19  ;;  %v1508_v33 = vsub.f32 %v1506_v24, %v1507_v30  ;;  %v10135_v1 = vpack.c.bf16 %v1520_v35, %v1513_v34  ;;  %v10141_v4 = vpack.c.bf16 %v1507_v30, %v1500_v29 }
 0x126   : > { %7665 = vmatprep.mubr.f32.mxu0 %v9984_v26  ;;  %v1318_v26 = vld [vmem:[%s11600_s4 + $0x38] sm:$0xff]  ;;  %v1528_v46 = vand.u32 4294901760, %v1527_v42  ;;  %7840 = vmatpush3.msra.mxu0 %v10152_v10 }
 0x127   : > { %v10110_v22 = vpack.c.bf16 %v1360_v21, %v1357_v20  ;;  %v1366_v28 = vand.u32 4294901760, %v1318_v26  ;;  %v1509_v37 = vand.u32 4294901760, %v1508_v33  ;;  %v1534_v43 = vsub.f32 %v1316_v19, %v1360_v21 }
 0x128   : > { %8566 = vmatpush3.bf16.msra.mxu1 %v10100_v17  ;;  %v1529_v49 = vsub.f32 %v1527_v42, %v1528_v46 }
 0x129   : > { %7666 = vmatmul.mubr.f32.gmra.mrb[4].mxu0 %v10010_v38  ;;  %8568 = vmatprep.subr.bf16.mxu1 %v10110_v22  ;;  %v10120_v31 = vpack.c.bf16 %v1366_v28, %v1363_v27  ;;  %v1514_v38 = vand.u32 4294901760, %v1513_v34  ;;  %v10124_v40 = vpack.c.bf16 %v1509_v37, %v1502_v36  ;;  %v1535_v47 = vand.u32 4294901760, %v1534_v43 }
 0x12a   : > { %7668 = vmatprep.mubr.f32.mxu0 %v10032_v55  ;;  %v1548_v52 = vsub.f32 %v1318_v26, %v1366_v28  ;;  %v1530_v54 = vand.u32 4294901760, %v1529_v49  ;;  %v10137_v2 = vpack.c.bf16 %v1534_v43, %v1527_v42 }
 0x12b   : > { %v1515_v41 = vsub.f32 %v1513_v34, %v1514_v38  ;;  %v1536_v50 = vsub.f32 %v1534_v43, %v1535_v47  ;;  %v10143_v5 = vpack.c.bf16 %v1521_v39, %v1514_v38  ;;  %v10145_v6 = vpack.c.bf16 %v1535_v47, %v1528_v46 }
 0x12c   : > { %8570 = vmatpush3.bf16.msra.mxu1 %v10110_v22  ;;  %v1549_v57 = vand.u32 4294901760, %v1548_v52  ;;  %v10139_v3 = vpack.c.bf16 %v1548_v52, %v1541_v51 }
 0x12d   : > { %7669 = vmatmul.mubr.f32.gmra.mrb[6].mxu0 %v688_v62  ;;  %8572 = vmatprep.subr.bf16.mxu1 %v10120_v31  ;;  %v1516_v45 = vand.u32 4294901760, %v1515_v41  ;;  %v1537_v55 = vand.u32 4294901760, %v1536_v50 }
 0x12e   : > { %v1550_v60 = vsub.f32 %v1548_v52, %v1549_v57  ;;  %v10147_v7 = vpack.c.bf16 %v1549_v57, %v1542_v56 }
 0x12f   : > { %v10127_v53 = vpack.c.bf16 %v1523_v48, %v1516_v45  ;;  %v10129_v58 = vpack.c.bf16 %v1537_v55, %v1530_v54 }
 0x130   : > { %8574 = vmatpush3.bf16.msra.mxu1 %v10120_v31  ;;  %v1551_v62 = vand.u32 4294901760, %v1550_v60 }
 0x131   : > { %8576 = vmatprep.subr.bf16.mxu1 %v10124_v40 }
 0x132   : > { %v10131_v63 = vpack.c.bf16 %v1551_v62, %v1544_v61 }
 0x1f4   : > { %v7661_v13 = vpop.f32.mrb[0].mxu0 }
 0x1f5   : > { %v10159_v14 = vadd.f32 %v7661_v13, %v6987_v11  ;;  %v1265_v15 = vpop.f32.mrb[1].mxu0 }
 0x1f6   : > { %v10161_v16 = vadd.f32 %v6987_v11, %v1265_v15 }
 0x1f7   : > { %v1324_v18 = vsel %vm1319_vm2, %v10159_v14, 0 }
 0x1f8   : > { %v10165_v19 = vand.u32 4294901760, %v1324_v18  ;;  %v1321_v20 = vsel %vm1319_vm2, %v10161_v16, 0  ;;  %v7664_v21 = vpop.f32.mrb[2].mxu0 }
 0x1f9   : > { %v10169_v23 = vand.u32 4294901760, %v1321_v20  ;;  %v10171_v24 = vadd.f32 %v7664_v21, %v6987_v11  ;;  %v1277_v25 = vpop.f32.mrb[3].mxu0 }
 0x1fa   : > { %v10174_v26 = vsub.f32 %v1324_v18, %v10165_v19  ;;  %v10176_v27 = vadd.f32 %v6987_v11, %v1277_v25 }
 0x1fb   : > { %v10179_v28 = vsub.f32 %v1321_v20, %v10169_v23  ;;  %v1330_v29 = vsel %vm1319_vm2, %v10171_v24, 0 }
 0x1fc   : > { %v10183_v30 = vand.u32 4294901760, %v1330_v29  ;;  %v1327_v32 = vsel %vm1319_vm2, %v10176_v27, 0  ;;  %v7667_v33 = vpop.f32.mrb[4].mxu0  ;;  %v1429_v34 = vand.u32 4294901760, %v10174_v26 }
 0x1fd   : > { %v10188_v35 = vand.u32 4294901760, %v1327_v32  ;;  %v10190_v36 = vadd.f32 %v7667_v33, %v6987_v11  ;;  %v1289_v37 = vpop.f32.mrb[5].mxu0  ;;  %v1419_v38 = vand.u32 4294901760, %v10179_v28 }
 0x1fe   : > { %v10194_v39 = vsub.f32 %v1330_v29, %v10183_v30  ;;  %v10196_v41 = vadd.f32 %v6987_v11, %v1289_v37  ;;  %v1430_v42 = vsub.f32 %v10174_v26, %v1429_v34 }
 0x1ff   : > { %v10202_v43 = vsub.f32 %v1327_v32, %v10188_v35  ;;  %v1336_v44 = vsel %vm1319_vm2, %v10190_v36, 0  ;;  %v1420_v45 = vsub.f32 %v10179_v28, %v1419_v38 }
 0x200   : > { %v10209_v46 = vand.u32 4294901760, %v1336_v44  ;;  %v1333_v47 = vsel %vm1319_vm2, %v10196_v41, 0  ;;  %v7670_v48 = vpop.f32.mrb[6].mxu0  ;;  %v1449_v49 = vand.u32 4294901760, %v10194_v39  ;;  %v1431_v59 = vand.u32 4294901760, %v1430_v42 }
 0x201   : > { %v10214_v50 = vand.u32 4294901760, %v1333_v47  ;;  %v10216_v51 = vadd.f32 %v7670_v48, %v6987_v11  ;;  %v1301_v52 = vpop.f32.mrb[7].mxu0  ;;  %v1421_v54 = vand.u32 4294901760, %v1420_v45  ;;  %v1439_v55 = vand.u32 4294901760, %v10202_v43 }
 0x202   : > { %v10220_v56 = vsub.f32 %v1336_v44, %v10209_v46  ;;  %v10222_v57 = vadd.f32 %v6987_v11, %v1301_v52  ;;  %v1450_v60 = vsub.f32 %v10194_v39, %v1449_v49 }
 0x203   : > { %v10228_v61 = vsub.f32 %v1333_v47, %v10214_v50  ;;  %v1342_v62 = vsel %vm1319_vm2, %v10216_v51, 0  ;;  %7687 = vmatprep.mubr.f32.mxu1 %v1421_v54  ;;  %v1440_v8 = vsub.f32 %v10202_v43, %v1439_v55 }
 0x204   : > { %v10235_v13 = vand.u32 4294901760, %v1342_v62  ;;  %v1339_v11 = vsel %vm1319_vm2, %v10222_v57, 0  ;;  %7688 = vmatmul.mubr.f32.vlgmr.msra.gmra.mrb[0].mxu1 %v1431_v59  ;;  %v1469_v15 = vand.u32 4294901760, %v10220_v56  ;;  %v1451_v29 = vand.u32 4294901760, %v1450_v60 }
 0x205   : > { %v10240_v18 = vand.u32 4294901760, %v1339_v11  ;;  %8578 = vmatpush3.bf16.msra.mxu1 %v10124_v40  ;;  %v1441_v20 = vand.u32 4294901760, %v1440_v8  ;;  %v1459_v21 = vand.u32 4294901760, %v10228_v61 }
 0x206   : > { %v10245_v25 = vsub.f32 %v1342_v62, %v10235_v13  ;;  %8580 = vmatprep.subr.bf16.mxu1 %v10127_v53  ;;  %v1470_v32 = vsub.f32 %v10220_v56, %v1469_v15 }
 0x207   : > { %v10252_v33 = vsub.f32 %v1339_v11, %v10240_v18  ;;  %7690 = vmatprep.mubr.f32.mxu1 %v1441_v20  ;;  %v1460_v37 = vsub.f32 %v10228_v61, %v1459_v21 }
 0x208   : > { %7691 = vmatmul.mubr.f32.gmra.mrb[2].mxu1 %v1451_v29  ;;  %v1489_v42 = vand.u32 4294901760, %v10245_v25  ;;  %v1471_v47 = vand.u32 4294901760, %v1470_v32 }
 0x209   : > { %8582 = vmatpush3.bf16.msra.mxu1 %v10127_v53  ;;  %v1461_v44 = vand.u32 4294901760, %v1460_v37  ;;  %v1479_v45 = vand.u32 4294901760, %v10252_v33 }
 0x20a   : > { %8584 = vmatprep.subr.bf16.mxu1 %v10129_v58  ;;  %v1490_v48 = vsub.f32 %v10245_v25, %v1489_v42 }
 0x20b   : > { %7693 = vmatprep.mubr.f32.mxu1 %v1461_v44  ;;  %v1480_v52 = vsub.f32 %v10252_v33, %v1479_v45 }
 0x20c   : > { %7694 = vmatmul.mubr.f32.gmra.mrb[4].mxu1 %v1471_v47  ;;  %v1491_v59 = vand.u32 4294901760, %v1490_v48 }
 0x20d   : > { %8586 = vmatpush3.bf16.msra.mxu1 %v10129_v58  ;;  %v1481_v54 = vand.u32 4294901760, %v1480_v52 }
 0x20e   : > { %8588 = vmatprep.subr.bf16.mxu1 %v10131_v63 }
 0x20f   : > { %7696 = vmatprep.mubr.f32.mxu1 %v1481_v54 }
 0x210   : > { %7697 = vmatmul.mubr.f32.gmra.mrb[6].mxu1 %v1491_v59 }
 0x211   : > { %8590 = vmatpush3.bf16.msra.mxu1 %v10131_v63  ;;  %7715 = vmatprep.mubr.f32.mxu1 %v10169_v23 }
 0x212   : > { %8592 = vmatprep.subr.bf16.mxu1 %v10133_v0 }
 0x214   : > { %7716 = vmatmul.mubr.f32.vlgmr.msra.gmra.mrb[0].mxu1 %v10165_v19 }
 0x215   : > { %7718 = vmatprep.mubr.f32.mxu1 %v10188_v35  ;;  %8594 = vmatpush3.bf16.msra.mxu1 %v10133_v0 }
 0x216   : > { %8596 = vmatprep.subr.bf16.mxu1 %v10135_v1 }
 0x218   : > { %7719 = vmatmul.mubr.f32.gmra.mrb[2].mxu1 %v10183_v30 }
 0x219   : > { %7721 = vmatprep.mubr.f32.mxu1 %v10214_v50  ;;  %8598 = vmatpush3.bf16.msra.mxu1 %v10135_v1 }
 0x21a   : > { %8600 = vmatprep.subr.bf16.mxu1 %v10137_v2 }
 0x21c   : > { %7722 = vmatmul.mubr.f32.gmra.mrb[4].mxu1 %v10209_v46 }
 0x21d   : > { %7724 = vmatprep.mubr.f32.mxu1 %v10240_v18  ;;  %8602 = vmatpush3.bf16.msra.mxu1 %v10137_v2 }
 0x21e   : > { %8604 = vmatprep.subr.bf16.mxu1 %v10139_v3 }
 0x220   : > { %7725 = vmatmul.mubr.f32.gmra.mrb[6].mxu1 %v10235_v13 }
 0x221   : > { %8606 = vmatpush3.bf16.msra.mxu1 %v10139_v3  ;;  %7743 = vmatprep.mubr.f32.mxu1 %v10179_v28 }
 0x222   : > { %8608 = vmatprep.subr.bf16.mxu1 %v10090_v12 }
 0x224   : > { %7744 = vmatmul.mubr.f32.vlgmr.msra.gmra.mrb[0].mxu1 %v10174_v26 }
 0x225   : > { %7746 = vmatprep.mubr.f32.mxu1 %v10202_v43  ;;  %8610 = vmatpush3.bf16.msra.mxu1 %v10090_v12 }
 0x226   : > { %8612 = vmatprep.subr.bf16.mxu1 %v10100_v17 }
 0x228   : > { %7747 = vmatmul.mubr.f32.gmra.mrb[2].mxu1 %v10194_v39 }
 0x229   : > { %7749 = vmatprep.mubr.f32.mxu1 %v10228_v61  ;;  %8614 = vmatpush3.bf16.msra.mxu1 %v10100_v17 }
 0x22a   : > { %8616 = vmatprep.subr.bf16.mxu1 %v10110_v22 }
 0x22c   : > { %7750 = vmatmul.mubr.f32.gmra.mrb[4].mxu1 %v10220_v56 }
 0x22d   : > { %7752 = vmatprep.mubr.f32.mxu1 %v10252_v33  ;;  %8618 = vmatpush3.bf16.msra.mxu1 %v10110_v22 }
 0x22e   : > { %8620 = vmatprep.subr.bf16.mxu1 %v10120_v31 }
 0x230   : > { %7753 = vmatmul.mubr.f32.gmra.mrb[6].mxu1 %v10245_v25 }
 0x231   : > { %8622 = vmatpush3.bf16.msra.mxu1 %v10120_v31  ;;  %7771 = vmatprep.mubr.f32.mxu1 %v1419_v38 }
 0x232   : > { %8624 = vmatprep.subr.bf16.mxu1 %v10141_v4 }
 0x234   : > { %7772 = vmatmul.mubr.f32.vlgmr.msra.gmra.mrb[0].mxu1 %v1429_v34 }
 0x235   : > { %7774 = vmatprep.mubr.f32.mxu1 %v1439_v55  ;;  %8626 = vmatpush3.bf16.msra.mxu1 %v10141_v4 }
 0x236   : > { %8628 = vmatprep.subr.bf16.mxu1 %v10143_v5 }
 0x238   : > { %7775 = vmatmul.mubr.f32.gmra.mrb[2].mxu1 %v1449_v49 }
 0x239   : > { %7777 = vmatprep.mubr.f32.mxu1 %v1459_v21  ;;  %8630 = vmatpush3.bf16.msra.mxu1 %v10143_v5 }
 0x23a   : > { %8632 = vmatprep.subr.bf16.mxu1 %v10145_v6 }
 0x23c   : > { %7778 = vmatmul.mubr.f32.gmra.mrb[4].mxu1 %v1469_v15 }
 0x23d   : > { %7780 = vmatprep.mubr.f32.mxu1 %v1479_v45  ;;  %8634 = vmatpush3.bf16.msra.mxu1 %v10145_v6 }
 0x23e   : > { %8636 = vmatprep.subr.bf16.mxu1 %v10147_v7 }
 0x240   : > { %7781 = vmatmul.mubr.f32.gmra.mrb[6].mxu1 %v1489_v42 }
 0x241   : > { %8638 = vmatpush3.bf16.msra.mxu1 %v10147_v7  ;;  %7799 = vmatprep.mubr.f32.mxu1 %v10169_v23 }
 0x242   : > { %8640 = vmatprep.subr.bf16.mxu1 %v10090_v12 }
 0x244   : > { %7800 = vmatmul.mubr.f32.vlgmr.msra.gmra.mrb[0].mxu1 %v10165_v19 }
 0x245   : > { %7802 = vmatprep.mubr.f32.mxu1 %v10188_v35  ;;  %8642 = vmatpush3.bf16.msra.mxu1 %v10090_v12 }
 0x246   : > { %8644 = vmatprep.subr.bf16.mxu1 %v10100_v17 }
 0x248   : > { %7803 = vmatmul.mubr.f32.gmra.mrb[2].mxu1 %v10183_v30 }
 0x249   : > { %7805 = vmatprep.mubr.f32.mxu1 %v10214_v50  ;;  %8646 = vmatpush3.bf16.msra.mxu1 %v10100_v17 }
 0x24a   : > { %8648 = vmatprep.subr.bf16.mxu1 %v10110_v22 }
 0x24c   : > { %7806 = vmatmul.mubr.f32.gmra.mrb[4].mxu1 %v10209_v46 }
 0x24d   : > { %7808 = vmatprep.mubr.f32.mxu1 %v10240_v18  ;;  %8650 = vmatpush3.bf16.msra.mxu1 %v10110_v22 }
 0x24e   : > { %8652 = vmatprep.subr.bf16.mxu1 %v10120_v31 }
 0x250   : > { %7809 = vmatmul.mubr.f32.gmra.mrb[6].mxu1 %v10235_v13 }
 0x251   : > { %8654 = vmatpush3.bf16.msra.mxu1 %v10120_v31  ;;  %7827 = vmatprep.mubr.f32.mxu1 %v10169_v23 }
 0x252   : > { %8656 = vmatprep.subr.bf16.mxu1 %v10090_v12 }
 0x254   : > { %7828 = vmatmul.mubr.f32.vlgmr.msra.gmra.mrb[0].mxu1 %v10165_v19  ;;  %v10353_v19 = vsub.f32 %v10149_v9, %v10152_v10 }
 0x255   : > { %7830 = vmatprep.mubr.f32.mxu1 %v10188_v35  ;;  %8658 = vmatpush3.bf16.msra.mxu1 %v10090_v12 }
 0x256   : > { %8660 = vmatprep.subr.bf16.mxu1 %v10100_v17  ;;  %v10356_v23 = vand.u32 4294901760, %v10353_v19 }
 0x258   : > { %7831 = vmatmul.mubr.f32.gmra.mrb[2].mxu1 %v10183_v30  ;;  %v2362_v26 = vsub.f32 %v10353_v19, %v10356_v23 }
 0x259   : > { %7833 = vmatprep.mubr.f32.mxu1 %v10214_v50  ;;  %8662 = vmatpush3.bf16.msra.mxu1 %v10100_v17 }
 0x25a   : > { %8664 = vmatprep.subr.bf16.mxu1 %v10110_v22  ;;  %v10360_v28 = vand.u32 4294901760, %v2362_v26 }
 0x25c   : > { %7834 = vmatmul.mubr.f32.gmra.mrb[4].mxu1 %v10209_v46  ;;  %7853 = vmatprep.subr.mxu0 %v10360_v28 }
 0x25d   : > { %7836 = vmatprep.mubr.f32.mxu1 %v10240_v18  ;;  %8666 = vmatpush3.bf16.msra.mxu1 %v10110_v22 }
 0x25e   : > { %8668 = vmatprep.subr.bf16.mxu1 %v10120_v31 }
 0x260   : > { %7837 = vmatmul.mubr.f32.gmra.mrb[6].mxu1 %v10235_v13 }
 0x261   : > { %8670 = vmatpush3.bf16.msra.mxu1 %v10120_v31 }
 0x262   : > { %8672 = vmatprep.subr.bf16.mxu1 %v10124_v40 }
 0x327   : > { %v7829_v30 = vpop.f32.mrb[0].mxu1 }
 0x328   : > { %v2188_v34 = vsel %vm2183_vm3, %v7829_v30, 0  ;;  %v2136_v35 = vpop.f32.mrb[1].mxu1 }
 0x329   : > { %v10364_v38 = vand.u32 4294901760, %v2188_v34  ;;  %v2185_v9 = vsel %vm2183_vm3, %v2136_v35, 0 }
 0x32a   : > { %v10367_v39 = vand.u32 4294901760, %v2185_v9 }
 0x32b   : > { %v10370_v43 = vsub.f32 %v2188_v34, %v10364_v38  ;;  %v7832_v46 = vpop.f32.mrb[2].mxu1 }
 0x32c   : > { %v10373_v49 = vsub.f32 %v2185_v9, %v10367_v39  ;;  %v2194_v50 = vsel %vm2183_vm3, %v7832_v46, 0  ;;  %v2148_v55 = vpop.f32.mrb[3].mxu1 }
 0x32d   : > { %v2290_v56 = vand.u32 4294901760, %v10370_v43  ;;  %v10377_v60 = vand.u32 4294901760, %v2194_v50  ;;  %v2191_v61 = vsel %vm2183_vm3, %v2148_v55, 0 }
 0x32e   : > { %v2280_v62 = vand.u32 4294901760, %v10373_v49  ;;  %v10381_v8 = vand.u32 4294901760, %v2191_v61 }
 0x32f   : > { %v2291_v13 = vsub.f32 %v10370_v43, %v2290_v56  ;;  %v10387_v11 = vsub.f32 %v2194_v50, %v10377_v60  ;;  %v7835_v15 = vpop.f32.mrb[4].mxu1 }
 0x330   : > { %v10390_v18 = vsub.f32 %v2191_v61, %v10381_v8  ;;  %v2200_v20 = vsel %vm2183_vm3, %v7835_v15, 0  ;;  %v2160_v21 = vpop.f32.mrb[5].mxu1  ;;  %v2281_v25 = vsub.f32 %v10373_v49, %v2280_v62 }
 0x331   : > { %v2310_v29 = vand.u32 4294901760, %v10387_v11  ;;  %v10397_v32 = vand.u32 4294901760, %v2200_v20  ;;  %v2197_v33 = vsel %vm2183_vm3, %v2160_v21, 0  ;;  %v2292_v45 = vand.u32 4294901760, %v2291_v13 }
 0x332   : > { %v2300_v37 = vand.u32 4294901760, %v10390_v18  ;;  %v10401_v42 = vand.u32 4294901760, %v2197_v33  ;;  %v2282_v44 = vand.u32 4294901760, %v2281_v25 }
 0x333   : > { %v10404_v47 = vsub.f32 %v2200_v20, %v10397_v32  ;;  %v7838_v48 = vpop.f32.mrb[6].mxu1  ;;  %v2311_v52 = vsub.f32 %v10387_v11, %v2310_v29 }
 0x334   : > { %v2319_v54 = vsub.f32 %v2197_v33, %v10401_v42  ;;  %v2206_v59 = vsel %vm2183_vm3, %v7838_v48, 0  ;;  %v2172_v26 = vpop.f32.mrb[7].mxu1  ;;  %7841 = vmatprep.mubr.f32.mxu0 %v2282_v44  ;;  %v2301_v30 = vsub.f32 %v10390_v18, %v2300_v37 }
 0x335   : > { %v2330_v34 = vand.u32 4294901760, %v10404_v47  ;;  %v10413_v35 = vand.u32 4294901760, %v2206_v59  ;;  %v2203_v9 = vsel %vm2183_vm3, %v2172_v26, 0  ;;  %7842 = vmatmul.mubr.f32.vlgmr.msra.gmra.mrb[8].mxu0 %v2292_v45  ;;  %v2312_v13 = vand.u32 4294901760, %v2311_v52 }
 0x336   : > { %v2320_v46 = vand.u32 4294901760, %v2319_v54  ;;  %v10416_v50 = vand.u32 4294901760, %v2203_v9  ;;  %7854 = vmatpush3.msra.mxu0 %v10360_v28  ;;  %v2302_v55 = vand.u32 4294901760, %v2301_v30 }
 0x337   : > { %v2349_v61 = vsub.f32 %v2206_v59, %v10413_v35  ;;  %v2331_v15 = vsub.f32 %v10404_v47, %v2330_v34  ;;  %7867 = vmatprep.subr.mxu0 %v10353_v19 }
 0x338   : > { %v2339_v20 = vsub.f32 %v2203_v9, %v10416_v50  ;;  %7844 = vmatprep.mubr.f32.mxu0 %v2302_v55  ;;  %v2321_v21 = vsub.f32 %v2319_v54, %v2320_v46 }
 0x339   : > { %v2350_v25 = vand.u32 4294901760, %v2349_v61  ;;  %7845 = vmatmul.mubr.f32.gmra.mrb[10].mxu0 %v2312_v13  ;;  %v2332_v45 = vand.u32 4294901760, %v2331_v15 }
 0x33a   : > { %v2340_v33 = vand.u32 4294901760, %v2339_v20  ;;  %v2322_v44 = vand.u32 4294901760, %v2321_v21 }
 0x33b   : > { %v2351_v48 = vsub.f32 %v2349_v61, %v2350_v25 }
 0x33c   : > { %7847 = vmatprep.mubr.f32.mxu0 %v2322_v44  ;;  %v2341_v26 = vsub.f32 %v2339_v20, %v2340_v33 }
 0x33d   : > { %7848 = vmatmul.mubr.f32.gmra.mrb[12].mxu0 %v2332_v45  ;;  %v2352_v59 = vand.u32 4294901760, %v2351_v48 }
 0x33e   : > { %v2342_v30 = vand.u32 4294901760, %v2341_v26 }
 0x340   : > { %7850 = vmatprep.mubr.f32.mxu0 %v2342_v30 }
 0x341   : > { %7851 = vmatmul.mubr.f32.gmra.mrb[14].mxu0 %v2352_v59 }
 0x342   : > { %7855 = vmatprep.mubr.f32.mxu0 %v10367_v39 }
 0x345   : > { %7856 = vmatmul.mubr.f32.vlgmr.msra.gmra.mrb[8].mxu0 %v10364_v38 }
 0x346   : > { %7858 = vmatprep.mubr.f32.mxu0 %v10381_v8  ;;  %7868 = vmatpush3.msra.mxu0 %v10353_v19 }
 0x347   : > { %7881 = vmatprep.subr.mxu0 %v10152_v10 }
 0x349   : > { %7859 = vmatmul.mubr.f32.gmra.mrb[10].mxu0 %v10377_v60 }
 0x34a   : > { %7861 = vmatprep.mubr.f32.mxu0 %v10401_v42 }
 0x34d   : > { %7862 = vmatmul.mubr.f32.gmra.mrb[12].mxu0 %v10397_v32 }
 0x34e   : > { %7864 = vmatprep.mubr.f32.mxu0 %v10416_v50 }
 0x351   : > { %7865 = vmatmul.mubr.f32.gmra.mrb[14].mxu0 %v10413_v35 }
 0x352   : > { %7869 = vmatprep.mubr.f32.mxu0 %v10373_v49 }
 0x355   : > { %7870 = vmatmul.mubr.f32.vlgmr.msra.gmra.mrb[8].mxu0 %v10370_v43 }
 0x356   : > { %7872 = vmatprep.mubr.f32.mxu0 %v10390_v18  ;;  %7882 = vmatpush3.msra.mxu0 %v10152_v10 }
 0x357   : > { %7895 = vmatprep.subr.mxu0 %v10356_v23 }
 0x359   : > { %7873 = vmatmul.mubr.f32.gmra.mrb[10].mxu0 %v10387_v11 }
 0x35a   : > { %7875 = vmatprep.mubr.f32.mxu0 %v2319_v54 }
 0x35d   : > { %7876 = vmatmul.mubr.f32.gmra.mrb[12].mxu0 %v10404_v47 }
 0x35e   : > { %7878 = vmatprep.mubr.f32.mxu0 %v2339_v20 }
 0x361   : > { %7879 = vmatmul.mubr.f32.gmra.mrb[14].mxu0 %v2349_v61 }
 0x362   : > { %7883 = vmatprep.mubr.f32.mxu0 %v2280_v62 }
 0x365   : > { %7884 = vmatmul.mubr.f32.vlgmr.msra.gmra.mrb[8].mxu0 %v2290_v56 }
 0x366   : > { %7886 = vmatprep.mubr.f32.mxu0 %v2300_v37  ;;  %7896 = vmatpush3.msra.mxu0 %v10356_v23 }
 0x367   : > { %7909 = vmatprep.subr.mxu0 %v10152_v10 }
 0x369   : > { %7887 = vmatmul.mubr.f32.gmra.mrb[10].mxu0 %v2310_v29 }
 0x36a   : > { %7889 = vmatprep.mubr.f32.mxu0 %v2320_v46 }
 0x36d   : > { %7890 = vmatmul.mubr.f32.gmra.mrb[12].mxu0 %v2330_v34 }
 0x36e   : > { %7892 = vmatprep.mubr.f32.mxu0 %v2340_v33 }
 0x371   : > { %7893 = vmatmul.mubr.f32.gmra.mrb[14].mxu0 %v2350_v25 }
 0x372   : > { %7897 = vmatprep.mubr.f32.mxu0 %v10367_v39 }
 0x375   : > { %7898 = vmatmul.mubr.f32.vlgmr.msra.gmra.mrb[8].mxu0 %v10364_v38 }
 0x376   : > { %7900 = vmatprep.mubr.f32.mxu0 %v10381_v8  ;;  %7910 = vmatpush3.msra.mxu0 %v10152_v10 }
 0x377   : > { %8091 = vmatprep.subr.mxu0 %v10152_v10 }
 0x379   : > { %7901 = vmatmul.mubr.f32.gmra.mrb[10].mxu0 %v10377_v60 }
 0x37a   : > { %7903 = vmatprep.mubr.f32.mxu0 %v10401_v42 }
 0x37d   : > { %7904 = vmatmul.mubr.f32.gmra.mrb[12].mxu0 %v10397_v32 }
 0x37e   : > { %7906 = vmatprep.mubr.f32.mxu0 %v10416_v50 }
 0x381   : > { %7907 = vmatmul.mubr.f32.gmra.mrb[14].mxu0 %v10413_v35 }
 0x382   : > { %7911 = vmatprep.mubr.f32.mxu0 %v10367_v39 }
 0x385   : > { %7912 = vmatmul.mubr.f32.vlgmr.msra.gmra.mrb[8].mxu0 %v10364_v38 }
 0x386   : > { %7914 = vmatprep.mubr.f32.mxu0 %v10381_v8  ;;  %8092 = vmatpush3.msra.mxu0 %v10152_v10 }
 0x387   : > { %8105 = vmatprep.subr.mxu0 %v10360_v28 }
 0x389   : > { %7915 = vmatmul.mubr.f32.gmra.mrb[10].mxu0 %v10377_v60 }
 0x38a   : > { %7917 = vmatprep.mubr.f32.mxu0 %v10401_v42 }
 0x38d   : > { %7918 = vmatmul.mubr.f32.gmra.mrb[12].mxu0 %v10397_v32 }
 0x38e   : > { %7920 = vmatprep.mubr.f32.mxu0 %v10416_v50 }
 0x391   : > { %7921 = vmatmul.mubr.f32.gmra.mrb[14].mxu0 %v10413_v35 }
 0x458   : > { %v7913_v43 = vpop.f32.mrb[8].mxu0 }
 0x459   : > { %v10469_v39 = vsub.f32 %v10159_v14, %v7913_v43  ;;  %v2913_v38 = vpop.f32.mrb[9].mxu0 }
 0x45a   : > { %v10472_v49 = vsub.f32 %v10161_v16, %v2913_v38 }
 0x45b   : > { %v2968_v56 = vmul.f32 %v10469_v39, %v10469_v39 }
 0x45c   : > { %v2967_v60 = vmul.f32 %v10472_v49, %v10472_v49  ;;  %v7916_v62 = vpop.f32.mrb[10].mxu0 }
 0x45d   : > { %v2979_v8 = vsel %vm1319_vm2, %v2968_v56, 0  ;;  %v10480_v11 = vsub.f32 %v10171_v24, %v7916_v62  ;;  %v2925_v18 = vpop.f32.mrb[11].mxu0 }
 0x45e   : > { %v10482_v29 = vand.u32 4294901760, %v2979_v8  ;;  %v2976_v14 = vsel %vm1319_vm2, %v2967_v60, 0  ;;  %v10486_v16 = vsub.f32 %v10176_v27, %v2925_v18 }
 0x45f   : > { %v10488_v32 = vand.u32 4294901760, %v2976_v14  ;;  %v2970_v37 = vmul.f32 %v10480_v11, %v10480_v11 }
 0x460   : > { %v10493_v42 = vsub.f32 %v2979_v8, %v10482_v29  ;;  %v2969_v24 = vmul.f32 %v10486_v16, %v10486_v16  ;;  %v7919_v47 = vpop.f32.mrb[12].mxu0 }
 0x461   : > { %v10498_v52 = vsub.f32 %v2976_v14, %v10488_v32  ;;  %v2985_v54 = vsel %vm1319_vm2, %v2970_v37, 0  ;;  %v10502_v27 = vsub.f32 %v10190_v36, %v7919_v47  ;;  %v2937_v34 = vpop.f32.mrb[13].mxu0 }
 0x462   : > { %v3084_v35 = vand.u32 4294901760, %v10493_v42  ;;  %v10505_v9 = vand.u32 4294901760, %v2985_v54  ;;  %v2982_v46 = vsel %vm1319_vm2, %v2969_v24, 0  ;;  %v10509_v50 = vsub.f32 %v10196_v41, %v2937_v34 }
 0x463   : > { %v10511_v55 = vand.u32 4294901760, %v2982_v46  ;;  %v2972_v61 = vmul.f32 %v10502_v27, %v10502_v27  ;;  %v3074_v13 = vand.u32 4294901760, %v10498_v52 }
 0x464   : > { %v3085_v36 = vsub.f32 %v10493_v42, %v3084_v35  ;;  %v10520_v15 = vsub.f32 %v2985_v54, %v10505_v9  ;;  %v2971_v20 = vmul.f32 %v10509_v50, %v10509_v50  ;;  %v7922_v21 = vpop.f32.mrb[14].mxu0 }
 0x465   : > { %v10525_v41 = vsub.f32 %v2982_v46, %v10511_v55  ;;  %v2991_v25 = vsel %vm1319_vm2, %v2972_v61, 0  ;;  %v10529_v33 = vsub.f32 %v10216_v51, %v7922_v21  ;;  %v2949_v44 = vpop.f32.mrb[15].mxu0  ;;  %v3075_v45 = vsub.f32 %v10498_v52, %v3074_v13 }
 0x466   : > { %v10534_v48 = vand.u32 4294901760, %v2991_v25  ;;  %v2988_v26 = vsel %vm1319_vm2, %v2971_v20, 0  ;;  %v10538_v30 = vsub.f32 %v10222_v57, %v2949_v44  ;;  %v3086_v56 = vand.u32 4294901760, %v3085_v36 }
 0x467   : > { %v10540_v59 = vand.u32 4294901760, %v2988_v26  ;;  %v2974_v43 = vmul.f32 %v10529_v33, %v10529_v33  ;;  %v3076_v38 = vand.u32 4294901760, %v3075_v45  ;;  %v3094_v51 = vand.u32 4294901760, %v10525_v41 }
 0x468   : > { %v10546_v60 = vsub.f32 %v2991_v25, %v10534_v48  ;;  %v2973_v62 = vmul.f32 %v10538_v30, %v10538_v30  ;;  %v3104_v8 = vand.u32 4294901760, %v10520_v15 }
 0x469   : > { %v10552_v57 = vsub.f32 %v2988_v26, %v10540_v59  ;;  %v2997_v18 = vsel %vm1319_vm2, %v2974_v43, 0  ;;  %7939 = vmatprep.mubr.f32.mxu1 %v3076_v38  ;;  %v3095_v14 = vsub.f32 %v10525_v41, %v3094_v51 }
 0x46a   : > { %v10558_v37 = vand.u32 4294901760, %v2997_v18  ;;  %v2994_v24 = vsel %vm1319_vm2, %v2973_v62, 0  ;;  %7940 = vmatmul.mubr.f32.vlgmr.msra.gmra.mrb[8].mxu1 %v3086_v56  ;;  %v3105_v47 = vsub.f32 %v10520_v15, %v3104_v8  ;;  %v3124_v54 = vand.u32 4294901760, %v10546_v60 }
 0x46b   : > { %v10565_v34 = vand.u32 4294901760, %v2994_v24  ;;  %8674 = vmatpush3.bf16.msra.mxu1 %v10124_v40  ;;  %v3096_v46 = vand.u32 4294901760, %v3095_v14  ;;  %v3114_v61 = vand.u32 4294901760, %v10552_v57 }
 0x46c   : > { %v10570_v36 = vsub.f32 %v2997_v18, %v10558_v37  ;;  %v3106_v20 = vand.u32 4294901760, %v3105_v47  ;;  %8676 = vmatprep.subr.bf16.mxu1 %v10127_v53  ;;  %v3125_v21 = vsub.f32 %v10546_v60, %v3124_v54 }
 0x46d   : > { %v10577_v25 = vsub.f32 %v2994_v24, %v10565_v34  ;;  %7942 = vmatprep.mubr.f32.mxu1 %v3096_v46  ;;  %v3115_v40 = vsub.f32 %v10552_v57, %v3114_v61 }
 0x46e   : > { %7943 = vmatmul.mubr.f32.gmra.mrb[10].mxu1 %v3106_v20  ;;  %v3144_v44 = vand.u32 4294901760, %v10570_v36  ;;  %v3126_v43 = vand.u32 4294901760, %v3125_v21 }
 0x46f   : > { %8678 = vmatpush3.bf16.msra.mxu1 %v10127_v53  ;;  %v3116_v45 = vand.u32 4294901760, %v3115_v40  ;;  %v3134_v26 = vand.u32 4294901760, %v10577_v25 }
 0x470   : > { %8680 = vmatprep.subr.bf16.mxu1 %v10129_v58  ;;  %v3145_v38 = vsub.f32 %v10570_v36, %v3144_v44 }
 0x471   : > { %7945 = vmatprep.mubr.f32.mxu1 %v3116_v45  ;;  %v3135_v56 = vsub.f32 %v10577_v25, %v3134_v26 }
 0x472   : > { %7946 = vmatmul.mubr.f32.gmra.mrb[12].mxu1 %v3126_v43  ;;  %v3146_v18 = vand.u32 4294901760, %v3145_v38 }
 0x473   : > { %8682 = vmatpush3.bf16.msra.mxu1 %v10129_v58  ;;  %v3136_v62 = vand.u32 4294901760, %v3135_v56 }
 0x474   : > { %8684 = vmatprep.subr.bf16.mxu1 %v10131_v63 }
 0x475   : > { %7948 = vmatprep.mubr.f32.mxu1 %v3136_v62 }
 0x476   : > { %7949 = vmatmul.mubr.f32.gmra.mrb[14].mxu1 %v3146_v18 }
 0x477   : > { %8686 = vmatpush3.bf16.msra.mxu1 %v10131_v63  ;;  %7967 = vmatprep.mubr.f32.mxu1 %v10488_v32 }
 0x478   : > { %8688 = vmatprep.subr.bf16.mxu1 %v10133_v0 }
 0x47a   : > { %7968 = vmatmul.mubr.f32.vlgmr.msra.gmra.mrb[8].mxu1 %v10482_v29 }
 0x47b   : > { %7970 = vmatprep.mubr.f32.mxu1 %v10511_v55  ;;  %8690 = vmatpush3.bf16.msra.mxu1 %v10133_v0 }
 0x47c   : > { %8692 = vmatprep.subr.bf16.mxu1 %v10135_v1 }
 0x47e   : > { %7971 = vmatmul.mubr.f32.gmra.mrb[10].mxu1 %v10505_v9 }
 0x47f   : > { %7973 = vmatprep.mubr.f32.mxu1 %v10540_v59  ;;  %8694 = vmatpush3.bf16.msra.mxu1 %v10135_v1 }
 0x480   : > { %8696 = vmatprep.subr.bf16.mxu1 %v10137_v2 }
 0x482   : > { %7974 = vmatmul.mubr.f32.gmra.mrb[12].mxu1 %v10534_v48 }
 0x483   : > { %7976 = vmatprep.mubr.f32.mxu1 %v10565_v34  ;;  %8698 = vmatpush3.bf16.msra.mxu1 %v10137_v2 }
 0x484   : > { %8700 = vmatprep.subr.bf16.mxu1 %v10139_v3 }
 0x486   : > { %7977 = vmatmul.mubr.f32.gmra.mrb[14].mxu1 %v10558_v37 }
 0x487   : > { %8702 = vmatpush3.bf16.msra.mxu1 %v10139_v3  ;;  %7995 = vmatprep.mubr.f32.mxu1 %v10498_v52 }
 0x488   : > { %8704 = vmatprep.subr.bf16.mxu1 %v10090_v12 }
 0x48a   : > { %7996 = vmatmul.mubr.f32.vlgmr.msra.gmra.mrb[8].mxu1 %v10493_v42 }
 0x48b   : > { %7998 = vmatprep.mubr.f32.mxu1 %v10525_v41  ;;  %8706 = vmatpush3.bf16.msra.mxu1 %v10090_v12 }
 0x48c   : > { %8708 = vmatprep.subr.bf16.mxu1 %v10100_v17 }
 0x48e   : > { %7999 = vmatmul.mubr.f32.gmra.mrb[10].mxu1 %v10520_v15 }
 0x48f   : > { %8001 = vmatprep.mubr.f32.mxu1 %v10552_v57  ;;  %8710 = vmatpush3.bf16.msra.mxu1 %v10100_v17 }
 0x490   : > { %8712 = vmatprep.subr.bf16.mxu1 %v10110_v22 }
 0x492   : > { %8002 = vmatmul.mubr.f32.gmra.mrb[12].mxu1 %v10546_v60 }
 0x493   : > { %8004 = vmatprep.mubr.f32.mxu1 %v10577_v25  ;;  %8714 = vmatpush3.bf16.msra.mxu1 %v10110_v22 }
 0x494   : > { %8716 = vmatprep.subr.bf16.mxu1 %v10120_v31 }
 0x496   : > { %8005 = vmatmul.mubr.f32.gmra.mrb[14].mxu1 %v10570_v36 }
 0x497   : > { %8718 = vmatpush3.bf16.msra.mxu1 %v10120_v31  ;;  %8023 = vmatprep.mubr.f32.mxu1 %v3074_v13 }
 0x498   : > { %8720 = vmatprep.subr.bf16.mxu1 %v10141_v4 }
 0x49a   : > { %8024 = vmatmul.mubr.f32.vlgmr.msra.gmra.mrb[8].mxu1 %v3084_v35 }
 0x49b   : > { %8026 = vmatprep.mubr.f32.mxu1 %v3094_v51  ;;  %8722 = vmatpush3.bf16.msra.mxu1 %v10141_v4 }
 0x49c   : > { %8724 = vmatprep.subr.bf16.mxu1 %v10143_v5 }
 0x49e   : > { %8027 = vmatmul.mubr.f32.gmra.mrb[10].mxu1 %v3104_v8 }
 0x49f   : > { %8029 = vmatprep.mubr.f32.mxu1 %v3114_v61  ;;  %8726 = vmatpush3.bf16.msra.mxu1 %v10143_v5 }
 0x4a0   : > { %8728 = vmatprep.subr.bf16.mxu1 %v10145_v6 }
 0x4a2   : > { %8030 = vmatmul.mubr.f32.gmra.mrb[12].mxu1 %v3124_v54 }
 0x4a3   : > { %8032 = vmatprep.mubr.f32.mxu1 %v3134_v26  ;;  %8730 = vmatpush3.bf16.msra.mxu1 %v10145_v6 }
 0x4a4   : > { %8732 = vmatprep.subr.bf16.mxu1 %v10147_v7 }
 0x4a6   : > { %8033 = vmatmul.mubr.f32.gmra.mrb[14].mxu1 %v3144_v44 }
 0x4a7   : > { %8734 = vmatpush3.bf16.msra.mxu1 %v10147_v7  ;;  %8051 = vmatprep.mubr.f32.mxu1 %v10488_v32 }
 0x4a8   : > { %8736 = vmatprep.subr.bf16.mxu1 %v10090_v12 }
 0x4aa   : > { %8052 = vmatmul.mubr.f32.vlgmr.msra.gmra.mrb[8].mxu1 %v10482_v29 }
 0x4ab   : > { %8054 = vmatprep.mubr.f32.mxu1 %v10511_v55  ;;  %8738 = vmatpush3.bf16.msra.mxu1 %v10090_v12 }
 0x4ac   : > { %8740 = vmatprep.subr.bf16.mxu1 %v10100_v17 }
 0x4ae   : > { %8055 = vmatmul.mubr.f32.gmra.mrb[10].mxu1 %v10505_v9 }
 0x4af   : > { %8057 = vmatprep.mubr.f32.mxu1 %v10540_v59  ;;  %8742 = vmatpush3.bf16.msra.mxu1 %v10100_v17 }
 0x4b0   : > { %8744 = vmatprep.subr.bf16.mxu1 %v10110_v22 }
 0x4b2   : > { %8058 = vmatmul.mubr.f32.gmra.mrb[12].mxu1 %v10534_v48 }
 0x4b3   : > { %8060 = vmatprep.mubr.f32.mxu1 %v10565_v34  ;;  %8746 = vmatpush3.bf16.msra.mxu1 %v10110_v22 }
 0x4b4   : > { %8748 = vmatprep.subr.bf16.mxu1 %v10120_v31 }
 0x4b6   : > { %8061 = vmatmul.mubr.f32.gmra.mrb[14].mxu1 %v10558_v37 }
 0x4b7   : > { %8750 = vmatpush3.bf16.msra.mxu1 %v10120_v31  ;;  %8079 = vmatprep.mubr.f32.mxu1 %v10488_v32 }
 0x4ba   : > { %8080 = vmatmul.mubr.f32.vlgmr.msra.gmra.mrb[8].mxu1 %v10482_v29 }
 0x4bb   : > { %8082 = vmatprep.mubr.f32.mxu1 %v10511_v55 }
 0x4be   : > { %8083 = vmatmul.mubr.f32.gmra.mrb[10].mxu1 %v10505_v9 }
 0x4bf   : > { %8085 = vmatprep.mubr.f32.mxu1 %v10540_v59 }
 0x4c2   : > { %8086 = vmatmul.mubr.f32.gmra.mrb[12].mxu1 %v10534_v48 }
 0x4c3   : > { %8088 = vmatprep.mubr.f32.mxu1 %v10565_v34 }
 0x4c6   : > { %8089 = vmatmul.mubr.f32.gmra.mrb[14].mxu1 %v10558_v37 }
 0x58d   : > { %v8081_v12 = vpop.f32.mrb[8].mxu1 }
 0x58e   : > { %v3841_v17 = vsel %vm2183_vm3, %v8081_v12, 0  ;;  %v3791_v22 = vpop.f32.mrb[9].mxu1 }
 0x58f   : > { %v10668_v31 = vand.u32 4294901760, %v3841_v17  ;;  %v3838_v53 = vsel %vm2183_vm3, %v3791_v22, 0 }
 0x590   : > { %v10671_v58 = vand.u32 4294901760, %v3838_v53 }
 0x591   : > { %v10674_v63 = vsub.f32 %v3841_v17, %v10668_v31  ;;  %v8084_v0 = vpop.f32.mrb[10].mxu1 }
 0x592   : > { %v10677_v1 = vsub.f32 %v3838_v53, %v10671_v58  ;;  %v3847_v2 = vsel %vm2183_vm3, %v8084_v0, 0  ;;  %v3803_v3 = vpop.f32.mrb[11].mxu1 }
 0x593   : > { %v3939_v4 = vand.u32 4294901760, %v10674_v63  ;;  %v10681_v5 = vand.u32 4294901760, %v3847_v2  ;;  %v3844_v6 = vsel %vm2183_vm3, %v3803_v3, 0  ;;  %v4658_v3 = vld [vmem:[%s11604_s8 + $0x20] sm:$0xff] }
 0x594   : > { %v3929_v7 = vand.u32 4294901760, %v10677_v1  ;;  %v10685_v29 = vand.u32 4294901760, %v3844_v6 }
 0x595   : > { %v3940_v32 = vsub.f32 %v10674_v63, %v3939_v4  ;;  %v10691_v42 = vsub.f32 %v3847_v2, %v10681_v5  ;;  %v8087_v52 = vpop.f32.mrb[12].mxu1 }
 0x596   : > { %v10694_v35 = vsub.f32 %v3844_v6, %v10685_v29  ;;  %v3853_v9 = vsel %vm2183_vm3, %v8087_v52, 0  ;;  %v3815_v55 = vpop.f32.mrb[13].mxu1  ;;  %v3930_v13 = vsub.f32 %v10677_v1, %v3929_v7  ;;  %v4661_v52 = vld [vmem:[%s11604_s8 + $0x38] sm:$0xff] }
 0x597   : > { %v3959_v15 = vand.u32 4294901760, %v10691_v42  ;;  %v10701_v41 = vand.u32 4294901760, %v3853_v9  ;;  %v3850_v48 = vsel %vm2183_vm3, %v3815_v55, 0  ;;  %v3941_v8 = vand.u32 4294901760, %v3940_v32 }
 0x598   : > { %v3949_v59 = vand.u32 4294901760, %v10694_v35  ;;  %v10705_v51 = vand.u32 4294901760, %v3850_v48  ;;  %v3931_v60 = vand.u32 4294901760, %v3930_v13 }
 0x599   : > { %v10708_v57 = vsub.f32 %v3853_v9, %v10701_v41  ;;  %v8090_v14 = vpop.f32.mrb[14].mxu1  ;;  %v3960_v37 = vsub.f32 %v10691_v42, %v3959_v15  ;;  %v4708_v9 = vand.u32 4294901760, %v4661_v52 }
 0x59a   : > { %v3968_v24 = vsub.f32 %v3850_v48, %v10705_v51  ;;  %v3859_v47 = vsel %vm2183_vm3, %v8090_v14, 0  ;;  %v3827_v54 = vpop.f32.mrb[15].mxu1  ;;  %8093 = vmatprep.mubr.f32.mxu0 %v3931_v60  ;;  %v3950_v34 = vsub.f32 %v10694_v35, %v3949_v59 }
 0x59b   : > { %v3979_v46 = vand.u32 4294901760, %v10708_v57  ;;  %v10717_v61 = vand.u32 4294901760, %v3859_v47  ;;  %v3856_v36 = vsel %vm2183_vm3, %v3827_v54, 0  ;;  %8094 = vmatmul.mubr.f32.vlgmr.msra.gmra.mrb[16].mxu0 %v3941_v8  ;;  %v3961_v44 = vand.u32 4294901760, %v3960_v37 }
 0x59c   : > { %v3969_v20 = vand.u32 4294901760, %v3968_v24  ;;  %v10720_v21 = vand.u32 4294901760, %v3856_v36  ;;  %8106 = vmatpush3.msra.mxu0 %v10360_v28  ;;  %v3951_v25 = vand.u32 4294901760, %v3950_v34 }
 0x59d   : > { %v3998_v40 = vsub.f32 %v3859_v47, %v10717_v61  ;;  %v3980_v45 = vsub.f32 %v10708_v57, %v3979_v46  ;;  %8119 = vmatprep.subr.mxu0 %v10353_v19 }
 0x59e   : > { %v3988_v26 = vsub.f32 %v3856_v36, %v10720_v21  ;;  %8096 = vmatprep.mubr.f32.mxu0 %v3951_v25  ;;  %v3970_v43 = vsub.f32 %v3968_v24, %v3969_v20 }
 0x59f   : > { %v3999_v38 = vand.u32 4294901760, %v3998_v40  ;;  %8097 = vmatmul.mubr.f32.gmra.mrb[18].mxu0 %v3961_v44  ;;  %v3981_v18 = vand.u32 4294901760, %v3980_v45  ;;  %v10850_v44 = vsub.f32 %v4661_v52, %v4708_v9 }
 0x5a0   : > { %v3989_v56 = vand.u32 4294901760, %v3988_v26  ;;  %v3971_v62 = vand.u32 4294901760, %v3970_v43 }
 0x5a1   : > { %v4000_v12 = vsub.f32 %v3998_v40, %v3999_v38 }
 0x5a2   : > { %8099 = vmatprep.mubr.f32.mxu0 %v3971_v62  ;;  %v3990_v28 = vsub.f32 %v3988_v26, %v3989_v56 }
 0x5a3   : > { %8100 = vmatmul.mubr.f32.gmra.mrb[20].mxu0 %v3981_v18  ;;  %v4001_v22 = vand.u32 4294901760, %v4000_v12 }
 0x5a4   : > { %v3991_v17 = vand.u32 4294901760, %v3990_v28 }
 0x5a6   : > { %8102 = vmatprep.mubr.f32.mxu0 %v3991_v17 }
 0x5a7   : > { %8103 = vmatmul.mubr.f32.gmra.mrb[22].mxu0 %v4001_v22 }
 0x5a8   : > { %8107 = vmatprep.mubr.f32.mxu0 %v10671_v58 }
 0x5ab   : > { %8108 = vmatmul.mubr.f32.vlgmr.msra.gmra.mrb[16].mxu0 %v10668_v31 }
 0x5ac   : > { %8110 = vmatprep.mubr.f32.mxu0 %v10685_v29  ;;  %8120 = vmatpush3.msra.mxu0 %v10353_v19  ;;  %v4655_v19 = vld [vmem:[%s11604_s8 + $0x8] sm:$0xff] }
 0x5ad   : > { %8133 = vmatprep.subr.mxu0 %v10152_v10 }
 0x5af   : > { %8111 = vmatmul.mubr.f32.gmra.mrb[18].mxu0 %v10681_v5 }
 0x5b0   : > { %8113 = vmatprep.mubr.f32.mxu0 %v10705_v51 }
 0x5b3   : > { %8114 = vmatmul.mubr.f32.gmra.mrb[20].mxu0 %v10701_v41 }
 0x5b4   : > { %8116 = vmatprep.mubr.f32.mxu0 %v10720_v21 }
 0x5b7   : > { %8117 = vmatmul.mubr.f32.gmra.mrb[22].mxu0 %v10717_v61 }
 0x5b8   : > { %8121 = vmatprep.mubr.f32.mxu0 %v10677_v1 }
 0x5bb   : > { %8122 = vmatmul.mubr.f32.vlgmr.msra.gmra.mrb[16].mxu0 %v10674_v63  ;;  %v4657_v63 = vld [vmem:[%s11604_s8 + $0x18] sm:$0xff] }
 0x5bc   : > { %8124 = vmatprep.mubr.f32.mxu0 %v10694_v35  ;;  %8134 = vmatpush3.msra.mxu0 %v10152_v10  ;;  %v4696_v1 = vand.u32 4294901760, %v4657_v63 }
 0x5bd   : > { %8147 = vmatprep.subr.mxu0 %v10356_v23 }
 0x5bf   : > { %8125 = vmatmul.mubr.f32.gmra.mrb[18].mxu0 %v10691_v42  ;;  %v4660_v42 = vld [vmem:[%s11604_s8 + $0x30] sm:$0xff] }
 0x5c0   : > { %8127 = vmatprep.mubr.f32.mxu0 %v3968_v24  ;;  %v4705_v35 = vand.u32 4294901760, %v4660_v42 }
 0x5c3   : > { %8128 = vmatmul.mubr.f32.gmra.mrb[20].mxu0 %v10708_v57 }
 0x5c4   : > { %8130 = vmatprep.mubr.f32.mxu0 %v3988_v26 }
 0x5c7   : > { %8131 = vmatmul.mubr.f32.gmra.mrb[22].mxu0 %v3998_v40  ;;  %v10848_v40 = vsub.f32 %v4660_v42, %v4705_v35 }
 0x5c8   : > { %8135 = vmatprep.mubr.f32.mxu0 %v3929_v7 }
 0x5cb   : > { %8136 = vmatmul.mubr.f32.vlgmr.msra.gmra.mrb[16].mxu0 %v3939_v4  ;;  %v4659_v4 = vld [vmem:[%s11604_s8 + $0x28] sm:$0xff] }
 0x5cc   : > { %8138 = vmatprep.mubr.f32.mxu0 %v3949_v59  ;;  %8148 = vmatpush3.msra.mxu0 %v10356_v23  ;;  %v4702_v6 = vand.u32 4294901760, %v4659_v4 }
 0x5cd   : > { %8161 = vmatprep.subr.mxu0 %v10152_v10 }
 0x5ce   : > { %v10834_v54 = vsub.f32 %v4659_v4, %v4702_v6  ;;  %v5542_v4 = vld [vmem:[%s11709_s16 + $0x10] sm:$0xff] }
 0x5cf   : > { %8139 = vmatmul.mubr.f32.gmra.mrb[18].mxu0 %v3959_v15  ;;  %v10811_v15 = vpack.c.bf16 %v4708_v9, %v4705_v35  ;;  %v5600_v42 = vand.u32 4294901760, %v5542_v4  ;;  %v10900_v35 = vpack.c.bf16 %v10850_v44, %v10848_v40 }
 0x5d0   : > { %8141 = vmatprep.mubr.f32.mxu0 %v3969_v20  ;;  %v4877_v36 = vand.u32 4294901760, %v10834_v54 }
 0x5d1   : > { %v10903_v9 = vsub.f32 %v5542_v4, %v5600_v42 }
 0x5d2   : > { %v4878_v25 = vsub.f32 %v10834_v54, %v4877_v36 }
 0x5d3   : > { %8142 = vmatmul.mubr.f32.gmra.mrb[20].mxu0 %v3979_v46 }
 0x5d4   : > { %8144 = vmatprep.mubr.f32.mxu0 %v3989_v56  ;;  %v4879_v43 = vand.u32 4294901760, %v4878_v25  ;;  %v11626_v56 = vand.u32 4294901760, %v10850_v44 }
 0x5d6   : > { %v4892_v12 = vsub.f32 %v10850_v44, %v11626_v56  ;;  %v5535_v56 = vld [vmem:[%s9936_s9 + $0x58] sm:$0xff] }
 0x5d7   : > { %8145 = vmatmul.mubr.f32.gmra.mrb[22].mxu0 %v3999_v38  ;;  %v4884_v38 = vand.u32 4294901760, %v10848_v40 }
 0x5d8   : > { %8149 = vmatprep.mubr.f32.mxu0 %v10671_v58  ;;  %v4893_v17 = vand.u32 4294901760, %v4892_v12 }
 0x5d9   : > { %v4885_v18 = vsub.f32 %v10848_v40, %v4884_v38 }
 0x5db   : > { %8150 = vmatmul.mubr.f32.vlgmr.msra.gmra.mrb[16].mxu0 %v10668_v31  ;;  %v4886_v28 = vand.u32 4294901760, %v4885_v18 }
 0x5dc   : > { %8152 = vmatprep.mubr.f32.mxu0 %v10685_v29  ;;  %8162 = vmatpush3.msra.mxu0 %v10152_v10  ;;  %v4654_v10 = vld [vmem:[%s11604_s8] sm:$0xff] }
 0x5dd   : > { %v4687_v23 = vand.u32 4294901760, %v4654_v10  ;;  %v10864_v22 = vpack.c.bf16 %v4893_v17, %v4886_v28  ;;  %v5527_v28 = vld [vmem:[%s9936_s9 + $0x18] sm:$0xff] }
 0x5df   : > { %8153 = vmatmul.mubr.f32.gmra.mrb[18].mxu0 %v10681_v5 }
 0x5e0   : > { %8155 = vmatprep.mubr.f32.mxu0 %v10705_v51 }
 0x5e3   : > { %8156 = vmatmul.mubr.f32.gmra.mrb[20].mxu0 %v10701_v41 }
 0x5e4   : > { %8158 = vmatprep.mubr.f32.mxu0 %v10720_v21 }
 0x5e7   : > { %8159 = vmatmul.mubr.f32.gmra.mrb[22].mxu0 %v10717_v61 }
 0x5e8   : > { %8163 = vmatprep.mubr.f32.mxu0 %v10671_v58  ;;  %v4656_v58 = vld [vmem:[%s11604_s8 + $0x10] sm:$0xff] }
 0x5e9   : > { %v4693_v0 = vand.u32 4294901760, %v4656_v58 }
 0x5eb   : > { %8164 = vmatmul.mubr.f32.vlgmr.msra.gmra.mrb[16].mxu0 %v10668_v31  ;;  %v4690_v31 = vand.u32 4294901760, %v4655_v19  ;;  %v10785_v2 = vpack.c.bf16 %v4696_v1, %v4693_v0  ;;  %v10819_v59 = vsub.f32 %v4656_v58, %v4693_v0 }
 0x5ec   : > { %8166 = vmatprep.mubr.f32.mxu0 %v10685_v29  ;;  %v10797_v29 = vsub.f32 %v4654_v10, %v4687_v23 }
 0x5ed   : > { %v10775_v53 = vpack.c.bf16 %v4690_v31, %v4687_v23  ;;  %v10799_v32 = vsub.f32 %v4655_v19, %v4690_v31  ;;  %v4856_v57 = vand.u32 4294901760, %v10819_v59  ;;  %v5540_v23 = vld [vmem:[%s11709_s16] sm:$0xff]  ;;  %v5541_v31 = vld [vmem:[%s11709_s16 + $0x8] sm:$0xff] }
 0x5ee   : > { %v4842_v55 = vand.u32 4294901760, %v10797_v29  ;;  %v5594_v58 = vand.u32 4294901760, %v5540_v23 }
 0x5ef   : > { %8167 = vmatmul.mubr.f32.gmra.mrb[18].mxu0 %v10681_v5  ;;  %8752 = vmatprep.subr.bf16.mxu1 %v10775_v53  ;;  %v4699_v5 = vand.u32 4294901760, %v4658_v3  ;;  %v4849_v13 = vand.u32 4294901760, %v10799_v32  ;;  %v4857_v24 = vsub.f32 %v10819_v59, %v4856_v57  ;;  %v10868_v10 = vpack.c.bf16 %v10799_v32, %v10797_v29 }
 0x5f0   : > { %8169 = vmatprep.mubr.f32.mxu0 %v10705_v51  ;;  %8754 = vmatpush3.bf16.msra.mxu1 %v10775_v53  ;;  %v10821_v51 = vsub.f32 %v4657_v63, %v4696_v1  ;;  %v5597_v63 = vand.u32 4294901760, %v5541_v31  ;;  %v10884_v1 = vsub.f32 %v5540_v23, %v5594_v58  ;;  %v5555_v23 = vsel %vm5544_vm4, %v5527_v28, 0 }
 0x5f1   : > { %8756 = vmatprep.subr.bf16.mxu1 %v10785_v2  ;;  %v10795_v7 = vpack.c.bf16 %v4702_v6, %v4699_v5  ;;  %v4850_v48 = vsub.f32 %v10799_v32, %v4849_v13  ;;  %v10832_v47 = vsub.f32 %v4658_v3, %v4699_v5  ;;  %v4858_v46 = vand.u32 4294901760, %v4857_v24  ;;  %v5543_v5 = vld [vmem:[%s11709_s16 + $0x18] sm:$0xff] }
 0x5f2   : > { %v4863_v14 = vand.u32 4294901760, %v10821_v51  ;;  %v10872_v19 = vpack.c.bf16 %v10821_v51, %v10819_v59  ;;  %v10886_v3 = vsub.f32 %v5541_v31, %v5597_v63  ;;  %v5603_v52 = vand.u32 4294901760, %v5543_v5 }
 0x5f3   : > { %8170 = vmatmul.mubr.f32.gmra.mrb[20].mxu0 %v10701_v41  ;;  %v4843_v41 = vsub.f32 %v10797_v29, %v4842_v55  ;;  %v4851_v8 = vand.u32 4294901760, %v4850_v48  ;;  %v10882_v0 = vpack.c.bf16 %v10834_v54, %v10832_v47  ;;  %v5524_v48 = vld [vmem:[%s9936_s9] sm:$0xff]  ;;  %v10941_v31 = vand.u32 4294901760, %v5555_v23 }
 0x5f4   : > { %8172 = vmatprep.mubr.f32.mxu0 %v10720_v21  ;;  %8758 = vmatpush3.bf16.msra.mxu1 %v10785_v2  ;;  %v4864_v34 = vsub.f32 %v10821_v51, %v4863_v14  ;;  %v10896_v6 = vpack.c.bf16 %v10886_v3, %v10884_v1  ;;  %v5546_v24 = vsel %vm5544_vm4, %v5524_v48, 0  ;;  %v5529_v48 = vld [vmem:[%s9936_s9 + $0x28] sm:$0xff]  ;;  %v10976_v28 = vpack.c.bf16 %v4849_v13, %v4842_v55 }
 0x5f5   : > { %8760 = vmatprep.subr.bf16.mxu1 %v10795_v7  ;;  %v4844_v60 = vand.u32 4294901760, %v4843_v41  ;;  %v10905_v41 = vsub.f32 %v5543_v5, %v5603_v52 }
 0x5f6   : > { %v4865_v20 = vand.u32 4294901760, %v4864_v34  ;;  %11710 = vst [vmem:[#allocation20_spill] sm:$0xff] %v10896_v6  ;;  %8864 = vmatprep.subr.bf16.mxu0 %v10896_v6  ;;  %v5525_v34 = vld [vmem:[%s9936_s9 + $0x8] sm:$0xff] }
 0x5f7   : > { %8173 = vmatmul.mubr.f32.gmra.mrb[22].mxu0 %v10717_v61  ;;  %v10827_v37 = vpack.c.bf16 %v4851_v8, %v4844_v60  ;;  %v4870_v61 = vand.u32 4294901760, %v10832_v47  ;;  %v10909_v60 = vpack.c.bf16 %v5597_v63, %v5594_v58  ;;  %v10913_v8 = vpack.c.bf16 %v10905_v41, %v10903_v9 }
 0x5f8   : > { %8762 = vmatpush3.bf16.msra.mxu1 %v10795_v7  ;;  %v10852_v45 = vpack.c.bf16 %v4865_v20, %v4858_v46  ;;  %8866 = vmatpush3.bf16.msra.mxu0 %v10896_v6  ;;  %v10917_v46 = vand.u32 4294901760, %v5546_v24  ;;  %v5549_v20 = vsel %vm5544_vm4, %v5525_v34, 0  ;;  %v10948_v63 = vsub.f32 %v5555_v23, %v10941_v31 }
 0x5f9   : > { %8764 = vmatprep.subr.bf16.mxu1 %v10811_v15  ;;  %v4871_v21 = vsub.f32 %v10832_v47, %v4870_v61  ;;  %11711 = vst [vmem:[#allocation21_spill] sm:$0xff] %v10913_v8  ;;  %8868 = vmatprep.subr.bf16.mxu0 %v10913_v8 }
 0x5fa   : > { %11712 = vst [vmem:[#allocation22_spill] sm:$0xff] %v10917_v46  ;;  %v10925_v25 = vsub.f32 %v5546_v24, %v10917_v46 }
 0x5fb   : > { %v4872_v26 = vand.u32 4294901760, %v4871_v21  ;;  %v10921_v21 = vand.u32 4294901760, %v5549_v20 }
 0x5fc   : > { %8766 = vmatpush3.bf16.msra.mxu1 %v10811_v15  ;;  %8870 = vmatpush3.bf16.msra.mxu0 %v10913_v8  ;;  %v11623_v4 = vand.u32 4294901760, %v10925_v25  ;;  %v5536_v8 = vld [vmem:[%s9936_s9 + $0x60] sm:$0xff] }
 0x5fd   : > { %8768 = vmatprep.subr.bf16.mxu1 %v10827_v37  ;;  %v10856_v62 = vpack.c.bf16 %v4879_v43, %v4872_v26  ;;  %v5526_v26 = vld [vmem:[%s9936_s9 + $0x10] sm:$0xff]  ;;  %v10928_v43 = vpack.c.bf16 %v5603_v52, %v5600_v42  ;;  %v10931_v18 = vsub.f32 %v5549_v20, %v10921_v21  ;;  %8872 = vmatprep.subr.bf16.mxu0 %v10909_v60  ;;  %v5528_v42 = vld [vmem:[%s9936_s9 + $0x20] sm:$0xff]  ;;  %v5561_v20 = vsel %vm5544_vm4, %v5529_v48, 0 }
 0x5fe   : > { %v5552_v12 = vsel %vm5544_vm4, %v5526_v26, 0  ;;  %8415 = vmatprep.mubr.f32.mxu0 %v10925_v25  ;;  %v5558_v52 = vsel %vm5544_vm4, %v5528_v42, 0  ;;  %v11621_v26 = vand.u32 4294901760, %v10948_v63  ;;  %v5530_v42 = vld [vmem:[%s9936_s9 + $0x30] sm:$0xff]  ;;  %v5582_v6 = vsel %vm5544_vm4, %v5536_v8, 0 }
 0x5ff   : > { %v10937_v17 = vand.u32 4294901760, %v5552_v12  ;;  %8416 = vmatmul.mubr.f32.vlgmr.msra.gmra.mrb[24].mxu0 %v10931_v18  ;;  %v11620_v5 = vand.u32 4294901760, %v10931_v18  ;;  %v10964_v34 = vand.u32 4294901760, %v5558_v52 }
 0x600   : > { %8874 = vmatpush3.bf16.msra.mxu0 %v10909_v60 }
 0x601   : > { %v10945_v58 = vsub.f32 %v5552_v12, %v10937_v17  ;;  %8876 = vmatprep.subr.bf16.mxu0 %v10928_v43  ;;  %v10968_v12 = vand.u32 4294901760, %v5561_v20  ;;  %v10979_v23 = vsub.f32 %v5558_v52, %v10964_v34 }
 0x603   : > { %8418 = vmatprep.mubr.f32.mxu0 %v10945_v58  ;;  %v11619_v24 = vand.u32 4294901760, %v10945_v58  ;;  %11713 = vst [vmem:[#allocation23_spill] sm:$0xff] %v10968_v12  ;;  %v10985_v48 = vsub.f32 %v5561_v20, %v10968_v12  ;;  %v11622_v29 = vand.u32 4294901760, %v10979_v23  ;;  %v11002_v20 = vpack.c.bf16 %v4863_v14, %v4856_v57 }
 0x604   : > { %8419 = vmatmul.mubr.f32.gmra.mrb[26].mxu0 %v10948_v63 }
 0x605   : > { %8878 = vmatpush3.bf16.msra.mxu0 %v10928_v43  ;;  %8447 = vmatprep.mubr.f32.mxu0 %v11623_v4  ;;  %11714 = vst [vmem:[#allocation24_spill] sm:$0xff] %v10985_v48  ;;  %v11624_v13 = vand.u32 4294901760, %v10985_v48  ;;  %v5533_v4 = vld [vmem:[%s9936_s9 + $0x48] sm:$0xff]  ;;  %v11656_v48 = vand.u32 4294901760, %v10905_v41 }
 0x606   : > { %v5573_v57 = vsel %vm5544_vm4, %v5533_v4, 0 }
 0x608   : > { %8448 = vmatmul.mubr.f32.vlgmr.msra.gmra.mrb[24].mxu0 %v11620_v5  ;;  %v5531_v5 = vld [vmem:[%s9936_s9 + $0x38] sm:$0xff] }
 0x609   : > { %8450 = vmatprep.mubr.f32.mxu0 %v11619_v24  ;;  %v5564_v24 = vsel %vm5544_vm4, %v5530_v42, 0  ;;  %v5567_v55 = vsel %vm5544_vm4, %v5531_v5, 0 }
 0x60a   : > { %v10990_v32 = vand.u32 4294901760, %v5564_v24  ;;  %v10994_v52 = vand.u32 4294901760, %v5567_v55 }
 0x60c   : > { %8451 = vmatmul.mubr.f32.gmra.mrb[26].mxu0 %v11621_v26  ;;  %11715 = vst [vmem:[#allocation25_spill] sm:$0xff] %v10990_v32  ;;  %11716 = vst [vmem:[#allocation26_spill] sm:$0xff] %v10994_v52  ;;  %v11005_v42 = vsub.f32 %v5564_v24, %v10990_v32  ;;  %v5532_v26 = vld [vmem:[%s9936_s9 + $0x40] sm:$0xff]  ;;  %v11011_v5 = vsub.f32 %v5567_v55, %v10994_v52  ;;  %v11020_v24 = vand.u32 4294901760, %v5573_v57 }
 0x60d   : > { %8453 = vmatprep.mubr.f32.mxu0 %v11622_v29  ;;  %v5570_v29 = vsel %vm5544_vm4, %v5532_v26, 0  ;;  %v11028_v26 = vpack.c.bf16 %v4877_v36, %v4870_v61  ;;  %v5579_v61 = vsel %vm5544_vm4, %v5535_v56, 0 }
 0x60e   : > { %11717 = vst [vmem:[#allocation27_spill] sm:$0xff] %v11005_v42  ;;  %11718 = vst [vmem:[#allocation28_spill] sm:$0xff] %v11011_v5  ;;  %v11625_v59 = vand.u32 4294901760, %v11005_v42  ;;  %v11016_v51 = vand.u32 4294901760, %v5570_v29  ;;  %v11627_v14 = vand.u32 4294901760, %v11011_v5  ;;  %v11037_v4 = vsub.f32 %v5573_v57, %v11020_v24  ;;  %v5539_v5 = vld [vmem:[%s9936_s9 + $0x78] sm:$0xff] }
 0x60f   : > { %11720 = vst [vmem:[#allocation30_spill] sm:$0xff] %v11020_v24  ;;  %v11724_v57 = vand.u32 4294901760, %v10850_v44 }
 0x610   : > { %8454 = vmatmul.mubr.f32.gmra.mrb[28].mxu0 %v11624_v13  ;;  %11719 = vst [vmem:[#allocation29_spill] sm:$0xff] %v11016_v51  ;;  %v11031_v55 = vsub.f32 %v5570_v29, %v11016_v51  ;;  %v5534_v13 = vld [vmem:[%s9936_s9 + $0x50] sm:$0xff]  ;;  %11722 = vst [vmem:[#allocation32_spill] sm:$0xff] %v11037_v4  ;;  %v11635_v36 = vand.u32 4294901760, %v11037_v4  ;;  %v11046_v29 = vand.u32 4294901760, %v5579_v61 }
 0x611   : > { %8456 = vmatprep.mubr.f32.mxu0 %v11625_v59  ;;  %v5576_v59 = vsel %vm5544_vm4, %v5534_v13, 0  ;;  %v11054_v13 = vpack.c.bf16 %v11724_v57, %v4884_v38  ;;  %v5538_v57 = vld [vmem:[%s9936_s9 + $0x70] sm:$0xff] }
 0x612   : > { %11721 = vst [vmem:[#allocation31_spill] sm:$0xff] %v11031_v55  ;;  %v11632_v47 = vand.u32 4294901760, %v11031_v55  ;;  %v11042_v54 = vand.u32 4294901760, %v5576_v59  ;;  %v11063_v56 = vsub.f32 %v5579_v61, %v11046_v29  ;;  %v11068_v55 = vand.u32 4294901760, %v5582_v6 }
 0x613   : > { %v5588_v4 = vsel %vm5544_vm4, %v5538_v57, 0 }
 0x614   : > { %8457 = vmatmul.mubr.f32.gmra.mrb[30].mxu0 %v11627_v14  ;;  %11723 = vst [vmem:[#allocation33_spill] sm:$0xff] %v11042_v54  ;;  %v11057_v14 = vsub.f32 %v5576_v59, %v11042_v54  ;;  %11726 = vst [vmem:[#allocation35_spill] sm:$0xff] %v11063_v56  ;;  %v11645_v38 = vand.u32 4294901760, %v11063_v56  ;;  %v11077_v61 = vsub.f32 %v5582_v6, %v11068_v55  ;;  %v5591_v6 = vsel %vm5544_vm4, %v5539_v5, 0 }
 0x615   : > { %8459 = vmatprep.mubr.f32.mxu0 %v11632_v47  ;;  %v5537_v47 = vld [vmem:[%s9936_s9 + $0x68] sm:$0xff]  ;;  %v11657_v56 = vand.u32 4294901760, %v10903_v9  ;;  %s9602_s9 = smov [#allocation11]  }
 0x616   : > { %11725 = vst [vmem:[#allocation34_spill] sm:$0xff] %v11057_v14  ;;  %v11642_v40 = vand.u32 4294901760, %v11057_v14  ;;  %v5585_v44 = vsel %vm5544_vm4, %v5537_v47, 0  ;;  %11727 = vst [vmem:[#allocation36_spill] sm:$0xff] %v11077_v61  ;;  %v11650_v47 = vand.u32 4294901760, %v10886_v3  ;;  %v11655_v14 = vand.u32 4294901760, %v11077_v61 }
 0x617   : > { %v11072_v59 = vand.u32 4294901760, %v5585_v44  ;;  %s9502_s15 = sshll.u32 %s9602_s9, 4  ;;  %s9503_s15 = int_to_ptr.vmem [resolvable:$false] %s9502_s15 }
 0x618   : > { %8460 = vmatmul.mubr.f32.gmra.mrb[32].mxu0 %v11635_v36  ;;  %v11651_v36 = vand.u32 4294901760, %v10884_v1  ;;  %p9505_p13 = scmp.lt.s32.totalorder %s11544_s23, %s9503_s15 }
 0x619   : > { %8462 = vmatprep.mubr.f32.mxu0 %v11642_v40  ;;  %v11083_v8 = vsub.f32 %v5585_v44, %v11072_v59  ;;  %v11090_v40 = vand.u32 4294901760, %v5588_v4 }
 0x61a   : > { %v8879_v44 = vpack.c.bf16 %v11650_v47, %v11651_v36 }
 0x61b   : > { %11728 = vst [vmem:[#allocation37_spill] sm:$0xff] %v11083_v8  ;;  %v11654_v42 = vand.u32 4294901760, %v11083_v8  ;;  %v11103_v57 = vsub.f32 %v5588_v4, %v11090_v40  ;;  %v8883_v4 = vpack.c.bf16 %v11656_v48, %v11657_v56  ;;  %v11733_v56 = vand.u32 4294901760, %v10945_v58 }
 0x61c   : > { %8463 = vmatmul.mubr.f32.gmra.mrb[34].mxu0 %v11645_v38  ;;  %v11098_v38 = vand.u32 4294901760, %v5591_v6  ;;  %8880 = vmatprep.subr.bf16.mxu0 %v8879_v44 }
 0x61d   : > { %8465 = vmatprep.mubr.f32.mxu0 %v11655_v14  ;;  %11729 = vst [vmem:[#allocation38_spill] sm:$0xff] %v11103_v57  ;;  %8882 = vmatpush3.bf16.msra.mxu0 %v8879_v44  ;;  %v11653_v47 = vand.u32 4294901760, %v11103_v57 }
 0x61e   : > { %v11108_v5 = vsub.f32 %v5591_v6, %v11098_v38  ;;  %8884 = vmatprep.subr.bf16.mxu0 %v8883_v4  ;;  %v11731_v6 = vand.u32 4294901760, %v10925_v25 }
 0x620   : > { %8466 = vmatmul.mubr.f32.gmra.mrb[36].mxu0 %v11654_v42  ;;  %11730 = vst [vmem:[#allocation39_spill] sm:$0xff] %v11108_v5  ;;  %v11652_v36 = vand.u32 4294901760, %v11108_v5  ;;  %v11139_v44 = vsub.f32 %v10925_v25, %v11731_v6  ;;  %v11151_v5 = vsub.f32 %v10945_v58, %v11733_v56  ;;  %v11734_v25 = vand.u32 4294901760, %v10948_v63 }
 0x621   : > { %8468 = vmatprep.mubr.f32.mxu0 %v11653_v47  ;;  %8886 = vmatpush3.bf16.msra.mxu0 %v8883_v4  ;;  %v11732_v4 = vand.u32 4294901760, %v10931_v18 }
 0x622   : > { %8888 = vmatprep.subr.bf16.mxu0 %v10909_v60  ;;  %v11157_v6 = vsub.f32 %v10948_v63, %v11734_v25  ;;  %v11166_v25 = vld [vmem:[%s11735_s24] ss:$0 sm:$0xff]  ;;  %s9504_s24 = scalar_lea.vmem %s9503_s15, 4096 }
 0x623   : > { %p9506_p3 = scmp.lt.s32.totalorder %s9504_s24, %s9498_s2 }
 0x624   : > { %8469 = vmatmul.mubr.f32.gmra.mrb[38].mxu0 %v11652_v36  ;;  %v11145_v36 = vsub.f32 %v10931_v18, %v11732_v4 }
 0x625   : > { %8479 = vmatprep.mubr.f32.mxu0 %v10917_v46  ;;  %p9507_p5 = por %p9506_p3, %p9505_p13 }
 0x627   : > { %p9508_p11 = pnand %p9507_p5, %p9501_p1 }
 0x628   : > { %8480 = vmatmul.mubr.f32.vlgmr.msra.gmra.mrb[24].mxu0 %v10921_v21 }
 0x629   : > { %8482 = vmatprep.mubr.f32.mxu0 %v10937_v17  ;;  %8890 = vmatpush3.bf16.msra.mxu0 %v10909_v60 }
 0x62a   : > { %8892 = vmatprep.subr.bf16.mxu0 %v10928_v43 }
 0x62c   : > { %8483 = vmatmul.mubr.f32.gmra.mrb[26].mxu0 %v10941_v31 }
 0x62d   : > { %8485 = vmatprep.mubr.f32.mxu0 %v10964_v34  ;;  %8894 = vmatpush3.bf16.msra.mxu0 %v10928_v43 }
 0x630   : > { %8486 = vmatmul.mubr.f32.gmra.mrb[28].mxu0 %v10968_v12 }
 0x631   : > { %8488 = vmatprep.mubr.f32.mxu0 %v10990_v32 }
 0x634   : > { %8489 = vmatmul.mubr.f32.gmra.mrb[30].mxu0 %v10994_v52 }
 0x635   : > { %8491 = vmatprep.mubr.f32.mxu0 %v11016_v51 }
 0x638   : > { %8492 = vmatmul.mubr.f32.gmra.mrb[32].mxu0 %v11020_v24 }
 0x639   : > { %8494 = vmatprep.mubr.f32.mxu0 %v11042_v54 }
 0x63c   : > { %8495 = vmatmul.mubr.f32.gmra.mrb[34].mxu0 %v11046_v29 }
 0x63d   : > { %8497 = vmatprep.mubr.f32.mxu0 %v11068_v55 }
 0x640   : > { %8498 = vmatmul.mubr.f32.gmra.mrb[36].mxu0 %v11072_v59 }
 0x641   : > { %8500 = vmatprep.mubr.f32.mxu0 %v11090_v40 }
 0x644   : > { %8501 = vmatmul.mubr.f32.gmra.mrb[38].mxu0 %v11098_v38 }
 0x645   : > { %8511 = vmatprep.mubr.f32.mxu0 %v10917_v46 }
 0x648   : > { %8512 = vmatmul.mubr.f32.vlgmr.msra.gmra.mrb[24].mxu0 %v10921_v21 }
 0x649   : > { %8514 = vmatprep.mubr.f32.mxu0 %v10937_v17 }
 0x64c   : > { %8515 = vmatmul.mubr.f32.gmra.mrb[26].mxu0 %v10941_v31 }
 0x64d   : > { %8517 = vmatprep.mubr.f32.mxu0 %v10964_v34 }
 0x650   : > { %8518 = vmatmul.mubr.f32.gmra.mrb[28].mxu0 %v10968_v12 }
 0x651   : > { %8520 = vmatprep.mubr.f32.mxu0 %v10990_v32 }
 0x654   : > { %8521 = vmatmul.mubr.f32.gmra.mrb[30].mxu0 %v10994_v52 }
 0x655   : > { %8523 = vmatprep.mubr.f32.mxu0 %v11016_v51 }
 0x658   : > { %8524 = vmatmul.mubr.f32.gmra.mrb[32].mxu0 %v11020_v24 }
 0x659   : > { %8526 = vmatprep.mubr.f32.mxu0 %v11042_v54 }
 0x65c   : > { %8527 = vmatmul.mubr.f32.gmra.mrb[34].mxu0 %v11046_v29 }
 0x65d   : > { %8529 = vmatprep.mubr.f32.mxu0 %v11068_v55 }
 0x660   : > { %8530 = vmatmul.mubr.f32.gmra.mrb[36].mxu0 %v11072_v59 }
 0x661   : > { %8532 = vmatprep.mubr.f32.mxu0 %v11090_v40 }
 0x664   : > { %8533 = vmatmul.mubr.f32.gmra.mrb[38].mxu0 %v11098_v38 }
 0x6be   : > { %v8165_v47 = vpop.f32.mrb[16].mxu0 }
 0x6bf   : > { %v8907_v42 = vadd.f32 1e-05, %v8165_v47  ;;  %v4562_v14 = vpop.f32.mrb[17].mxu0 }
 0x6c0   : > { %v8908_v48 = vadd.f32 1e-05, %v4562_v14 }
 0x6c1   : > { %9338 = vrsqrt.f32 %v8907_v42 }
 0x6c2   : > { %9340 = vrsqrt.f32 %v8908_v48  ;;  %v8168_v18 = vpop.f32.mrb[18].mxu0 }
 0x6c3   : > { %v8909_v47 = vadd.f32 1e-05, %v8168_v18  ;;  %v4574_v4 = vpop.f32.mrb[19].mxu0 }
 0x6c4   : > { %v8910_v14 = vadd.f32 1e-05, %v4574_v4 }
 0x6c5   : > { %9342 = vrsqrt.f32 %v8909_v47 }
 0x6c6   : > { %9344 = vrsqrt.f32 %v8910_v14  ;;  %v8171_v58 = vpop.f32.mrb[20].mxu0 }
 0x6c7   : > { %v8911_v42 = vadd.f32 1e-05, %v8171_v58  ;;  %v4586_v56 = vpop.f32.mrb[21].mxu0 }
 0x6c8   : > { %v8912_v57 = vadd.f32 1e-05, %v4586_v56  ;;  %v11170_v56 = vld [vmem:[#allocation10] ss:$0 sm:$0xff] }
 0x6c9   : > { %9346 = vrsqrt.f32 %v8911_v42 }
 0x6ca   : > { %9348 = vrsqrt.f32 %v8912_v57  ;;  %v8174_v63 = vpop.f32.mrb[22].mxu0 }
 0x6cb   : > { %v9339_v48 = vpop.eup %9338  ;;  %v8913_v18 = vadd.f32 1e-05, %v8174_v63  ;;  %v4598_v47 = vpop.f32.mrb[23].mxu0 }
 0x6cc   : > { %v9341_v4 = vpop.eup %9340  ;;  %v4617_v14 = vmul.f32 %v9339_v48, %v10469_v39  ;;  %v8914_v58 = vadd.f32 1e-05, %v4598_v47 }
 0x6cd   : > { %v4616_v42 = vmul.f32 %v9341_v4, %v10472_v49  ;;  %9350 = vrsqrt.f32 %v8913_v18 }
 0x6ce   : > { %v4632_v57 = vmul.f32 %v11166_v25, %v4617_v14  ;;  %9352 = vrsqrt.f32 %v8914_v58 }
 0x6cf   : > { %v9343_v46 = vpop.eup %9342  ;;  %v4631_v63 = vmul.f32 %v11166_v25, %v4616_v42 }
 0x6d0   : > { %v9345_v8 = vpop.eup %9344  ;;  %v4647_v61 = vadd.f32 %v11170_v56, %v4632_v57  ;;  %v4619_v39 = vmul.f32 %v9343_v46, %v10480_v11 }
 0x6d1   : > { %v4618_v48 = vmul.f32 %v9345_v8, %v10486_v16  ;;  %v4646_v49 = vadd.f32 %v11170_v56, %v4631_v63 }
 0x6d2   : > { %v4666_v18 = vsel %vm1319_vm2, %v4647_v61, 0  ;;  %v4634_v47 = vmul.f32 %v11166_v25, %v4619_v39 }
 0x6d3   : > { %v9347_v4 = vpop.eup %9346  ;;  %v4663_v14 = vsel %vm1319_vm2, %v4646_v49, 0  ;;  %v11185_v58 = vand.u32 4294901760, %v4666_v18  ;;  %v4633_v42 = vmul.f32 %v11166_v25, %v4618_v48 }
 0x6d4   : > { %v9349_v11 = vpop.eup %9348  ;;  %v4621_v46 = vmul.f32 %v9347_v4, %v10502_v27  ;;  %v11189_v57 = vand.u32 4294901760, %v4663_v14  ;;  %v4649_v16 = vadd.f32 %v11170_v56, %v4634_v47 }
 0x6d5   : > { %v4620_v61 = vmul.f32 %v9349_v11, %v10509_v50  ;;  %v11195_v8 = vsub.f32 %v4666_v18, %v11185_v58  ;;  %v4648_v63 = vadd.f32 %v11170_v56, %v4633_v42 }
 0x6d6   : > { %v11200_v39 = vsub.f32 %v4663_v14, %v11189_v57  ;;  %v4672_v27 = vsel %vm1319_vm2, %v4649_v16, 0  ;;  %v4636_v48 = vmul.f32 %v11166_v25, %v4621_v46 }
 0x6d7   : > { %v9351_v49 = vpop.eup %9350  ;;  %v11669_v47 = vand.u32 4294901760, %v11195_v8  ;;  %v4669_v4 = vsel %vm1319_vm2, %v4648_v63, 0  ;;  %v11206_v50 = vand.u32 4294901760, %v4672_v27  ;;  %v4635_v18 = vmul.f32 %v11166_v25, %v4620_v61 }
 0x6d8   : > { %v9353_v11 = vpop.eup %9352  ;;  %v4623_v42 = vmul.f32 %v9351_v49, %v10529_v33  ;;  %v11672_v32 = vand.u32 4294901760, %v11200_v39  ;;  %v11211_v14 = vand.u32 4294901760, %v4669_v4  ;;  %v4651_v16 = vadd.f32 %v11170_v56, %v4636_v48 }
 0x6d9   : > { %v4622_v46 = vmul.f32 %v9353_v11, %v10538_v30  ;;  %v4772_v63 = vsub.f32 %v11195_v8, %v11669_v47  ;;  %v11220_v12 = vsub.f32 %v4672_v27, %v11206_v50  ;;  %v4650_v61 = vadd.f32 %v11170_v56, %v4635_v18 }
 0x6da   : > { %v4762_v33 = vsub.f32 %v11200_v39, %v11672_v32  ;;  %v11228_v48 = vsub.f32 %v4669_v4, %v11211_v14  ;;  %v4678_v30 = vsel %vm1319_vm2, %v4651_v16, 0  ;;  %v4638_v49 = vmul.f32 %v11166_v25, %v4623_v42 }
 0x6db   : > { %v11673_v11 = vand.u32 4294901760, %v11220_v12  ;;  %v4675_v27 = vsel %vm1319_vm2, %v4650_v61, 0  ;;  %v11234_v47 = vand.u32 4294901760, %v4678_v30  ;;  %v4637_v32 = vmul.f32 %v11166_v25, %v4622_v46 }
 0x6dc   : > { %v4763_v18 = vand.u32 4294901760, %v4762_v33  ;;  %v11676_v51 = vand.u32 4294901760, %v11228_v48  ;;  %v11237_v52 = vand.u32 4294901760, %v4675_v27  ;;  %v4773_v4 = vand.u32 4294901760, %v4772_v63 }
 0x6dd   : > { %v4792_v42 = vsub.f32 %v11220_v12, %v11673_v11  ;;  %v11245_v16 = vsub.f32 %v4678_v30, %v11234_v47  ;;  %v4653_v61 = vadd.f32 %v11170_v56, %v4638_v49  ;;  %v4652_v46 = vadd.f32 %v11170_v56, %v4637_v32 }
 0x6de   : > { %8191 = vmatprep.mubr.f32.mxu1 %v4763_v18  ;;  %v4782_v33 = vsub.f32 %v11228_v48, %v11676_v51  ;;  %v11253_v25 = vsub.f32 %v4675_v27, %v11237_v52  ;;  %v11736_v63 = vand.u32 4294901760, %v10884_v1  ;;  %v11737_v18 = vand.u32 4294901760, %v10886_v3 }
 0x6df   : > { %8192 = vmatmul.mubr.f32.vlgmr.msra.gmra.mrb[16].mxu1 %v4773_v4  ;;  %v4793_v30 = vand.u32 4294901760, %v4792_v42  ;;  %v4811_v49 = vand.u32 4294901760, %v11245_v16  ;;  %v4684_v54 = vsel %vm1319_vm2, %v4653_v61, 0  ;;  %v4681_v32 = vsel %vm1319_vm2, %v4652_v46, 0 }
 0x6e0   : > { %v5826_v11 = vsub.f32 %v10884_v1, %v11736_v63  ;;  %v5833_v24 = vsub.f32 %v10886_v3, %v11737_v18  ;;  %8770 = vmatpush3.bf16.msra.mxu1 %v10827_v37  ;;  %v4783_v27 = vand.u32 4294901760, %v4782_v33  ;;  %v4801_v51 = vand.u32 4294901760, %v11253_v25 }
 0x6e1   : > { %v11267_v56 = vand.u32 4294901760, %v4684_v54  ;;  %8772 = vmatprep.subr.bf16.mxu1 %v10852_v45  ;;  %v4812_v1 = vsub.f32 %v11245_v16, %v4811_v49  ;;  %v11274_v4 = vand.u32 4294901760, %v4681_v32  ;;  %v11738_v63 = vand.u32 4294901760, %v10903_v9 }
 0x6e2   : > { %v5827_v3 = vand.u32 4294901760, %v5826_v11  ;;  %v5834_v42 = vand.u32 4294901760, %v5833_v24  ;;  %8194 = vmatprep.mubr.f32.mxu1 %v4783_v27  ;;  %v4802_v37 = vsub.f32 %v11253_v25, %v4801_v51 }
 0x6e3   : > { %v11281_v61 = vsub.f32 %v4684_v54, %v11267_v56  ;;  %8195 = vmatmul.mubr.f32.gmra.mrb[18].mxu1 %v4793_v30  ;;  %v11284_v33 = vsub.f32 %v4681_v32, %v11274_v4  ;;  %v5840_v24 = vsub.f32 %v10903_v9, %v11738_v63  ;;  %v4813_v27 = vand.u32 4294901760, %v4812_v1  ;;  %v11760_v63 = vld [vmem:[#allocation36_spill] sm:$0xff] }
 0x6e4   : > { %v11286_v46 = vpack.c.bf16 %v5834_v42, %v5827_v3  ;;  %8774 = vmatpush3.bf16.msra.mxu1 %v10852_v45  ;;  %v4803_v11 = vand.u32 4294901760, %v4802_v37  ;;  %v11739_v32 = vand.u32 4294901760, %v10905_v41 }
 0x6e5   : > { %v4831_v18 = vand.u32 4294901760, %v11281_v61  ;;  %8776 = vmatprep.subr.bf16.mxu1 %v10856_v62  ;;  %v4821_v54 = vand.u32 4294901760, %v11284_v33  ;;  %v5841_v30 = vand.u32 4294901760, %v5840_v24  ;;  %v11761_v24 = vand.u32 4294901760, %v11760_v63 }
 0x6e6   : > { %v5847_v3 = vsub.f32 %v10905_v41, %v11739_v32  ;;  %8197 = vmatprep.mubr.f32.mxu1 %v4803_v11 }
 0x6e7   : > { %v4832_v45 = vsub.f32 %v11281_v61, %v4831_v18  ;;  %8198 = vmatmul.mubr.f32.gmra.mrb[20].mxu1 %v4813_v27  ;;  %v4822_v9 = vsub.f32 %v11284_v33, %v4821_v54  ;;  %v5785_v11 = vsub.f32 %v11760_v63, %v11761_v24  ;;  %v11762_v27 = vld [vmem:[#allocation37_spill] sm:$0xff] }
 0x6e8   : > { %v5848_v1 = vand.u32 4294901760, %v5847_v3  ;;  %8778 = vmatpush3.bf16.msra.mxu1 %v10856_v62  ;;  %v11740_v62 = vand.u32 4294901760, %v11200_v39  ;;  %v11764_v3 = vld [vmem:[#allocation38_spill] sm:$0xff] }
 0x6e9   : > { %v4823_v42 = vand.u32 4294901760, %v4822_v9  ;;  %8780 = vmatprep.subr.bf16.mxu1 %v10864_v22  ;;  %v4833_v41 = vand.u32 4294901760, %v4832_v45  ;;  %v5786_v32 = vand.u32 4294901760, %v5785_v11  ;;  %v11765_v45 = vand.u32 4294901760, %v11764_v3 }
 0x6ea   : > { %v11307_v37 = vpack.c.bf16 %v5848_v1, %v5841_v30 }
 0x6eb   : > { %8200 = vmatprep.mubr.f32.mxu1 %v4823_v42  ;;  %v5805_v9 = vsub.f32 %v11764_v3, %v11765_v45  ;;  %v11766_v42 = vld [vmem:[#allocation39_spill] sm:$0xff] }
 0x6ec   : > { %8201 = vmatmul.mubr.f32.gmra.mrb[22].mxu1 %v4833_v41 }
 0x6ed   : > { %8782 = vmatpush3.bf16.msra.mxu1 %v10864_v22  ;;  %8219 = vmatprep.mubr.f32.mxu1 %v11189_v57  ;;  %v11741_v22 = vand.u32 4294901760, %v11195_v8 }
 0x6ee   : > { %8784 = vmatprep.subr.bf16.mxu1 %v10868_v10 }
 0x6f0   : > { %8220 = vmatmul.mubr.f32.vlgmr.msra.gmra.mrb[16].mxu1 %v11185_v58 }
 0x6f1   : > { %8222 = vmatprep.mubr.f32.mxu1 %v11211_v14  ;;  %8786 = vmatpush3.bf16.msra.mxu1 %v10868_v10  ;;  %v11742_v10 = vand.u32 4294901760, %v11228_v48 }
 0x6f2   : > { %8788 = vmatprep.subr.bf16.mxu1 %v10872_v19 }
 0x6f4   : > { %8223 = vmatmul.mubr.f32.gmra.mrb[18].mxu1 %v11206_v50 }
 0x6f5   : > { %8225 = vmatprep.mubr.f32.mxu1 %v11237_v52  ;;  %8790 = vmatpush3.bf16.msra.mxu1 %v10872_v19  ;;  %v11743_v19 = vand.u32 4294901760, %v11220_v12 }
 0x6f6   : > { %8792 = vmatprep.subr.bf16.mxu1 %v10882_v0 }
 0x6f8   : > { %8226 = vmatmul.mubr.f32.gmra.mrb[20].mxu1 %v11234_v47 }
 0x6f9   : > { %8228 = vmatprep.mubr.f32.mxu1 %v11274_v4  ;;  %8794 = vmatpush3.bf16.msra.mxu1 %v10882_v0 }
 0x6fa   : > { %8796 = vmatprep.subr.bf16.mxu1 %v10900_v35 }
 0x6fc   : > { %8229 = vmatmul.mubr.f32.gmra.mrb[22].mxu1 %v11267_v56 }
 0x6fd   : > { %8798 = vmatpush3.bf16.msra.mxu1 %v10900_v35  ;;  %8247 = vmatprep.mubr.f32.mxu1 %v11200_v39  ;;  %v5696_v35 = vand.u32 4294901760, %v11157_v6  ;;  %v11751_v6 = vld [vmem:[#allocation31_spill] sm:$0xff] }
 0x6fe   : > { %8800 = vmatprep.subr.bf16.mxu1 %v10775_v53 }
 0x700   : > { %8248 = vmatmul.mubr.f32.vlgmr.msra.gmra.mrb[16].mxu1 %v11195_v8  ;;  %v11753_v8 = vld [vmem:[#allocation20_spill] sm:$0xff] }
 0x701   : > { %8250 = vmatprep.mubr.f32.mxu1 %v11228_v48  ;;  %8802 = vmatpush3.bf16.msra.mxu1 %v10775_v53 }
 0x702   : > { %8804 = vmatprep.subr.bf16.mxu1 %v10785_v2 }
 0x704   : > { %8251 = vmatmul.mubr.f32.gmra.mrb[18].mxu1 %v11220_v12 }
 0x705   : > { %8253 = vmatprep.mubr.f32.mxu1 %v11253_v25  ;;  %8806 = vmatpush3.bf16.msra.mxu1 %v10785_v2 }
 0x706   : > { %8808 = vmatprep.subr.bf16.mxu1 %v10795_v7 }
 0x708   : > { %8254 = vmatmul.mubr.f32.gmra.mrb[20].mxu1 %v11245_v16  ;;  %v11756_v16 = vld [vmem:[#allocation34_spill] sm:$0xff] }
 0x709   : > { %8256 = vmatprep.mubr.f32.mxu1 %v11284_v33  ;;  %8810 = vmatpush3.bf16.msra.mxu1 %v10795_v7  ;;  %v11757_v25 = vand.u32 4294901760, %v11756_v16 }
 0x70a   : > { %8812 = vmatprep.subr.bf16.mxu1 %v10811_v15 }
 0x70c   : > { %8257 = vmatmul.mubr.f32.gmra.mrb[22].mxu1 %v11281_v61 }
 0x70d   : > { %8814 = vmatpush3.bf16.msra.mxu1 %v10811_v15  ;;  %8275 = vmatprep.mubr.f32.mxu1 %v11740_v62  ;;  %v5806_v62 = vand.u32 4294901760, %v5805_v9 }
 0x70e   : > { %8816 = vmatprep.subr.bf16.mxu1 %v10976_v28 }
 0x710   : > { %8276 = vmatmul.mubr.f32.vlgmr.msra.gmra.mrb[16].mxu1 %v11741_v22 }
 0x711   : > { %8278 = vmatprep.mubr.f32.mxu1 %v11742_v10  ;;  %8818 = vmatpush3.bf16.msra.mxu1 %v10976_v28  ;;  %v11768_v10 = vld [vmem:[#allocation22_spill] sm:$0xff] }
 0x712   : > { %8820 = vmatprep.subr.bf16.mxu1 %v11002_v20 }
 0x714   : > { %8279 = vmatmul.mubr.f32.gmra.mrb[18].mxu1 %v11743_v19  ;;  %v11769_v19 = vld [vmem:[#allocation21_spill] sm:$0xff] }
 0x715   : > { %8281 = vmatprep.mubr.f32.mxu1 %v4801_v51  ;;  %8822 = vmatpush3.bf16.msra.mxu1 %v11002_v20 }
 0x716   : > { %8824 = vmatprep.subr.bf16.mxu1 %v11028_v26 }
 0x718   : > { %8282 = vmatmul.mubr.f32.gmra.mrb[20].mxu1 %v4811_v49  ;;  %v5765_v49 = vsub.f32 %v11756_v16, %v11757_v25 }
 0x719   : > { %8284 = vmatprep.mubr.f32.mxu1 %v4821_v54  ;;  %8826 = vmatpush3.bf16.msra.mxu1 %v11028_v26  ;;  %v11763_v54 = vand.u32 4294901760, %v11762_v27 }
 0x71a   : > { %8828 = vmatprep.subr.bf16.mxu1 %v11054_v13 }
 0x71b   : > { %v5795_v30 = vsub.f32 %v11762_v27, %v11763_v54 }
 0x71c   : > { %8285 = vmatmul.mubr.f32.gmra.mrb[22].mxu1 %v4831_v18 }
 0x71d   : > { %8830 = vmatpush3.bf16.msra.mxu1 %v11054_v13  ;;  %8303 = vmatprep.mubr.f32.mxu1 %v11189_v57  ;;  %v5796_v1 = vand.u32 4294901760, %v5795_v30 }
 0x71e   : > { %8832 = vmatprep.subr.bf16.mxu1 %v10775_v53 }
 0x720   : > { %8304 = vmatmul.mubr.f32.vlgmr.msra.gmra.mrb[16].mxu1 %v11185_v58 }
 0x721   : > { %8306 = vmatprep.mubr.f32.mxu1 %v11211_v14  ;;  %8834 = vmatpush3.bf16.msra.mxu1 %v10775_v53  ;;  %v5666_v53 = vand.u32 4294901760, %v11139_v44 }
 0x722   : > { %8836 = vmatprep.subr.bf16.mxu1 %v10785_v2 }
 0x724   : > { %8307 = vmatmul.mubr.f32.gmra.mrb[18].mxu1 %v11206_v50 }
 0x725   : > { %8309 = vmatprep.mubr.f32.mxu1 %v11237_v52  ;;  %8838 = vmatpush3.bf16.msra.mxu1 %v10785_v2  ;;  %v5676_v2 = vand.u32 4294901760, %v11145_v36  ;;  %v11749_v36 = vld [vmem:[#allocation28_spill] sm:$0xff] }
 0x726   : > { %8840 = vmatprep.subr.bf16.mxu1 %v10795_v7  ;;  %v11750_v13 = vand.u32 4294901760, %v11749_v36 }
 0x728   : > { %8310 = vmatmul.mubr.f32.gmra.mrb[20].mxu1 %v11234_v47 }
 0x729   : > { %8312 = vmatprep.mubr.f32.mxu1 %v11274_v4  ;;  %8842 = vmatpush3.bf16.msra.mxu1 %v10795_v7  ;;  %v5686_v7 = vand.u32 4294901760, %v11151_v5  ;;  %v5735_v5 = vsub.f32 %v11749_v36, %v11750_v13 }
 0x72a   : > { %8844 = vmatprep.subr.bf16.mxu1 %v10811_v15 }
 0x72b   : > { %v5736_v39 = vand.u32 4294901760, %v5735_v5 }
 0x72c   : > { %8313 = vmatmul.mubr.f32.gmra.mrb[22].mxu1 %v11267_v56 }
 0x72d   : > { %8846 = vmatpush3.bf16.msra.mxu1 %v10811_v15  ;;  %8331 = vmatprep.mubr.f32.mxu1 %v11189_v57  ;;  %v11744_v15 = vand.u32 4294901760, %v10979_v23 }
 0x72e   : > { %8848 = vmatprep.subr.bf16.mxu1 %v10909_v60 }
 0x72f   : > { %v5705_v0 = vsub.f32 %v10979_v23, %v11744_v15  ;;  %v11773_v15 = vld [vmem:[#allocation29_spill] sm:$0xff] }
 0x730   : > { %8332 = vmatmul.mubr.f32.vlgmr.msra.gmra.mrb[16].mxu1 %v11185_v58  ;;  %v11752_v58 = vand.u32 4294901760, %v11751_v6 }
 0x731   : > { %8334 = vmatprep.mubr.f32.mxu1 %v11211_v14  ;;  %8850 = vmatpush3.bf16.msra.mxu1 %v10909_v60  ;;  %v11745_v60 = vld [vmem:[#allocation24_spill] sm:$0xff]  ;;  %v5706_v28 = vand.u32 4294901760, %v5705_v0 }
 0x732   : > { %8852 = vmatprep.subr.bf16.mxu1 %v10928_v43  ;;  %v5745_v57 = vsub.f32 %v11751_v6, %v11752_v58 }
 0x734   : > { %8335 = vmatmul.mubr.f32.gmra.mrb[18].mxu1 %v11206_v50  ;;  %v5746_v48 = vand.u32 4294901760, %v5745_v57 }
 0x735   : > { %8337 = vmatprep.mubr.f32.mxu1 %v11237_v52  ;;  %8854 = vmatpush3.bf16.msra.mxu1 %v10928_v43  ;;  %v11746_v43 = vand.u32 4294901760, %v11745_v60  ;;  %v11747_v52 = vld [vmem:[#allocation27_spill] sm:$0xff] }
 0x736   : > { %8856 = vmatprep.subr.bf16.mxu1 %v11286_v46  ;;  %v11748_v20 = vand.u32 4294901760, %v11747_v52 }
 0x737   : > { %v5715_v12 = vsub.f32 %v11745_v60, %v11746_v43 }
 0x738   : > { %8338 = vmatmul.mubr.f32.gmra.mrb[20].mxu1 %v11234_v47  ;;  %v5725_v51 = vsub.f32 %v11747_v52, %v11748_v20  ;;  %v11754_v47 = vld [vmem:[#allocation32_spill] sm:$0xff] }
 0x739   : > { %8340 = vmatprep.mubr.f32.mxu1 %v11274_v4  ;;  %v5716_v26 = vand.u32 4294901760, %v5715_v12  ;;  %v11755_v50 = vand.u32 4294901760, %v11754_v47  ;;  %v11758_v4 = vld [vmem:[#allocation35_spill] sm:$0xff] }
 0x73a   : > { %v5726_v44 = vand.u32 4294901760, %v5725_v51  ;;  %v11759_v61 = vand.u32 4294901760, %v11758_v4 }
 0x73b   : > { %v5755_v14 = vsub.f32 %v11754_v47, %v11755_v50  ;;  %v11481_v50 = vld [vmem:[%s11776_s6] ss:$0 sm:$0xff] }
 0x73c   : > { %8341 = vmatmul.mubr.f32.gmra.mrb[22].mxu1 %v11267_v56  ;;  %v5775_v33 = vsub.f32 %v11758_v4, %v11759_v61 }
 0x73d   : > { %8351 = vmatprep.mubr.f32.mxu1 %v5666_v53  ;;  %v5756_v56 = vand.u32 4294901760, %v5755_v14  ;;  %v11770_v53 = vld [vmem:[#allocation23_spill] sm:$0xff] }
 0x73e   : > { %v5776_v18 = vand.u32 4294901760, %v5775_v33 }
 0x740   : > { %8352 = vmatmul.mubr.f32.vlgmr.msra.gmra.mrb[24].mxu1 %v5676_v2  ;;  %v11771_v2 = vld [vmem:[#allocation25_spill] sm:$0xff] }
 0x741   : > { %8354 = vmatprep.mubr.f32.mxu1 %v5686_v7  ;;  %8858 = vmatpush3.bf16.msra.mxu1 %v11286_v46  ;;  %v5766_v46 = vand.u32 4294901760, %v5765_v49  ;;  %v11772_v7 = vld [vmem:[#allocation26_spill] sm:$0xff] }
 0x742   : > { %8860 = vmatprep.subr.bf16.mxu1 %v11307_v37 }
 0x744   : > { %8355 = vmatmul.mubr.f32.gmra.mrb[26].mxu1 %v5696_v35 }
 0x745   : > { %8357 = vmatprep.mubr.f32.mxu1 %v5706_v28  ;;  %8862 = vmatpush3.bf16.msra.mxu1 %v11307_v37  ;;  %v11767_v37 = vand.u32 4294901760, %v11766_v42 }
 0x746   : > { %8895 = vmatprep.subr.bf16.mxu1 %v11753_v8 }
 0x747   : > { %v5815_v41 = vsub.f32 %v11766_v42, %v11767_v37 }
 0x748   : > { %8358 = vmatmul.mubr.f32.gmra.mrb[28].mxu1 %v5716_v26 }
 0x749   : > { %8360 = vmatprep.mubr.f32.mxu1 %v5726_v44  ;;  %v5816_v22 = vand.u32 4294901760, %v5815_v41 }
 0x74c   : > { %8361 = vmatmul.mubr.f32.gmra.mrb[30].mxu1 %v5736_v39 }
 0x74d   : > { %8363 = vmatprep.mubr.f32.mxu1 %v5746_v48 }
 0x750   : > { %8364 = vmatmul.mubr.f32.gmra.mrb[32].mxu1 %v5756_v56 }
 0x751   : > { %8366 = vmatprep.mubr.f32.mxu1 %v5766_v46 }
 0x754   : > { %8367 = vmatmul.mubr.f32.gmra.mrb[34].mxu1 %v5776_v18 }
 0x755   : > { %8369 = vmatprep.mubr.f32.mxu1 %v5786_v32 }
 0x758   : > { %8370 = vmatmul.mubr.f32.gmra.mrb[36].mxu1 %v5796_v1 }
 0x759   : > { %8372 = vmatprep.mubr.f32.mxu1 %v5806_v62 }
 0x75c   : > { %8373 = vmatmul.mubr.f32.gmra.mrb[38].mxu1 %v5816_v22 }
 0x75d   : > { %8383 = vmatprep.mubr.f32.mxu1 %v11768_v10 }
 0x760   : > { %8384 = vmatmul.mubr.f32.vlgmr.msra.gmra.mrb[24].mxu1 %v10921_v21  ;;  %v11774_v21 = vld [vmem:[#allocation30_spill] sm:$0xff] }
 0x761   : > { %8386 = vmatprep.mubr.f32.mxu1 %v10937_v17  ;;  %8897 = vmatpush3.bf16.msra.mxu1 %v11753_v8  ;;  %v11775_v17 = vld [vmem:[#allocation33_spill] sm:$0xff] }
 0x762   : > { %8896 = vmatprep.subr.bf16.mxu1 %v11769_v19 }
 0x764   : > { %8387 = vmatmul.mubr.f32.gmra.mrb[26].mxu1 %v10941_v31  ;;  %v8513_v31 = vpop.f32.mrb[24].mxu0 }
 0x765   : > { %8389 = vmatprep.mubr.f32.mxu1 %v10964_v34  ;;  %8898 = vmatpush3.bf16.msra.mxu1 %v11769_v19  ;;  %v6629_v34 = vpop.f32.mrb[25].mxu0 }
 0x768   : > { %8390 = vmatmul.mubr.f32.gmra.mrb[28].mxu1 %v11770_v53 }
 0x769   : > { %8392 = vmatprep.mubr.f32.mxu1 %v11771_v2 }
 0x76c   : > { %8393 = vmatmul.mubr.f32.gmra.mrb[30].mxu1 %v11772_v7 }
 0x76d   : > { %8395 = vmatprep.mubr.f32.mxu1 %v11773_v15 }
 0x770   : > { %8396 = vmatmul.mubr.f32.gmra.mrb[32].mxu1 %v11774_v21 }
 0x771   : > { %8398 = vmatprep.mubr.f32.mxu1 %v11775_v17 }
 0x774   : > { %8399 = vmatmul.mubr.f32.gmra.mrb[34].mxu1 %v11046_v29 }
 0x775   : > { %8401 = vmatprep.mubr.f32.mxu1 %v11068_v55 }
 0x778   : > { %8402 = vmatmul.mubr.f32.gmra.mrb[36].mxu1 %v11072_v59 }
 0x779   : > { %8404 = vmatprep.mubr.f32.mxu1 %v11090_v40 }
 0x77c   : > { %8405 = vmatmul.mubr.f32.gmra.mrb[38].mxu1 %v11098_v38 }
 0x77d   : > { %8421 = vmatprep.mubr.f32.mxu1 %v10979_v23  ;;  %v8516_v23 = vpop.f32.mrb[26].mxu0 }
 0x77e   : > { %v6641_v55 = vpop.f32.mrb[27].mxu0 }
 0x77f   : > { %v8519_v29 = vpop.f32.mrb[28].mxu0 }
 0x780   : > { %8422 = vmatmul.mubr.f32.vlgmr.msra.gmra.mrb[28].mxu1 %v11745_v60  ;;  %v6653_v40 = vpop.f32.mrb[29].mxu0 }
 0x781   : > { %8424 = vmatprep.mubr.f32.mxu1 %v11747_v52  ;;  %v8522_v38 = vpop.f32.mrb[30].mxu0 }
 0x782   : > { %v6665_v59 = vpop.f32.mrb[31].mxu0 }
 0x783   : > { %v8525_v0 = vpop.f32.mrb[32].mxu0 }
 0x784   : > { %8425 = vmatmul.mubr.f32.gmra.mrb[30].mxu1 %v11749_v36  ;;  %v6677_v35 = vpop.f32.mrb[33].mxu0 }
 0x785   : > { %8427 = vmatprep.mubr.f32.mxu1 %v11751_v6  ;;  %v8528_v60 = vpop.f32.mrb[34].mxu0 }
 0x786   : > { %v6689_v43 = vpop.f32.mrb[35].mxu0 }
 0x787   : > { %v11468_v12 = vpop.f32.mrb[36].mxu0 }
 0x788   : > { %8428 = vmatmul.mubr.f32.gmra.mrb[32].mxu1 %v11754_v47  ;;  %v11470_v28 = vpop.f32.mrb[37].mxu0 }
 0x789   : > { %8430 = vmatprep.mubr.f32.mxu1 %v11756_v16  ;;  %v11472_v52 = vpop.f32.mrb[38].mxu0 }
 0x78a   : > { %v11474_v20 = vpop.f32.mrb[39].mxu0 }
 0x78c   : > { %8431 = vmatmul.mubr.f32.gmra.mrb[34].mxu1 %v11758_v4 }
 0x78d   : > { %8433 = vmatprep.mubr.f32.mxu1 %v11760_v63 }
 0x790   : > { %8434 = vmatmul.mubr.f32.gmra.mrb[36].mxu1 %v11762_v27 }
 0x791   : > { %8436 = vmatprep.mubr.f32.mxu1 %v11764_v3 }
 0x794   : > { %8437 = vmatmul.mubr.f32.gmra.mrb[38].mxu1 %v11766_v42 }
 0x803   : > { %v8333_v51 = vpop.f32.mrb[16].mxu1 }
 0x804   : > { %6733 = vrot.lane.b32.xlu0 %v8333_v51, %s9601_s11  ;;  %v5478_v26 = vpop.f32.mrb[17].mxu1 }
 0x807   : > { %v8336_v36 = vpop.f32.mrb[18].mxu1 }
 0x808   : > { %6731 = vrot.lane.b32.xlu0 %v5478_v26, %s9601_s11  ;;  %6737 = vrot.lane.b32.xlu1 %v8336_v36, %s9601_s11  ;;  %v5490_v13 = vpop.f32.mrb[19].mxu1 }
 0x80b   : > { %v8339_v5 = vpop.f32.mrb[20].mxu1 }
 0x80c   : > { %6735 = vrot.lane.b32.xlu1 %v5490_v13, %s9601_s11  ;;  %v5502_v44 = vpop.f32.mrb[21].mxu1 }
 0x80d   : > { %6739 = vrot.lane.b32.xlu0 %v5502_v44, %s9601_s11 }
 0x80f   : > { %v8342_v6 = vpop.f32.mrb[22].mxu1 }
 0x810   : > { %6741 = vrot.lane.b32.xlu1 %v8339_v5, %s9601_s11  ;;  %v5514_v58 = vpop.f32.mrb[23].mxu1 }
 0x811   : > { %6743 = vrot.lane.b32.xlu0 %v5514_v58, %s9601_s11 }
 0x814   : > { %6745 = vrot.lane.b32.xlu1 %v8342_v6, %s9601_s11 }
 0x833   : > { %v8385_v57 = vpop.f32.mrb[24].mxu1 }
 0x834   : > { %v11476_v8 = vadd.f32 %v8513_v31, %v8385_v57  ;;  %v5909_v39 = vpop.f32.mrb[25].mxu1 }
 0x835   : > { %v8916_v47 = vadd.f32 %v6629_v34, %v5909_v39 }
 0x837   : > { %v6755_v14 = vadd.f32 %v8916_v47, %v5478_v26  ;;  %v8388_v48 = vpop.f32.mrb[26].mxu1 }
 0x838   : > { %v8917_v16 = vadd.f32 %v8516_v23, %v8388_v48  ;;  %v5921_v25 = vpop.f32.mrb[27].mxu1 }
 0x839   : > { %v6778_v49 = vadd.f32 %v11481_v50, %v6755_v14  ;;  %v8918_v56 = vadd.f32 %v6641_v55, %v5921_v25 }
 0x83b   : > { %6794 = vst.msk [vmem:[%s11486_s0] sm:$0xff] %vm5544_vm4, %v6778_v49  ;;  %v6757_v4 = vadd.f32 %v8918_v56, %v8333_v51 }
 0x83d   : > { %v6780_v61 = vadd.f32 %v11481_v50, %v6757_v4 }
 0x83f   : > { %6796 = vst.msk [vmem:[%s11486_s0 + $0x10] sm:$0xff] %vm5544_vm4, %v6780_v61 }
 0x853   : > { %v8423_v33 = vpop.f32.mrb[28].mxu1 }
 0x854   : > { %v8919_v46 = vadd.f32 %v8519_v29, %v8423_v33  ;;  %v6107_v63 = vpop.f32.mrb[29].mxu1 }
 0x855   : > { %v8920_v24 = vadd.f32 %v6653_v40, %v6107_v63 }
 0x857   : > { %v6759_v11 = vadd.f32 %v8920_v24, %v5490_v13  ;;  %v8426_v18 = vpop.f32.mrb[30].mxu1 }
 0x858   : > { %v8921_v27 = vadd.f32 %v8522_v38, %v8426_v18  ;;  %v6121_v54 = vpop.f32.mrb[31].mxu1 }
 0x859   : > { %v6782_v30 = vadd.f32 %v11481_v50, %v6759_v11  ;;  %v8922_v32 = vadd.f32 %v6665_v59, %v6121_v54 }
 0x85b   : > { %6798 = vst.msk [vmem:[%s11486_s0 + $0x20] sm:$0xff] %vm5544_vm4, %v6782_v30  ;;  %v6761_v3 = vadd.f32 %v8922_v32, %v8336_v36  ;;  %v8429_v45 = vpop.f32.mrb[32].mxu1 }
 0x85c   : > { %v8923_v9 = vadd.f32 %v8525_v0, %v8429_v45  ;;  %v6135_v1 = vpop.f32.mrb[33].mxu1 }
 0x85d   : > { %v6784_v42 = vadd.f32 %v11481_v50, %v6761_v3  ;;  %v8924_v37 = vadd.f32 %v6677_v35, %v6135_v1 }
 0x85f   : > { %6800 = vst.msk [vmem:[%s11486_s0 + $0x30] sm:$0xff] %vm5544_vm4, %v6784_v42  ;;  %v6763_v41 = vadd.f32 %v8924_v37, %v5502_v44  ;;  %v8432_v62 = vpop.f32.mrb[34].mxu1 }
 0x860   : > { %v8925_v22 = vadd.f32 %v8528_v60, %v8432_v62  ;;  %v6149_v10 = vpop.f32.mrb[35].mxu1 }
 0x861   : > { %v6786_v19 = vadd.f32 %v11481_v50, %v6763_v41  ;;  %v8926_v53 = vadd.f32 %v6689_v43, %v6149_v10 }
 0x863   : > { %6802 = vst.msk [vmem:[%s11486_s0 + $0x40] sm:$0xff] %vm5544_vm4, %v6786_v19  ;;  %v6765_v2 = vadd.f32 %v8926_v53, %v8339_v5  ;;  %v8435_v7 = vpop.f32.mrb[36].mxu1 }
 0x864   : > { %v8927_v15 = vadd.f32 %v11468_v12, %v8435_v7  ;;  %v6163_v21 = vpop.f32.mrb[37].mxu1 }
 0x865   : > { %v6788_v17 = vadd.f32 %v11481_v50, %v6765_v2  ;;  %v8928_v31 = vadd.f32 %v11470_v28, %v6163_v21 }
 0x867   : > { %6804 = vst.msk [vmem:[%s11486_s0 + $0x50] sm:$0xff] %vm5544_vm4, %v6788_v17  ;;  %v6767_v34 = vadd.f32 %v8928_v31, %v5514_v58  ;;  %v8438_v23 = vpop.f32.mrb[38].mxu1 }
 0x868   : > { %v8929_v55 = vadd.f32 %v11472_v52, %v8438_v23  ;;  %v6177_v29 = vpop.f32.mrb[39].mxu1 }
 0x869   : > { %v6790_v40 = vadd.f32 %v11481_v50, %v6767_v34  ;;  %v8930_v38 = vadd.f32 %v11474_v20, %v6177_v29 }
 0x86b   : > { %6806 = vst.msk [vmem:[%s11486_s0 + $0x60] sm:$0xff] %vm5544_vm4, %v6790_v40  ;;  %v6769_v59 = vadd.f32 %v8930_v38, %v8342_v6 }
 0x86d   : > { %v6792_v0 = vadd.f32 %v11481_v50, %v6769_v59 }
 0x86f   : > { %6808 = vst.msk [vmem:[%s11486_s0 + $0x70] sm:$0xff] %vm5544_vm4, %v6792_v0 }
 0x876   : > { %v6734_v35 = vpop.permute.xlu0 %6733 }
 0x877   : > { %v6758_v60 = vadd.f32 %v8917_v16, %v6734_v35 }
 0x879   : > { %v6781_v43 = vadd.f32 %v11481_v50, %v6758_v60 }
 0x87a   : > { %v6732_v12 = vpop.permute.xlu0 %6731  ;;  %v6738_v28 = vpop.permute.xlu1 %6737 }
 0x87b   : > { %6797 = vst.msk [vmem:[%s11486_s0 + $0x18] sm:$0xff] %vm5544_vm4, %v6781_v43  ;;  %v6756_v52 = vadd.f32 %v11476_v8, %v6732_v12  ;;  %v6762_v20 = vadd.f32 %v8921_v27, %v6738_v28 }
 0x87d   : > { %v6779_v51 = vadd.f32 %v11481_v50, %v6756_v52  ;;  %v6785_v26 = vadd.f32 %v11481_v50, %v6762_v20 }
 0x87e   : > { %v6736_v36 = vpop.permute.xlu1 %6735 }
 0x87f   : > { %6795 = vst.msk [vmem:[%s11486_s0 + $0x8] sm:$0xff] %vm5544_vm4, %v6779_v51  ;;  %6801 = vst.msk [vmem:[%s11486_s0 + $0x38] sm:$0xff] %vm5544_vm4, %v6785_v26  ;;  %v6760_v13 = vadd.f32 %v8919_v46, %v6736_v36  ;;  %v6740_v5 = vpop.permute.xlu0 %6739 }
 0x880   : > { %v6764_v44 = vadd.f32 %v8923_v9, %v6740_v5 }
 0x881   : > { %v6783_v6 = vadd.f32 %v11481_v50, %v6760_v13 }
 0x882   : > { %v6787_v58 = vadd.f32 %v11481_v50, %v6764_v44  ;;  %v6742_v57 = vpop.permute.xlu1 %6741 }
 0x883   : > { %6799 = vst.msk [vmem:[%s11486_s0 + $0x28] sm:$0xff] %vm5544_vm4, %v6783_v6  ;;  %v6766_v8 = vadd.f32 %v8925_v22, %v6742_v57  ;;  %v6744_v39 = vpop.permute.xlu0 %6743 }
 0x884   : > { %6803 = vst.msk [vmem:[%s11486_s0 + $0x48] sm:$0xff] %vm5544_vm4, %v6787_v58  ;;  %v6768_v47 = vadd.f32 %v8927_v15, %v6744_v39 }
 0x885   : > { %v6789_v14 = vadd.f32 %v11481_v50, %v6766_v8 }
 0x886   : > { %v6791_v48 = vadd.f32 %v11481_v50, %v6768_v47  ;;  %v6746_v16 = vpop.permute.xlu1 %6745 }
 0x887   : > { %6805 = vst.msk [vmem:[%s11486_s0 + $0x58] sm:$0xff] %vm5544_vm4, %v6789_v14  ;;  %v6770_v25 = vadd.f32 %v8929_v55, %v6746_v16 }
 0x888   : > { %6807 = vst.msk [vmem:[%s11486_s0 + $0x68] sm:$0xff] %vm5544_vm4, %v6791_v48 }
 0x889   : > { %v6793_v49 = vadd.f32 %v11481_v50, %v6770_v25 }
 0x88b   : > { %6809 = vst.msk [vmem:[%s11486_s0 + $0x78] sm:$0xff] %vm5544_vm4, %v6793_v49 }
 0x88c   : > { %9511 = shalt.err (!%p9508_p11)
}
 0x88d   : > { %s9512_s11 = scalar_lea.hbm %s11542_s20, 2048  ;;  %s9516_s6 = scalar_lea.hbm %s11779_s14, 4096 }
 0x88e   : > { %p9513_p12 = scmp.ne.s32.totalorder %s11542_s20, %s9512_s11  ;;  %p9517_p9 = scmp.lt.u32.totalorder %s11542_s20, %s11779_s14 }
 0x88f   : > { %p9518_p0 = scmp.lt.u32.totalorder %s9516_s6, %s9512_s11  ;;  %p9520_p4 = scmp.lt.u32.totalorder %s9512_s11, %s11542_s20 }
 0x890   : > { %p9514_p6 = pnand %p9513_p12, %p9815_p10 }
 0x891   : > { %p9519_p2 = por %p9518_p0, %p9517_p9 }
 0x892   : > { %p9515_p7 = pneg %p9514_p6 }
 0x893   : > { %p9521_p8 = por %p9520_p4, %p9519_p2 }
 0x895   : > { %p9522_p1 = pnand %p9521_p8, %p9515_p7 }
 0x897   : > { %9525 = shalt.err (!%p9522_p1)
}
 0x898   : > { %s9603_s27 = smov 128   ;;  %s9604_s25 = smov 8  }
 0x899   : > { %9251 = dma.vmem_to_hbm [thread:$0]  (%p9815_p10), %s11544_s23, 2048, %s11542_s20, %s6811_s13, %s9603_s27, %s9603_s27, %s9604_s25  }
 0x89a PF: > { %s11780_s28 = sld [smem:[#allocation17_spill]]  ;;  %s11781_s17 = sld [smem:[#allocation19_spill]] }
 0x89b   : > { %p11783_p3 = scmp.ge.s32.totalorder %s9592_s22, 2 }
 0x8a0   : > { %s6841_s2 = sand.u32 1, %s11780_s28   ;;  %p11782_p13 = scmp.ne.s32.totalorder %s11781_s17, 0 }
 0x8a1   : > { %s6842_s9 = scalar_lea.sflag [#allocation4], %s6841_s2 }
 0x8a2   : > { %p9271_p5 = pnand %p11783_p3, %p11782_p13 }
 0x8a4   : > { %9567 = dma.done.wait (!%p9271_p5), %s6842_s9, 2048  }
 0x8a5   : > { %9569 = vsyncadd (!%p9271_p5), %s6842_s9, 4294965248  ;;  %s31_s22 = sadd.s32 1, %s9592_s22   ;;  %s11784_s17 = smov %s9576_s18 }
 0x8a6   : > { %p28_p11 = scmp.ge.s32.totalorder %s31_s22, 4   ;;  %s11785_s18 = smov %s9580_s19 }
 0x8a7   : > { %s11786_s19 = smov %s9830_s12  ;;  %s11787_s20 = smov %s9588_s21 }
 0x8a8   : > { %s11788_s21 = smov %s11790_s10  ;;  %30 = sbr.rel (!%p28_p11) target bundleno = 18 (0x12), region = 134 }
 0x8af   :  { %6847 = vsyncpa [#allocation3], 1 }
 0x8b0   :  { %6849 = vsyncpa [#allocation3 + $0x1], 1 }
 0x8b1   :  { %6850 = vsyncpa [#allocation6], 1 }
 0x8b2   :  { %6852 = vsyncpa [#allocation6 + $0x1], 1 }
 0x8b3   :  { %6853 = vsyncpa [#allocation9], 1 }
 0x8b4   :  { %6854 = vsyncpa [#allocation4], 1 }
 0x8b5   :  { %6856 = vsyncpa [#allocation4 + $0x1], 1 }

</bundles_post_ra>
